<compile_context>
chip_gen: v5e
topology: v5e:2x2
jax: 0.10.0
libtpu: 0.0.40
codegen_flags: <defaults>
</compile_context>

<pallas_src>
import functools

import jax
import jax.numpy as jnp
from jax import lax
from jax.experimental import pallas as pl
from jax.experimental.pallas import tpu as pltpu


def _make_window_terms(shape, r):
    """Roll terms for a separable (2r+1)-wide zero-padded sliding-window sum.

    Returns [(axis, [(roll_amount, mask), ...]), ...] covering the non-zero
    window offsets {-r..r}\\{0} of both spatial axes. Masks are derived from a
    rolled iota, so the construction is agnostic to the hardware roll
    direction convention: a roll by `amt` realizes some fixed offset c with
    |c| <= r at non-wrapped positions, while wrapped positions show
    |delta| = n - |c| > r (requires shape[axis] > 2r, asserted in the
    wrapper), so masking on |delta| <= r keeps exactly the valid, in-bounds
    window neighbours (zero-padding semantics).
    """
    terms = []
    for axis in (1, 0):                       # lanes first, then sublanes
        n = shape[axis]
        idx = lax.broadcasted_iota(jnp.int32, shape, axis)
        axis_terms = []
        for s in range(1, r + 1):
            for amt in (s, n - s):            # circular +/- s, both amounts > 0
                delta = pltpu.roll(idx, amt, axis) - idx
                axis_terms.append((amt, jnp.abs(delta) <= r))
        terms.append((axis, axis_terms))
    return terms


def _window_sum(x, terms):
    """Separable zero-padded sliding-window sum of a 2D map (shift-add)."""
    y = x
    for axis, axis_terms in terms:
        acc = y
        for amt, m in axis_terms:
            acc = acc + jnp.where(m, pltpu.roll(y, amt, axis), jnp.float32(0))
        y = acc
    return y


def _sea_loss_kernel(pred_ref, label_ref, s1_ref, s2_ref, msk_ref, *,
                     n_batch, b_tile, n_steps, radius, inv_k2):
    i = pl.program_id(0)

    # Accumulators live in the revisited output blocks (HBM writeback once).
    @pl.when(i == 0)
    def _init():
        s1_ref[...] = jnp.zeros_like(s1_ref)
        s2_ref[...] = jnp.zeros_like(s2_ref)
        msk_ref[...] = jnp.zeros_like(msk_ref)

    cl = label_ref.shape[1]
    H = pred_ref.shape[2]
    W = pred_ref.shape[3]
    sqrt_cl = float(cl) ** 0.5

    # Shift/mask terms and per-pixel 5x5 in-bounds window size: shared by all
    # batch elements of this step, built from iota (no host constants/DMA).
    terms5 = _make_window_terms((H, W), 2)
    terms_r = terms5 if radius == 2 else _make_window_terms((H, W), radius)
    ih = lax.broadcasted_iota(jnp.int32, (H, W), 0)
    iw = lax.broadcasted_iota(jnp.int32, (H, W), 1)
    wc5 = ((jnp.minimum(ih, 2) + jnp.minimum(H - 1 - ih, 2) + 1) *
           (jnp.minimum(iw, 2) + jnp.minimum(W - 1 - iw, 2) + 1)
           ).astype(jnp.float32)

    def process(b):
        sal = pred_ref[b, 0].astype(jnp.float32)              # (H, W)

        # ---- contour mask: windowed max/min from ONE 5x5 count pool --------
        # (exact: binary map, integer counts <= 25 are exact in f32)
        lbl = (sal > 0.5).astype(jnp.float32)
        cnt5 = _window_sum(lbl, terms5)
        dil = (cnt5 > 0.0).astype(jnp.float32)                # max_pool(lbl)
        ero = (cnt5 >= wc5 - 0.5).astype(jnp.float32)         # 1-max_pool(1-lbl)
        mask = (dil - ero) + 1e-10

        # ---- avg pools: shift-add, zero padding, divide by d^2 -------------
        avg_p = _window_sum(sal, terms_r) * inv_k2            # pooled saliency
        sum_f = jnp.zeros((H, W), jnp.float32)
        n1_sq = jnp.zeros((H, W), jnp.float32)
        avg_last = None
        for c in range(cl):                                   # small static Cl
            a = _window_sum(label_ref[b, c].astype(jnp.float32),
                            terms_r) * inv_k2
            sum_f = sum_f + a
            n1_sq = n1_sq + a * a
            avg_last = a

        # ---- cosine similarity along channels (avg_p broadcast to Cl) ------
        eps = jnp.float32(1e-8)
        n1 = jnp.maximum(jnp.sqrt(n1_sq), eps)
        n2 = jnp.maximum(jnp.float32(sqrt_cl) * jnp.abs(avg_p), eps)
        alignment = 1.0 - (sum_f * avg_p) / (n1 * n2)

        dis_sal = jnp.abs(avg_last)          # |avg of last label channel|

        # Cross-batch factorization of sum(distance * mask):
        #   sum_{i,j,h,w} dis[i]*mask[i]*align[j]
        #     = sum_{h,w} (sum_i dis[i]*mask[i]) * (sum_j align[j])
        s1_ref[...] += dis_sal * mask
        s2_ref[...] += alignment
        msk_ref[...] += mask

    for b in range(b_tile):
        if (n_steps - 1) * b_tile + b < n_batch:
            process(b)                        # in-bounds at every grid step
        else:                                 # padded tail element: gate it
            pl.when(i * b_tile + b < n_batch)(functools.partial(process, b))


def sea_loss_pallas(pred, label, radius, b_tile=None):
    """Pallas implementation of SEALoss.forward (returns a scalar loss)."""
    N, Cp, H, W = pred.shape
    Nl, Cl, Hl, Wl = label.shape
    assert N == Nl and (H, W) == (Hl, Wl), "interpolate must be an identity"
    # PyTorch broadcasting in the original code needs a 1-channel pred
    # (the usual saliency-map use case).
    assert Cp == 1
    # shift-add pooling (and the 5x5 contour window) needs both spatial dims
    # strictly larger than twice the window radius
    assert H > 4 and W > 4 and H > 2 * radius and W > 2 * radius

    d = 2 * radius + 1
    elem_bytes = (Cp * jnp.dtype(pred.dtype).itemsize
                  + Cl * jnp.dtype(label.dtype).itemsize) * H * W

    if b_tile is None:
        # Amortize the ~0.35us per-grid-step overhead; keep the (double
        # buffered) input blocks within a conservative VMEM budget.
        b_tile = max(1, min(N, 8, (8 << 20) // max(elem_bytes, 1)))
    b_tile = int(min(max(int(b_tile), 1), N))
    n_steps = pl.cdiv(N, b_tile)

    kernel = functools.partial(_sea_loss_kernel, n_batch=N, b_tile=b_tile,
                               n_steps=n_steps, radius=radius,
                               inv_k2=1.0 / float(d * d))

    # --- VMEM audit (heuristic with headroom); cap well below the v7x 64 MiB
    # per-core physical VMEM per perf review -------------------------------
    f32 = 4
    blk = b_tile * elem_bytes                        # one input block
    outs = 3 * H * W * f32                           # resident accumulators
    work = (16 * f32 + (8 + 4 * radius)) * H * W     # live temps + vmasks
    est = 2 * blk + 2 * outs + work + (2 << 20)
    vmem_limit = int(min(max(est, 32 << 20), 48 << 20))

    grid_spec = pltpu.PrefetchScalarGridSpec(
        num_scalar_prefetch=0,
        grid=(n_steps,),
        in_specs=[
            pl.BlockSpec((b_tile, Cp, H, W), lambda i: (i, 0, 0, 0)),
            pl.BlockSpec((b_tile, Cl, H, W), lambda i: (i, 0, 0, 0)),
        ],
        out_specs=[
            pl.BlockSpec((H, W), lambda i: (0, 0)),  # S1 = sum_i dis_i*mask_i
            pl.BlockSpec((H, W), lambda i: (0, 0)),  # S2 = sum_j align_j
            pl.BlockSpec((H, W), lambda i: (0, 0)),  # sum_i mask_i
        ],
    )

    s1, s2, msk = pl.pallas_call(
        kernel,
        out_shape=(jax.ShapeDtypeStruct((H, W), jnp.float32),
                   jax.ShapeDtypeStruct((H, W), jnp.float32),
                   jax.ShapeDtypeStruct((H, W), jnp.float32)),
        grid_spec=grid_spec,
        compiler_params=pltpu.CompilerParams(
            dimension_semantics=("arbitrary",),
            vmem_limit_bytes=vmem_limit),
    )(pred, label)

    # Tiny epilogue; the factorized sums make the cross-batch (N,N,H,W)
    # coupling exact without ever materializing it.
    return jnp.sum(s1 * s2) / jnp.sum(msk)


# ---------------- pure-JAX reference (mirrors the PyTorch code) ----------------
def _avg_pool_nchw(x, radius):
    d = 2 * radius + 1
    s = lax.reduce_window(x, 0.0, lax.add, (1, 1, d, d), (1, 1, 1, 1),
                          [(0, 0), (0, 0), (radius, radius), (radius, radius)])
    return s / float(d * d)


def _max_pool_nchw(x, k, pad):
    return lax.reduce_window(x, -jnp.inf, lax.max, (1, 1, k, k), (1, 1, 1, 1),
                             [(0, 0), (0, 0), (pad, pad), (pad, pad)])


def sea_loss_ref(pred, label, radius):
    sal = pred.astype(jnp.float32)
    lab = label.astype(jnp.float32)
    lbl = (sal > 0.5).astype(jnp.float32)
    ero = 1.0 - _max_pool_nchw(1.0 - lbl, 5, 2)
    dil = _max_pool_nchw(lbl, 5, 2)
    mask = (dil - ero) + 1e-10                         # (N, 1, H, W)
    avg_f = _avg_pool_nchw(lab, radius)                # (N, Cl, H, W)
    avg_p = _avg_pool_nchw(sal, radius)                # (N, 1, H, W)
    eps = 1e-8
    x1 = avg_f
    x2 = jnp.broadcast_to(avg_p, avg_f.shape)
    n1 = jnp.maximum(jnp.sqrt(jnp.sum(x1 * x1, axis=1)), eps)
    n2 = jnp.maximum(jnp.sqrt(jnp.sum(x2 * x2, axis=1)), eps)
    cos = jnp.sum(x1 * x2, axis=1) / (n1 * n2)
    alignment = 1.0 - cos                              # (N, H, W)
    dis_sal = jnp.abs(avg_f[:, -1:, :, :])             # (N, 1, H, W)
    distance = dis_sal * alignment                     # (N, N, H, W)
    return jnp.sum(distance * mask) / jnp.sum(mask)


if __name__ == "__main__":
    key = jax.random.PRNGKey(0)
    k1, k2, k3, k4 = jax.random.split(key, 4)

    # Config 1: the canonical small shape (one grid step, b_tile == N).
    N, Cp, Cl, H, W = 2, 1, 4, 16, 16
    radius = 2
    pred = jax.nn.sigmoid(jax.random.normal(k1, (N, Cp, H, W), jnp.float32))
    label = jax.random.normal(k2, (N, Cl, H, W), jnp.float32)
    loss = jax.block_until_ready(sea_loss_pallas(pred, label, radius))
    loss_ref = jax.block_until_ready(sea_loss_ref(pred, label, radius))
    assert jnp.allclose(loss, loss_ref, rtol=1e-4, atol=1e-5), (loss, loss_ref)

    # Config 2: odd batch with explicit b_tile=2 (exercises the gated padded
    # tail element of the last grid step) + radius=1.
    N2, Cl2, r2 = 3, 2, 1
    pred2 = jax.nn.sigmoid(jax.random.normal(k3, (N2, 1, H, W), jnp.float32))
    label2 = jax.random.normal(k4, (N2, Cl2, H, W), jnp.float32)
    loss2 = jax.block_until_ready(sea_loss_pallas(pred2, label2, r2, b_tile=2))
    loss2_ref = jax.block_until_ready(sea_loss_ref(pred2, label2, r2))
    assert jnp.allclose(loss2, loss2_ref, rtol=1e-4, atol=1e-5), (loss2, loss2_ref)

    print("KERNEL_OK")
</pallas_src>

<mosaic_0001>
module attributes {stable_mosaic.version = 11 : i64} {
  func.func @_sea_loss_kernel(%arg0: i32, %arg1: memref<2x1x16x16xf32, #tpu.memory_space<vmem>>, %arg2: memref<2x4x16x16xf32, #tpu.memory_space<vmem>>, %arg3: memref<16x16xf32, #tpu.memory_space<vmem>>, %arg4: memref<16x16xf32, #tpu.memory_space<vmem>>, %arg5: memref<16x16xf32, #tpu.memory_space<vmem>>) attributes {dimension_semantics = [#tpu.dimension_semantics<arbitrary>], iteration_bounds = array<i64: 1>, scalar_prefetch = 0 : i64, scratch_operands = 0 : i64, tpu.core_type = #tpu.core_type<tc>, window_params = [{transform_indices = @transform_0, window_bounds = array<i64: 2, 1, 16, 16>}, {transform_indices = @transform_1, window_bounds = array<i64: 2, 4, 16, 16>}, {pipeline_mode = #tpu.pipeline_mode<synchronous>, transform_indices = @transform_2, window_bounds = array<i64: 16, 16>}, {pipeline_mode = #tpu.pipeline_mode<synchronous>, transform_indices = @transform_3, window_bounds = array<i64: 16, 16>}, {pipeline_mode = #tpu.pipeline_mode<synchronous>, transform_indices = @transform_4, window_bounds = array<i64: 16, 16>}]} {
    %c0_i32 = arith.constant 0 : i32
    %0 = arith.cmpi eq, %arg0, %c0_i32 : i32
    %1 = arith.extui %0 : i1 to i32
    %c0_i32_0 = arith.constant 0 : i32
    %2 = arith.cmpi ne, %1, %c0_i32_0 : i32
    scf.if %2 {
      %cst_302 = arith.constant 0.000000e+00 : f32
      %599 = vector.broadcast %cst_302 : f32 to vector<16x16xf32>
      %c0_303 = arith.constant 0 : index
      %c0_304 = arith.constant 0 : index
      %600 = vector.load %arg3[%c0_303, %c0_304] : memref<16x16xf32, #tpu.memory_space<vmem>>, vector<16x16xf32>
      tpu.vector_store %arg3[%c0_303, %c0_304], %599 {strides = array<i32>} : memref<16x16xf32, #tpu.memory_space<vmem>>, vector<16x16xf32>,
      %cst_305 = arith.constant 0.000000e+00 : f32
      %601 = vector.broadcast %cst_305 : f32 to vector<16x16xf32>
      %c0_306 = arith.constant 0 : index
      %c0_307 = arith.constant 0 : index
      %602 = vector.load %arg4[%c0_306, %c0_307] : memref<16x16xf32, #tpu.memory_space<vmem>>, vector<16x16xf32>
      tpu.vector_store %arg4[%c0_306, %c0_307], %601 {strides = array<i32>} : memref<16x16xf32, #tpu.memory_space<vmem>>, vector<16x16xf32>,
      %cst_308 = arith.constant 0.000000e+00 : f32
      %603 = vector.broadcast %cst_308 : f32 to vector<16x16xf32>
      %c0_309 = arith.constant 0 : index
      %c0_310 = arith.constant 0 : index
      %604 = vector.load %arg5[%c0_309, %c0_310] : memref<16x16xf32, #tpu.memory_space<vmem>>, vector<16x16xf32>
      tpu.vector_store %arg5[%c0_309, %c0_310], %603 {strides = array<i32>} : memref<16x16xf32, #tpu.memory_space<vmem>>, vector<16x16xf32>,
    } else {
    }
    %3 = tpu.iota {dimensions = array<i32: 1>} : vector<16x16xi32>
    %c1_i32 = arith.constant 1 : i32
    %4 = tpu.dynamic_rotate %3 by %c1_i32 dim 1 : vector<16x16xi32>, i32 -> vector<16x16xi32>
    %5 = arith.subi %4, %3 : vector<16x16xi32>
    %6 = math.absi %5 : vector<16x16xi32>
    %c2_i32 = arith.constant 2 : i32
    %7 = vector.broadcast %c2_i32 : i32 to vector<16x16xi32>
    %8 = arith.cmpi sle, %6, %7 : vector<16x16xi32>
    %c15_i32 = arith.constant 15 : i32
    %9 = tpu.dynamic_rotate %3 by %c15_i32 dim 1 : vector<16x16xi32>, i32 -> vector<16x16xi32>
    %10 = arith.subi %9, %3 : vector<16x16xi32>
    %11 = math.absi %10 : vector<16x16xi32>
    %c2_i32_1 = arith.constant 2 : i32
    %12 = vector.broadcast %c2_i32_1 : i32 to vector<16x16xi32>
    %13 = arith.cmpi sle, %11, %12 : vector<16x16xi32>
    %c2_i32_2 = arith.constant 2 : i32
    %14 = tpu.dynamic_rotate %3 by %c2_i32_2 dim 1 : vector<16x16xi32>, i32 -> vector<16x16xi32>
    %15 = arith.subi %14, %3 : vector<16x16xi32>
    %16 = math.absi %15 : vector<16x16xi32>
    %c2_i32_3 = arith.constant 2 : i32
    %17 = vector.broadcast %c2_i32_3 : i32 to vector<16x16xi32>
    %18 = arith.cmpi sle, %16, %17 : vector<16x16xi32>
    %c14_i32 = arith.constant 14 : i32
    %19 = tpu.dynamic_rotate %3 by %c14_i32 dim 1 : vector<16x16xi32>, i32 -> vector<16x16xi32>
    %20 = arith.subi %19, %3 : vector<16x16xi32>
    %21 = math.absi %20 : vector<16x16xi32>
    %c2_i32_4 = arith.constant 2 : i32
    %22 = vector.broadcast %c2_i32_4 : i32 to vector<16x16xi32>
    %23 = arith.cmpi sle, %21, %22 : vector<16x16xi32>
    %24 = tpu.iota {dimensions = array<i32: 0>} : vector<16x16xi32>
    %c1_i32_5 = arith.constant 1 : i32
    %25 = tpu.dynamic_rotate %24 by %c1_i32_5 dim 0 : vector<16x16xi32>, i32 -> vector<16x16xi32>
    %26 = arith.subi %25, %24 : vector<16x16xi32>
    %27 = math.absi %26 : vector<16x16xi32>
    %c2_i32_6 = arith.constant 2 : i32
    %28 = vector.broadcast %c2_i32_6 : i32 to vector<16x16xi32>
    %29 = arith.cmpi sle, %27, %28 : vector<16x16xi32>
    %c15_i32_7 = arith.constant 15 : i32
    %30 = tpu.dynamic_rotate %24 by %c15_i32_7 dim 0 : vector<16x16xi32>, i32 -> vector<16x16xi32>
    %31 = arith.subi %30, %24 : vector<16x16xi32>
    %32 = math.absi %31 : vector<16x16xi32>
    %c2_i32_8 = arith.constant 2 : i32
    %33 = vector.broadcast %c2_i32_8 : i32 to vector<16x16xi32>
    %34 = arith.cmpi sle, %32, %33 : vector<16x16xi32>
    %c2_i32_9 = arith.constant 2 : i32
    %35 = tpu.dynamic_rotate %24 by %c2_i32_9 dim 0 : vector<16x16xi32>, i32 -> vector<16x16xi32>
    %36 = arith.subi %35, %24 : vector<16x16xi32>
    %37 = math.absi %36 : vector<16x16xi32>
    %c2_i32_10 = arith.constant 2 : i32
    %38 = vector.broadcast %c2_i32_10 : i32 to vector<16x16xi32>
    %39 = arith.cmpi sle, %37, %38 : vector<16x16xi32>
    %c14_i32_11 = arith.constant 14 : i32
    %40 = tpu.dynamic_rotate %24 by %c14_i32_11 dim 0 : vector<16x16xi32>, i32 -> vector<16x16xi32>
    %41 = arith.subi %40, %24 : vector<16x16xi32>
    %42 = math.absi %41 : vector<16x16xi32>
    %c2_i32_12 = arith.constant 2 : i32
    %43 = vector.broadcast %c2_i32_12 : i32 to vector<16x16xi32>
    %44 = arith.cmpi sle, %42, %43 : vector<16x16xi32>
    %45 = tpu.iota {dimensions = array<i32: 0>} : vector<16x16xi32>
    %46 = tpu.iota {dimensions = array<i32: 1>} : vector<16x16xi32>
    %c2_i32_13 = arith.constant 2 : i32
    %47 = vector.broadcast %c2_i32_13 : i32 to vector<16x16xi32>
    %48 = arith.minsi %45, %47 : vector<16x16xi32>
    %c15_i32_14 = arith.constant 15 : i32
    %49 = vector.broadcast %c15_i32_14 : i32 to vector<16x16xi32>
    %50 = arith.subi %49, %45 : vector<16x16xi32>
    %c2_i32_15 = arith.constant 2 : i32
    %51 = vector.broadcast %c2_i32_15 : i32 to vector<16x16xi32>
    %52 = arith.minsi %50, %51 : vector<16x16xi32>
    %53 = arith.addi %48, %52 : vector<16x16xi32>
    %c1_i32_16 = arith.constant 1 : i32
    %54 = vector.broadcast %c1_i32_16 : i32 to vector<16x16xi32>
    %55 = arith.addi %53, %54 : vector<16x16xi32>
    %c2_i32_17 = arith.constant 2 : i32
    %56 = vector.broadcast %c2_i32_17 : i32 to vector<16x16xi32>
    %57 = arith.minsi %46, %56 : vector<16x16xi32>
    %c15_i32_18 = arith.constant 15 : i32
    %58 = vector.broadcast %c15_i32_18 : i32 to vector<16x16xi32>
    %59 = arith.subi %58, %46 : vector<16x16xi32>
    %c2_i32_19 = arith.constant 2 : i32
    %60 = vector.broadcast %c2_i32_19 : i32 to vector<16x16xi32>
    %61 = arith.minsi %59, %60 : vector<16x16xi32>
    %62 = arith.addi %57, %61 : vector<16x16xi32>
    %c1_i32_20 = arith.constant 1 : i32
    %63 = vector.broadcast %c1_i32_20 : i32 to vector<16x16xi32>
    %64 = arith.addi %62, %63 : vector<16x16xi32>
    %65 = arith.muli %55, %64 : vector<16x16xi32>
    %66 = arith.sitofp %65 : vector<16x16xi32> to vector<16x16xf32>
    %c0 = arith.constant 0 : index
    %c0_21 = arith.constant 0 : index
    %c0_22 = arith.constant 0 : index
    %c0_23 = arith.constant 0 : index
    %67 = vector.load %arg1[%c0, %c0_21, %c0_22, %c0_23] : memref<2x1x16x16xf32, #tpu.memory_space<vmem>>, vector<1x1x16x16xf32>
    %68 = vector.shape_cast %67 : vector<1x1x16x16xf32> to vector<16x16xf32>
    %cst = arith.constant 5.000000e-01 : f32
    %69 = vector.broadcast %cst : f32 to vector<16x16xf32>
    %70 = arith.cmpf ogt, %68, %69 : vector<16x16xf32>
    %71 = arith.extui %70 : vector<16x16xi1> to vector<16x16xi32>
    %72 = arith.sitofp %71 : vector<16x16xi32> to vector<16x16xf32>
    %c1_i32_24 = arith.constant 1 : i32
    %73 = tpu.dynamic_rotate %72 by %c1_i32_24 dim 1 : vector<16x16xf32>, i32 -> vector<16x16xf32>
    %cst_25 = arith.constant 0.000000e+00 : f32
    %74 = vector.broadcast %cst_25 : f32 to vector<16x16xf32>
    %75 = arith.select %8, %73, %74 : vector<16x16xi1>, vector<16x16xf32>
    %76 = arith.addf %72, %75 : vector<16x16xf32>
    %c15_i32_26 = arith.constant 15 : i32
    %77 = tpu.dynamic_rotate %72 by %c15_i32_26 dim 1 : vector<16x16xf32>, i32 -> vector<16x16xf32>
    %cst_27 = arith.constant 0.000000e+00 : f32
    %78 = vector.broadcast %cst_27 : f32 to vector<16x16xf32>
    %79 = arith.select %13, %77, %78 : vector<16x16xi1>, vector<16x16xf32>
    %80 = arith.addf %76, %79 : vector<16x16xf32>
    %c2_i32_28 = arith.constant 2 : i32
    %81 = tpu.dynamic_rotate %72 by %c2_i32_28 dim 1 : vector<16x16xf32>, i32 -> vector<16x16xf32>
    %cst_29 = arith.constant 0.000000e+00 : f32
    %82 = vector.broadcast %cst_29 : f32 to vector<16x16xf32>
    %83 = arith.select %18, %81, %82 : vector<16x16xi1>, vector<16x16xf32>
    %84 = arith.addf %80, %83 : vector<16x16xf32>
    %c14_i32_30 = arith.constant 14 : i32
    %85 = tpu.dynamic_rotate %72 by %c14_i32_30 dim 1 : vector<16x16xf32>, i32 -> vector<16x16xf32>
    %cst_31 = arith.constant 0.000000e+00 : f32
    %86 = vector.broadcast %cst_31 : f32 to vector<16x16xf32>
    %87 = arith.select %23, %85, %86 : vector<16x16xi1>, vector<16x16xf32>
    %88 = arith.addf %84, %87 : vector<16x16xf32>
    %c1_i32_32 = arith.constant 1 : i32
    %89 = tpu.dynamic_rotate %88 by %c1_i32_32 dim 0 : vector<16x16xf32>, i32 -> vector<16x16xf32>
    %cst_33 = arith.constant 0.000000e+00 : f32
    %90 = vector.broadcast %cst_33 : f32 to vector<16x16xf32>
    %91 = arith.select %29, %89, %90 : vector<16x16xi1>, vector<16x16xf32>
    %92 = arith.addf %88, %91 : vector<16x16xf32>
    %c15_i32_34 = arith.constant 15 : i32
    %93 = tpu.dynamic_rotate %88 by %c15_i32_34 dim 0 : vector<16x16xf32>, i32 -> vector<16x16xf32>
    %cst_35 = arith.constant 0.000000e+00 : f32
    %94 = vector.broadcast %cst_35 : f32 to vector<16x16xf32>
    %95 = arith.select %34, %93, %94 : vector<16x16xi1>, vector<16x16xf32>
    %96 = arith.addf %92, %95 : vector<16x16xf32>
    %c2_i32_36 = arith.constant 2 : i32
    %97 = tpu.dynamic_rotate %88 by %c2_i32_36 dim 0 : vector<16x16xf32>, i32 -> vector<16x16xf32>
    %cst_37 = arith.constant 0.000000e+00 : f32
    %98 = vector.broadcast %cst_37 : f32 to vector<16x16xf32>
    %99 = arith.select %39, %97, %98 : vector<16x16xi1>, vector<16x16xf32>
    %100 = arith.addf %96, %99 : vector<16x16xf32>
    %c14_i32_38 = arith.constant 14 : i32
    %101 = tpu.dynamic_rotate %88 by %c14_i32_38 dim 0 : vector<16x16xf32>, i32 -> vector<16x16xf32>
    %cst_39 = arith.constant 0.000000e+00 : f32
    %102 = vector.broadcast %cst_39 : f32 to vector<16x16xf32>
    %103 = arith.select %44, %101, %102 : vector<16x16xi1>, vector<16x16xf32>
    %104 = arith.addf %100, %103 : vector<16x16xf32>
    %cst_40 = arith.constant 0.000000e+00 : f32
    %105 = vector.broadcast %cst_40 : f32 to vector<16x16xf32>
    %106 = arith.cmpf ogt, %104, %105 : vector<16x16xf32>
    %107 = arith.extui %106 : vector<16x16xi1> to vector<16x16xi32>
    %108 = arith.sitofp %107 : vector<16x16xi32> to vector<16x16xf32>
    %cst_41 = arith.constant 5.000000e-01 : f32
    %109 = vector.broadcast %cst_41 : f32 to vector<16x16xf32>
    %110 = arith.subf %66, %109 : vector<16x16xf32>
    %111 = arith.cmpf oge, %104, %110 : vector<16x16xf32>
    %112 = arith.extui %111 : vector<16x16xi1> to vector<16x16xi32>
    %113 = arith.sitofp %112 : vector<16x16xi32> to vector<16x16xf32>
    %114 = arith.subf %108, %113 : vector<16x16xf32>
    %cst_42 = arith.constant 1.000000e-10 : f32
    %115 = vector.broadcast %cst_42 : f32 to vector<16x16xf32>
    %116 = arith.addf %114, %115 : vector<16x16xf32>
    %c1_i32_43 = arith.constant 1 : i32
    %117 = tpu.dynamic_rotate %68 by %c1_i32_43 dim 1 : vector<16x16xf32>, i32 -> vector<16x16xf32>
    %cst_44 = arith.constant 0.000000e+00 : f32
    %118 = vector.broadcast %cst_44 : f32 to vector<16x16xf32>
    %119 = arith.select %8, %117, %118 : vector<16x16xi1>, vector<16x16xf32>
    %120 = arith.addf %68, %119 : vector<16x16xf32>
    %c15_i32_45 = arith.constant 15 : i32
    %121 = tpu.dynamic_rotate %68 by %c15_i32_45 dim 1 : vector<16x16xf32>, i32 -> vector<16x16xf32>
    %cst_46 = arith.constant 0.000000e+00 : f32
    %122 = vector.broadcast %cst_46 : f32 to vector<16x16xf32>
    %123 = arith.select %13, %121, %122 : vector<16x16xi1>, vector<16x16xf32>
    %124 = arith.addf %120, %123 : vector<16x16xf32>
    %c2_i32_47 = arith.constant 2 : i32
    %125 = tpu.dynamic_rotate %68 by %c2_i32_47 dim 1 : vector<16x16xf32>, i32 -> vector<16x16xf32>
    %cst_48 = arith.constant 0.000000e+00 : f32
    %126 = vector.broadcast %cst_48 : f32 to vector<16x16xf32>
    %127 = arith.select %18, %125, %126 : vector<16x16xi1>, vector<16x16xf32>
    %128 = arith.addf %124, %127 : vector<16x16xf32>
    %c14_i32_49 = arith.constant 14 : i32
    %129 = tpu.dynamic_rotate %68 by %c14_i32_49 dim 1 : vector<16x16xf32>, i32 -> vector<16x16xf32>
    %cst_50 = arith.constant 0.000000e+00 : f32
    %130 = vector.broadcast %cst_50 : f32 to vector<16x16xf32>
    %131 = arith.select %23, %129, %130 : vector<16x16xi1>, vector<16x16xf32>
    %132 = arith.addf %128, %131 : vector<16x16xf32>
    %c1_i32_51 = arith.constant 1 : i32
    %133 = tpu.dynamic_rotate %132 by %c1_i32_51 dim 0 : vector<16x16xf32>, i32 -> vector<16x16xf32>
    %cst_52 = arith.constant 0.000000e+00 : f32
    %134 = vector.broadcast %cst_52 : f32 to vector<16x16xf32>
    %135 = arith.select %29, %133, %134 : vector<16x16xi1>, vector<16x16xf32>
    %136 = arith.addf %132, %135 : vector<16x16xf32>
    %c15_i32_53 = arith.constant 15 : i32
    %137 = tpu.dynamic_rotate %132 by %c15_i32_53 dim 0 : vector<16x16xf32>, i32 -> vector<16x16xf32>
    %cst_54 = arith.constant 0.000000e+00 : f32
    %138 = vector.broadcast %cst_54 : f32 to vector<16x16xf32>
    %139 = arith.select %34, %137, %138 : vector<16x16xi1>, vector<16x16xf32>
    %140 = arith.addf %136, %139 : vector<16x16xf32>
    %c2_i32_55 = arith.constant 2 : i32
    %141 = tpu.dynamic_rotate %132 by %c2_i32_55 dim 0 : vector<16x16xf32>, i32 -> vector<16x16xf32>
    %cst_56 = arith.constant 0.000000e+00 : f32
    %142 = vector.broadcast %cst_56 : f32 to vector<16x16xf32>
    %143 = arith.select %39, %141, %142 : vector<16x16xi1>, vector<16x16xf32>
    %144 = arith.addf %140, %143 : vector<16x16xf32>
    %c14_i32_57 = arith.constant 14 : i32
    %145 = tpu.dynamic_rotate %132 by %c14_i32_57 dim 0 : vector<16x16xf32>, i32 -> vector<16x16xf32>
    %cst_58 = arith.constant 0.000000e+00 : f32
    %146 = vector.broadcast %cst_58 : f32 to vector<16x16xf32>
    %147 = arith.select %44, %145, %146 : vector<16x16xi1>, vector<16x16xf32>
    %148 = arith.addf %144, %147 : vector<16x16xf32>
    %cst_59 = arith.constant 4.000000e-02 : f32
    %149 = vector.broadcast %cst_59 : f32 to vector<16x16xf32>
    %150 = arith.mulf %148, %149 : vector<16x16xf32>
    %cst_60 = arith.constant 0.000000e+00 : f32
    %151 = vector.broadcast %cst_60 : f32 to vector<16x16xf32>
    %cst_61 = arith.constant 0.000000e+00 : f32
    %152 = vector.broadcast %cst_61 : f32 to vector<16x16xf32>
    %c0_62 = arith.constant 0 : index
    %c0_63 = arith.constant 0 : index
    %c0_64 = arith.constant 0 : index
    %c0_65 = arith.constant 0 : index
    %153 = vector.load %arg2[%c0_62, %c0_63, %c0_64, %c0_65] : memref<2x4x16x16xf32, #tpu.memory_space<vmem>>, vector<1x1x16x16xf32>
    %154 = vector.shape_cast %153 : vector<1x1x16x16xf32> to vector<16x16xf32>
    %c1_i32_66 = arith.constant 1 : i32
    %155 = tpu.dynamic_rotate %154 by %c1_i32_66 dim 1 : vector<16x16xf32>, i32 -> vector<16x16xf32>
    %cst_67 = arith.constant 0.000000e+00 : f32
    %156 = vector.broadcast %cst_67 : f32 to vector<16x16xf32>
    %157 = arith.select %8, %155, %156 : vector<16x16xi1>, vector<16x16xf32>
    %158 = arith.addf %154, %157 : vector<16x16xf32>
    %c15_i32_68 = arith.constant 15 : i32
    %159 = tpu.dynamic_rotate %154 by %c15_i32_68 dim 1 : vector<16x16xf32>, i32 -> vector<16x16xf32>
    %cst_69 = arith.constant 0.000000e+00 : f32
    %160 = vector.broadcast %cst_69 : f32 to vector<16x16xf32>
    %161 = arith.select %13, %159, %160 : vector<16x16xi1>, vector<16x16xf32>
    %162 = arith.addf %158, %161 : vector<16x16xf32>
    %c2_i32_70 = arith.constant 2 : i32
    %163 = tpu.dynamic_rotate %154 by %c2_i32_70 dim 1 : vector<16x16xf32>, i32 -> vector<16x16xf32>
    %cst_71 = arith.constant 0.000000e+00 : f32
    %164 = vector.broadcast %cst_71 : f32 to vector<16x16xf32>
    %165 = arith.select %18, %163, %164 : vector<16x16xi1>, vector<16x16xf32>
    %166 = arith.addf %162, %165 : vector<16x16xf32>
    %c14_i32_72 = arith.constant 14 : i32
    %167 = tpu.dynamic_rotate %154 by %c14_i32_72 dim 1 : vector<16x16xf32>, i32 -> vector<16x16xf32>
    %cst_73 = arith.constant 0.000000e+00 : f32
    %168 = vector.broadcast %cst_73 : f32 to vector<16x16xf32>
    %169 = arith.select %23, %167, %168 : vector<16x16xi1>, vector<16x16xf32>
    %170 = arith.addf %166, %169 : vector<16x16xf32>
    %c1_i32_74 = arith.constant 1 : i32
    %171 = tpu.dynamic_rotate %170 by %c1_i32_74 dim 0 : vector<16x16xf32>, i32 -> vector<16x16xf32>
    %cst_75 = arith.constant 0.000000e+00 : f32
    %172 = vector.broadcast %cst_75 : f32 to vector<16x16xf32>
    %173 = arith.select %29, %171, %172 : vector<16x16xi1>, vector<16x16xf32>
    %174 = arith.addf %170, %173 : vector<16x16xf32>
    %c15_i32_76 = arith.constant 15 : i32
    %175 = tpu.dynamic_rotate %170 by %c15_i32_76 dim 0 : vector<16x16xf32>, i32 -> vector<16x16xf32>
    %cst_77 = arith.constant 0.000000e+00 : f32
    %176 = vector.broadcast %cst_77 : f32 to vector<16x16xf32>
    %177 = arith.select %34, %175, %176 : vector<16x16xi1>, vector<16x16xf32>
    %178 = arith.addf %174, %177 : vector<16x16xf32>
    %c2_i32_78 = arith.constant 2 : i32
    %179 = tpu.dynamic_rotate %170 by %c2_i32_78 dim 0 : vector<16x16xf32>, i32 -> vector<16x16xf32>
    %cst_79 = arith.constant 0.000000e+00 : f32
    %180 = vector.broadcast %cst_79 : f32 to vector<16x16xf32>
    %181 = arith.select %39, %179, %180 : vector<16x16xi1>, vector<16x16xf32>
    %182 = arith.addf %178, %181 : vector<16x16xf32>
    %c14_i32_80 = arith.constant 14 : i32
    %183 = tpu.dynamic_rotate %170 by %c14_i32_80 dim 0 : vector<16x16xf32>, i32 -> vector<16x16xf32>
    %cst_81 = arith.constant 0.000000e+00 : f32
    %184 = vector.broadcast %cst_81 : f32 to vector<16x16xf32>
    %185 = arith.select %44, %183, %184 : vector<16x16xi1>, vector<16x16xf32>
    %186 = arith.addf %182, %185 : vector<16x16xf32>
    %cst_82 = arith.constant 4.000000e-02 : f32
    %187 = vector.broadcast %cst_82 : f32 to vector<16x16xf32>
    %188 = arith.mulf %186, %187 : vector<16x16xf32>
    %189 = arith.addf %151, %188 : vector<16x16xf32>
    %190 = arith.mulf %188, %188 : vector<16x16xf32>
    %191 = arith.addf %152, %190 : vector<16x16xf32>
    %c0_83 = arith.constant 0 : index
    %c1 = arith.constant 1 : index
    %c0_84 = arith.constant 0 : index
    %c0_85 = arith.constant 0 : index
    %192 = vector.load %arg2[%c0_83, %c1, %c0_84, %c0_85] : memref<2x4x16x16xf32, #tpu.memory_space<vmem>>, vector<1x1x16x16xf32>
    %193 = vector.shape_cast %192 : vector<1x1x16x16xf32> to vector<16x16xf32>
    %c1_i32_86 = arith.constant 1 : i32
    %194 = tpu.dynamic_rotate %193 by %c1_i32_86 dim 1 : vector<16x16xf32>, i32 -> vector<16x16xf32>
    %cst_87 = arith.constant 0.000000e+00 : f32
    %195 = vector.broadcast %cst_87 : f32 to vector<16x16xf32>
    %196 = arith.select %8, %194, %195 : vector<16x16xi1>, vector<16x16xf32>
    %197 = arith.addf %193, %196 : vector<16x16xf32>
    %c15_i32_88 = arith.constant 15 : i32
    %198 = tpu.dynamic_rotate %193 by %c15_i32_88 dim 1 : vector<16x16xf32>, i32 -> vector<16x16xf32>
    %cst_89 = arith.constant 0.000000e+00 : f32
    %199 = vector.broadcast %cst_89 : f32 to vector<16x16xf32>
    %200 = arith.select %13, %198, %199 : vector<16x16xi1>, vector<16x16xf32>
    %201 = arith.addf %197, %200 : vector<16x16xf32>
    %c2_i32_90 = arith.constant 2 : i32
    %202 = tpu.dynamic_rotate %193 by %c2_i32_90 dim 1 : vector<16x16xf32>, i32 -> vector<16x16xf32>
    %cst_91 = arith.constant 0.000000e+00 : f32
    %203 = vector.broadcast %cst_91 : f32 to vector<16x16xf32>
    %204 = arith.select %18, %202, %203 : vector<16x16xi1>, vector<16x16xf32>
    %205 = arith.addf %201, %204 : vector<16x16xf32>
    %c14_i32_92 = arith.constant 14 : i32
    %206 = tpu.dynamic_rotate %193 by %c14_i32_92 dim 1 : vector<16x16xf32>, i32 -> vector<16x16xf32>
    %cst_93 = arith.constant 0.000000e+00 : f32
    %207 = vector.broadcast %cst_93 : f32 to vector<16x16xf32>
    %208 = arith.select %23, %206, %207 : vector<16x16xi1>, vector<16x16xf32>
    %209 = arith.addf %205, %208 : vector<16x16xf32>
    %c1_i32_94 = arith.constant 1 : i32
    %210 = tpu.dynamic_rotate %209 by %c1_i32_94 dim 0 : vector<16x16xf32>, i32 -> vector<16x16xf32>
    %cst_95 = arith.constant 0.000000e+00 : f32
    %211 = vector.broadcast %cst_95 : f32 to vector<16x16xf32>
    %212 = arith.select %29, %210, %211 : vector<16x16xi1>, vector<16x16xf32>
    %213 = arith.addf %209, %212 : vector<16x16xf32>
    %c15_i32_96 = arith.constant 15 : i32
    %214 = tpu.dynamic_rotate %209 by %c15_i32_96 dim 0 : vector<16x16xf32>, i32 -> vector<16x16xf32>
    %cst_97 = arith.constant 0.000000e+00 : f32
    %215 = vector.broadcast %cst_97 : f32 to vector<16x16xf32>
    %216 = arith.select %34, %214, %215 : vector<16x16xi1>, vector<16x16xf32>
    %217 = arith.addf %213, %216 : vector<16x16xf32>
    %c2_i32_98 = arith.constant 2 : i32
    %218 = tpu.dynamic_rotate %209 by %c2_i32_98 dim 0 : vector<16x16xf32>, i32 -> vector<16x16xf32>
    %cst_99 = arith.constant 0.000000e+00 : f32
    %219 = vector.broadcast %cst_99 : f32 to vector<16x16xf32>
    %220 = arith.select %39, %218, %219 : vector<16x16xi1>, vector<16x16xf32>
    %221 = arith.addf %217, %220 : vector<16x16xf32>
    %c14_i32_100 = arith.constant 14 : i32
    %222 = tpu.dynamic_rotate %209 by %c14_i32_100 dim 0 : vector<16x16xf32>, i32 -> vector<16x16xf32>
    %cst_101 = arith.constant 0.000000e+00 : f32
    %223 = vector.broadcast %cst_101 : f32 to vector<16x16xf32>
    %224 = arith.select %44, %222, %223 : vector<16x16xi1>, vector<16x16xf32>
    %225 = arith.addf %221, %224 : vector<16x16xf32>
    %cst_102 = arith.constant 4.000000e-02 : f32
    %226 = vector.broadcast %cst_102 : f32 to vector<16x16xf32>
    %227 = arith.mulf %225, %226 : vector<16x16xf32>
    %228 = arith.addf %189, %227 : vector<16x16xf32>
    %229 = arith.mulf %227, %227 : vector<16x16xf32>
    %230 = arith.addf %191, %229 : vector<16x16xf32>
    %c0_103 = arith.constant 0 : index
    %c2 = arith.constant 2 : index
    %c0_104 = arith.constant 0 : index
    %c0_105 = arith.constant 0 : index
    %231 = vector.load %arg2[%c0_103, %c2, %c0_104, %c0_105] : memref<2x4x16x16xf32, #tpu.memory_space<vmem>>, vector<1x1x16x16xf32>
    %232 = vector.shape_cast %231 : vector<1x1x16x16xf32> to vector<16x16xf32>
    %c1_i32_106 = arith.constant 1 : i32
    %233 = tpu.dynamic_rotate %232 by %c1_i32_106 dim 1 : vector<16x16xf32>, i32 -> vector<16x16xf32>
    %cst_107 = arith.constant 0.000000e+00 : f32
    %234 = vector.broadcast %cst_107 : f32 to vector<16x16xf32>
    %235 = arith.select %8, %233, %234 : vector<16x16xi1>, vector<16x16xf32>
    %236 = arith.addf %232, %235 : vector<16x16xf32>
    %c15_i32_108 = arith.constant 15 : i32
    %237 = tpu.dynamic_rotate %232 by %c15_i32_108 dim 1 : vector<16x16xf32>, i32 -> vector<16x16xf32>
    %cst_109 = arith.constant 0.000000e+00 : f32
    %238 = vector.broadcast %cst_109 : f32 to vector<16x16xf32>
    %239 = arith.select %13, %237, %238 : vector<16x16xi1>, vector<16x16xf32>
    %240 = arith.addf %236, %239 : vector<16x16xf32>
    %c2_i32_110 = arith.constant 2 : i32
    %241 = tpu.dynamic_rotate %232 by %c2_i32_110 dim 1 : vector<16x16xf32>, i32 -> vector<16x16xf32>
    %cst_111 = arith.constant 0.000000e+00 : f32
    %242 = vector.broadcast %cst_111 : f32 to vector<16x16xf32>
    %243 = arith.select %18, %241, %242 : vector<16x16xi1>, vector<16x16xf32>
    %244 = arith.addf %240, %243 : vector<16x16xf32>
    %c14_i32_112 = arith.constant 14 : i32
    %245 = tpu.dynamic_rotate %232 by %c14_i32_112 dim 1 : vector<16x16xf32>, i32 -> vector<16x16xf32>
    %cst_113 = arith.constant 0.000000e+00 : f32
    %246 = vector.broadcast %cst_113 : f32 to vector<16x16xf32>
    %247 = arith.select %23, %245, %246 : vector<16x16xi1>, vector<16x16xf32>
    %248 = arith.addf %244, %247 : vector<16x16xf32>
    %c1_i32_114 = arith.constant 1 : i32
    %249 = tpu.dynamic_rotate %248 by %c1_i32_114 dim 0 : vector<16x16xf32>, i32 -> vector<16x16xf32>
    %cst_115 = arith.constant 0.000000e+00 : f32
    %250 = vector.broadcast %cst_115 : f32 to vector<16x16xf32>
    %251 = arith.select %29, %249, %250 : vector<16x16xi1>, vector<16x16xf32>
    %252 = arith.addf %248, %251 : vector<16x16xf32>
    %c15_i32_116 = arith.constant 15 : i32
    %253 = tpu.dynamic_rotate %248 by %c15_i32_116 dim 0 : vector<16x16xf32>, i32 -> vector<16x16xf32>
    %cst_117 = arith.constant 0.000000e+00 : f32
    %254 = vector.broadcast %cst_117 : f32 to vector<16x16xf32>
    %255 = arith.select %34, %253, %254 : vector<16x16xi1>, vector<16x16xf32>
    %256 = arith.addf %252, %255 : vector<16x16xf32>
    %c2_i32_118 = arith.constant 2 : i32
    %257 = tpu.dynamic_rotate %248 by %c2_i32_118 dim 0 : vector<16x16xf32>, i32 -> vector<16x16xf32>
    %cst_119 = arith.constant 0.000000e+00 : f32
    %258 = vector.broadcast %cst_119 : f32 to vector<16x16xf32>
    %259 = arith.select %39, %257, %258 : vector<16x16xi1>, vector<16x16xf32>
    %260 = arith.addf %256, %259 : vector<16x16xf32>
    %c14_i32_120 = arith.constant 14 : i32
    %261 = tpu.dynamic_rotate %248 by %c14_i32_120 dim 0 : vector<16x16xf32>, i32 -> vector<16x16xf32>
    %cst_121 = arith.constant 0.000000e+00 : f32
    %262 = vector.broadcast %cst_121 : f32 to vector<16x16xf32>
    %263 = arith.select %44, %261, %262 : vector<16x16xi1>, vector<16x16xf32>
    %264 = arith.addf %260, %263 : vector<16x16xf32>
    %cst_122 = arith.constant 4.000000e-02 : f32
    %265 = vector.broadcast %cst_122 : f32 to vector<16x16xf32>
    %266 = arith.mulf %264, %265 : vector<16x16xf32>
    %267 = arith.addf %228, %266 : vector<16x16xf32>
    %268 = arith.mulf %266, %266 : vector<16x16xf32>
    %269 = arith.addf %230, %268 : vector<16x16xf32>
    %c0_123 = arith.constant 0 : index
    %c3 = arith.constant 3 : index
    %c0_124 = arith.constant 0 : index
    %c0_125 = arith.constant 0 : index
    %270 = vector.load %arg2[%c0_123, %c3, %c0_124, %c0_125] : memref<2x4x16x16xf32, #tpu.memory_space<vmem>>, vector<1x1x16x16xf32>
    %271 = vector.shape_cast %270 : vector<1x1x16x16xf32> to vector<16x16xf32>
    %c1_i32_126 = arith.constant 1 : i32
    %272 = tpu.dynamic_rotate %271 by %c1_i32_126 dim 1 : vector<16x16xf32>, i32 -> vector<16x16xf32>
    %cst_127 = arith.constant 0.000000e+00 : f32
    %273 = vector.broadcast %cst_127 : f32 to vector<16x16xf32>
    %274 = arith.select %8, %272, %273 : vector<16x16xi1>, vector<16x16xf32>
    %275 = arith.addf %271, %274 : vector<16x16xf32>
    %c15_i32_128 = arith.constant 15 : i32
    %276 = tpu.dynamic_rotate %271 by %c15_i32_128 dim 1 : vector<16x16xf32>, i32 -> vector<16x16xf32>
    %cst_129 = arith.constant 0.000000e+00 : f32
    %277 = vector.broadcast %cst_129 : f32 to vector<16x16xf32>
    %278 = arith.select %13, %276, %277 : vector<16x16xi1>, vector<16x16xf32>
    %279 = arith.addf %275, %278 : vector<16x16xf32>
    %c2_i32_130 = arith.constant 2 : i32
    %280 = tpu.dynamic_rotate %271 by %c2_i32_130 dim 1 : vector<16x16xf32>, i32 -> vector<16x16xf32>
    %cst_131 = arith.constant 0.000000e+00 : f32
    %281 = vector.broadcast %cst_131 : f32 to vector<16x16xf32>
    %282 = arith.select %18, %280, %281 : vector<16x16xi1>, vector<16x16xf32>
    %283 = arith.addf %279, %282 : vector<16x16xf32>
    %c14_i32_132 = arith.constant 14 : i32
    %284 = tpu.dynamic_rotate %271 by %c14_i32_132 dim 1 : vector<16x16xf32>, i32 -> vector<16x16xf32>
    %cst_133 = arith.constant 0.000000e+00 : f32
    %285 = vector.broadcast %cst_133 : f32 to vector<16x16xf32>
    %286 = arith.select %23, %284, %285 : vector<16x16xi1>, vector<16x16xf32>
    %287 = arith.addf %283, %286 : vector<16x16xf32>
    %c1_i32_134 = arith.constant 1 : i32
    %288 = tpu.dynamic_rotate %287 by %c1_i32_134 dim 0 : vector<16x16xf32>, i32 -> vector<16x16xf32>
    %cst_135 = arith.constant 0.000000e+00 : f32
    %289 = vector.broadcast %cst_135 : f32 to vector<16x16xf32>
    %290 = arith.select %29, %288, %289 : vector<16x16xi1>, vector<16x16xf32>
    %291 = arith.addf %287, %290 : vector<16x16xf32>
    %c15_i32_136 = arith.constant 15 : i32
    %292 = tpu.dynamic_rotate %287 by %c15_i32_136 dim 0 : vector<16x16xf32>, i32 -> vector<16x16xf32>
    %cst_137 = arith.constant 0.000000e+00 : f32
    %293 = vector.broadcast %cst_137 : f32 to vector<16x16xf32>
    %294 = arith.select %34, %292, %293 : vector<16x16xi1>, vector<16x16xf32>
    %295 = arith.addf %291, %294 : vector<16x16xf32>
    %c2_i32_138 = arith.constant 2 : i32
    %296 = tpu.dynamic_rotate %287 by %c2_i32_138 dim 0 : vector<16x16xf32>, i32 -> vector<16x16xf32>
    %cst_139 = arith.constant 0.000000e+00 : f32
    %297 = vector.broadcast %cst_139 : f32 to vector<16x16xf32>
    %298 = arith.select %39, %296, %297 : vector<16x16xi1>, vector<16x16xf32>
    %299 = arith.addf %295, %298 : vector<16x16xf32>
    %c14_i32_140 = arith.constant 14 : i32
    %300 = tpu.dynamic_rotate %287 by %c14_i32_140 dim 0 : vector<16x16xf32>, i32 -> vector<16x16xf32>
    %cst_141 = arith.constant 0.000000e+00 : f32
    %301 = vector.broadcast %cst_141 : f32 to vector<16x16xf32>
    %302 = arith.select %44, %300, %301 : vector<16x16xi1>, vector<16x16xf32>
    %303 = arith.addf %299, %302 : vector<16x16xf32>
    %cst_142 = arith.constant 4.000000e-02 : f32
    %304 = vector.broadcast %cst_142 : f32 to vector<16x16xf32>
    %305 = arith.mulf %303, %304 : vector<16x16xf32>
    %306 = arith.addf %267, %305 : vector<16x16xf32>
    %307 = arith.mulf %305, %305 : vector<16x16xf32>
    %308 = arith.addf %269, %307 : vector<16x16xf32>
    %309 = math.sqrt %308 : vector<16x16xf32>
    %cst_143 = arith.constant 9.99999993E-9 : f32
    %310 = vector.broadcast %cst_143 : f32 to vector<16x16xf32>
    %311 = arith.maximumf %309, %310 : vector<16x16xf32>
    %312 = math.absf %150 : vector<16x16xf32>
    %cst_144 = arith.constant 2.000000e+00 : f32
    %313 = vector.broadcast %cst_144 : f32 to vector<16x16xf32>
    %314 = arith.mulf %313, %312 : vector<16x16xf32>
    %cst_145 = arith.constant 9.99999993E-9 : f32
    %315 = vector.broadcast %cst_145 : f32 to vector<16x16xf32>
    %316 = arith.maximumf %314, %315 : vector<16x16xf32>
    %317 = arith.mulf %306, %150 : vector<16x16xf32>
    %318 = arith.mulf %311, %316 : vector<16x16xf32>
    %319 = arith.divf %317, %318 : vector<16x16xf32>
    %cst_146 = arith.constant 1.000000e+00 : f32
    %320 = vector.broadcast %cst_146 : f32 to vector<16x16xf32>
    %321 = arith.subf %320, %319 : vector<16x16xf32>
    %322 = math.absf %305 : vector<16x16xf32>
    %c0_147 = arith.constant 0 : index
    %c0_148 = arith.constant 0 : index
    %323 = vector.load %arg3[%c0_147, %c0_148] : memref<16x16xf32, #tpu.memory_space<vmem>>, vector<16x16xf32>
    %324 = arith.mulf %322, %116 : vector<16x16xf32>
    %325 = arith.addf %323, %324 : vector<16x16xf32>
    %c0_149 = arith.constant 0 : index
    %c0_150 = arith.constant 0 : index
    %326 = vector.load %arg3[%c0_149, %c0_150] : memref<16x16xf32, #tpu.memory_space<vmem>>, vector<16x16xf32>
    tpu.vector_store %arg3[%c0_149, %c0_150], %325 {strides = array<i32>} : memref<16x16xf32, #tpu.memory_space<vmem>>, vector<16x16xf32>,
    %c0_151 = arith.constant 0 : index
    %c0_152 = arith.constant 0 : index
    %327 = vector.load %arg4[%c0_151, %c0_152] : memref<16x16xf32, #tpu.memory_space<vmem>>, vector<16x16xf32>
    %328 = arith.addf %327, %321 : vector<16x16xf32>
    %c0_153 = arith.constant 0 : index
    %c0_154 = arith.constant 0 : index
    %329 = vector.load %arg4[%c0_153, %c0_154] : memref<16x16xf32, #tpu.memory_space<vmem>>, vector<16x16xf32>
    tpu.vector_store %arg4[%c0_153, %c0_154], %328 {strides = array<i32>} : memref<16x16xf32, #tpu.memory_space<vmem>>, vector<16x16xf32>,
    %c0_155 = arith.constant 0 : index
    %c0_156 = arith.constant 0 : index
    %330 = vector.load %arg5[%c0_155, %c0_156] : memref<16x16xf32, #tpu.memory_space<vmem>>, vector<16x16xf32>
    %331 = arith.addf %330, %116 : vector<16x16xf32>
    %c0_157 = arith.constant 0 : index
    %c0_158 = arith.constant 0 : index
    %332 = vector.load %arg5[%c0_157, %c0_158] : memref<16x16xf32, #tpu.memory_space<vmem>>, vector<16x16xf32>
    tpu.vector_store %arg5[%c0_157, %c0_158], %331 {strides = array<i32>} : memref<16x16xf32, #tpu.memory_space<vmem>>, vector<16x16xf32>,
    %c1_159 = arith.constant 1 : index
    %c0_160 = arith.constant 0 : index
    %c0_161 = arith.constant 0 : index
    %c0_162 = arith.constant 0 : index
    %333 = vector.load %arg1[%c1_159, %c0_160, %c0_161, %c0_162] : memref<2x1x16x16xf32, #tpu.memory_space<vmem>>, vector<1x1x16x16xf32>
    %334 = vector.shape_cast %333 : vector<1x1x16x16xf32> to vector<16x16xf32>
    %cst_163 = arith.constant 5.000000e-01 : f32
    %335 = vector.broadcast %cst_163 : f32 to vector<16x16xf32>
    %336 = arith.cmpf ogt, %334, %335 : vector<16x16xf32>
    %337 = arith.extui %336 : vector<16x16xi1> to vector<16x16xi32>
    %338 = arith.sitofp %337 : vector<16x16xi32> to vector<16x16xf32>
    %c1_i32_164 = arith.constant 1 : i32
    %339 = tpu.dynamic_rotate %338 by %c1_i32_164 dim 1 : vector<16x16xf32>, i32 -> vector<16x16xf32>
    %cst_165 = arith.constant 0.000000e+00 : f32
    %340 = vector.broadcast %cst_165 : f32 to vector<16x16xf32>
    %341 = arith.select %8, %339, %340 : vector<16x16xi1>, vector<16x16xf32>
    %342 = arith.addf %338, %341 : vector<16x16xf32>
    %c15_i32_166 = arith.constant 15 : i32
    %343 = tpu.dynamic_rotate %338 by %c15_i32_166 dim 1 : vector<16x16xf32>, i32 -> vector<16x16xf32>
    %cst_167 = arith.constant 0.000000e+00 : f32
    %344 = vector.broadcast %cst_167 : f32 to vector<16x16xf32>
    %345 = arith.select %13, %343, %344 : vector<16x16xi1>, vector<16x16xf32>
    %346 = arith.addf %342, %345 : vector<16x16xf32>
    %c2_i32_168 = arith.constant 2 : i32
    %347 = tpu.dynamic_rotate %338 by %c2_i32_168 dim 1 : vector<16x16xf32>, i32 -> vector<16x16xf32>
    %cst_169 = arith.constant 0.000000e+00 : f32
    %348 = vector.broadcast %cst_169 : f32 to vector<16x16xf32>
    %349 = arith.select %18, %347, %348 : vector<16x16xi1>, vector<16x16xf32>
    %350 = arith.addf %346, %349 : vector<16x16xf32>
    %c14_i32_170 = arith.constant 14 : i32
    %351 = tpu.dynamic_rotate %338 by %c14_i32_170 dim 1 : vector<16x16xf32>, i32 -> vector<16x16xf32>
    %cst_171 = arith.constant 0.000000e+00 : f32
    %352 = vector.broadcast %cst_171 : f32 to vector<16x16xf32>
    %353 = arith.select %23, %351, %352 : vector<16x16xi1>, vector<16x16xf32>
    %354 = arith.addf %350, %353 : vector<16x16xf32>
    %c1_i32_172 = arith.constant 1 : i32
    %355 = tpu.dynamic_rotate %354 by %c1_i32_172 dim 0 : vector<16x16xf32>, i32 -> vector<16x16xf32>
    %cst_173 = arith.constant 0.000000e+00 : f32
    %356 = vector.broadcast %cst_173 : f32 to vector<16x16xf32>
    %357 = arith.select %29, %355, %356 : vector<16x16xi1>, vector<16x16xf32>
    %358 = arith.addf %354, %357 : vector<16x16xf32>
    %c15_i32_174 = arith.constant 15 : i32
    %359 = tpu.dynamic_rotate %354 by %c15_i32_174 dim 0 : vector<16x16xf32>, i32 -> vector<16x16xf32>
    %cst_175 = arith.constant 0.000000e+00 : f32
    %360 = vector.broadcast %cst_175 : f32 to vector<16x16xf32>
    %361 = arith.select %34, %359, %360 : vector<16x16xi1>, vector<16x16xf32>
    %362 = arith.addf %358, %361 : vector<16x16xf32>
    %c2_i32_176 = arith.constant 2 : i32
    %363 = tpu.dynamic_rotate %354 by %c2_i32_176 dim 0 : vector<16x16xf32>, i32 -> vector<16x16xf32>
    %cst_177 = arith.constant 0.000000e+00 : f32
    %364 = vector.broadcast %cst_177 : f32 to vector<16x16xf32>
    %365 = arith.select %39, %363, %364 : vector<16x16xi1>, vector<16x16xf32>
    %366 = arith.addf %362, %365 : vector<16x16xf32>
    %c14_i32_178 = arith.constant 14 : i32
    %367 = tpu.dynamic_rotate %354 by %c14_i32_178 dim 0 : vector<16x16xf32>, i32 -> vector<16x16xf32>
    %cst_179 = arith.constant 0.000000e+00 : f32
    %368 = vector.broadcast %cst_179 : f32 to vector<16x16xf32>
    %369 = arith.select %44, %367, %368 : vector<16x16xi1>, vector<16x16xf32>
    %370 = arith.addf %366, %369 : vector<16x16xf32>
    %cst_180 = arith.constant 0.000000e+00 : f32
    %371 = vector.broadcast %cst_180 : f32 to vector<16x16xf32>
    %372 = arith.cmpf ogt, %370, %371 : vector<16x16xf32>
    %373 = arith.extui %372 : vector<16x16xi1> to vector<16x16xi32>
    %374 = arith.sitofp %373 : vector<16x16xi32> to vector<16x16xf32>
    %cst_181 = arith.constant 5.000000e-01 : f32
    %375 = vector.broadcast %cst_181 : f32 to vector<16x16xf32>
    %376 = arith.subf %66, %375 : vector<16x16xf32>
    %377 = arith.cmpf oge, %370, %376 : vector<16x16xf32>
    %378 = arith.extui %377 : vector<16x16xi1> to vector<16x16xi32>
    %379 = arith.sitofp %378 : vector<16x16xi32> to vector<16x16xf32>
    %380 = arith.subf %374, %379 : vector<16x16xf32>
    %cst_182 = arith.constant 1.000000e-10 : f32
    %381 = vector.broadcast %cst_182 : f32 to vector<16x16xf32>
    %382 = arith.addf %380, %381 : vector<16x16xf32>
    %c1_i32_183 = arith.constant 1 : i32
    %383 = tpu.dynamic_rotate %334 by %c1_i32_183 dim 1 : vector<16x16xf32>, i32 -> vector<16x16xf32>
    %cst_184 = arith.constant 0.000000e+00 : f32
    %384 = vector.broadcast %cst_184 : f32 to vector<16x16xf32>
    %385 = arith.select %8, %383, %384 : vector<16x16xi1>, vector<16x16xf32>
    %386 = arith.addf %334, %385 : vector<16x16xf32>
    %c15_i32_185 = arith.constant 15 : i32
    %387 = tpu.dynamic_rotate %334 by %c15_i32_185 dim 1 : vector<16x16xf32>, i32 -> vector<16x16xf32>
    %cst_186 = arith.constant 0.000000e+00 : f32
    %388 = vector.broadcast %cst_186 : f32 to vector<16x16xf32>
    %389 = arith.select %13, %387, %388 : vector<16x16xi1>, vector<16x16xf32>
    %390 = arith.addf %386, %389 : vector<16x16xf32>
    %c2_i32_187 = arith.constant 2 : i32
    %391 = tpu.dynamic_rotate %334 by %c2_i32_187 dim 1 : vector<16x16xf32>, i32 -> vector<16x16xf32>
    %cst_188 = arith.constant 0.000000e+00 : f32
    %392 = vector.broadcast %cst_188 : f32 to vector<16x16xf32>
    %393 = arith.select %18, %391, %392 : vector<16x16xi1>, vector<16x16xf32>
    %394 = arith.addf %390, %393 : vector<16x16xf32>
    %c14_i32_189 = arith.constant 14 : i32
    %395 = tpu.dynamic_rotate %334 by %c14_i32_189 dim 1 : vector<16x16xf32>, i32 -> vector<16x16xf32>
    %cst_190 = arith.constant 0.000000e+00 : f32
    %396 = vector.broadcast %cst_190 : f32 to vector<16x16xf32>
    %397 = arith.select %23, %395, %396 : vector<16x16xi1>, vector<16x16xf32>
    %398 = arith.addf %394, %397 : vector<16x16xf32>
    %c1_i32_191 = arith.constant 1 : i32
    %399 = tpu.dynamic_rotate %398 by %c1_i32_191 dim 0 : vector<16x16xf32>, i32 -> vector<16x16xf32>
    %cst_192 = arith.constant 0.000000e+00 : f32
    %400 = vector.broadcast %cst_192 : f32 to vector<16x16xf32>
    %401 = arith.select %29, %399, %400 : vector<16x16xi1>, vector<16x16xf32>
    %402 = arith.addf %398, %401 : vector<16x16xf32>
    %c15_i32_193 = arith.constant 15 : i32
    %403 = tpu.dynamic_rotate %398 by %c15_i32_193 dim 0 : vector<16x16xf32>, i32 -> vector<16x16xf32>
    %cst_194 = arith.constant 0.000000e+00 : f32
    %404 = vector.broadcast %cst_194 : f32 to vector<16x16xf32>
    %405 = arith.select %34, %403, %404 : vector<16x16xi1>, vector<16x16xf32>
    %406 = arith.addf %402, %405 : vector<16x16xf32>
    %c2_i32_195 = arith.constant 2 : i32
    %407 = tpu.dynamic_rotate %398 by %c2_i32_195 dim 0 : vector<16x16xf32>, i32 -> vector<16x16xf32>
    %cst_196 = arith.constant 0.000000e+00 : f32
    %408 = vector.broadcast %cst_196 : f32 to vector<16x16xf32>
    %409 = arith.select %39, %407, %408 : vector<16x16xi1>, vector<16x16xf32>
    %410 = arith.addf %406, %409 : vector<16x16xf32>
    %c14_i32_197 = arith.constant 14 : i32
    %411 = tpu.dynamic_rotate %398 by %c14_i32_197 dim 0 : vector<16x16xf32>, i32 -> vector<16x16xf32>
    %cst_198 = arith.constant 0.000000e+00 : f32
    %412 = vector.broadcast %cst_198 : f32 to vector<16x16xf32>
    %413 = arith.select %44, %411, %412 : vector<16x16xi1>, vector<16x16xf32>
    %414 = arith.addf %410, %413 : vector<16x16xf32>
    %cst_199 = arith.constant 4.000000e-02 : f32
    %415 = vector.broadcast %cst_199 : f32 to vector<16x16xf32>
    %416 = arith.mulf %414, %415 : vector<16x16xf32>
    %cst_200 = arith.constant 0.000000e+00 : f32
    %417 = vector.broadcast %cst_200 : f32 to vector<16x16xf32>
    %cst_201 = arith.constant 0.000000e+00 : f32
    %418 = vector.broadcast %cst_201 : f32 to vector<16x16xf32>
    %c1_202 = arith.constant 1 : index
    %c0_203 = arith.constant 0 : index
    %c0_204 = arith.constant 0 : index
    %c0_205 = arith.constant 0 : index
    %419 = vector.load %arg2[%c1_202, %c0_203, %c0_204, %c0_205] : memref<2x4x16x16xf32, #tpu.memory_space<vmem>>, vector<1x1x16x16xf32>
    %420 = vector.shape_cast %419 : vector<1x1x16x16xf32> to vector<16x16xf32>
    %c1_i32_206 = arith.constant 1 : i32
    %421 = tpu.dynamic_rotate %420 by %c1_i32_206 dim 1 : vector<16x16xf32>, i32 -> vector<16x16xf32>
    %cst_207 = arith.constant 0.000000e+00 : f32
    %422 = vector.broadcast %cst_207 : f32 to vector<16x16xf32>
    %423 = arith.select %8, %421, %422 : vector<16x16xi1>, vector<16x16xf32>
    %424 = arith.addf %420, %423 : vector<16x16xf32>
    %c15_i32_208 = arith.constant 15 : i32
    %425 = tpu.dynamic_rotate %420 by %c15_i32_208 dim 1 : vector<16x16xf32>, i32 -> vector<16x16xf32>
    %cst_209 = arith.constant 0.000000e+00 : f32
    %426 = vector.broadcast %cst_209 : f32 to vector<16x16xf32>
    %427 = arith.select %13, %425, %426 : vector<16x16xi1>, vector<16x16xf32>
    %428 = arith.addf %424, %427 : vector<16x16xf32>
    %c2_i32_210 = arith.constant 2 : i32
    %429 = tpu.dynamic_rotate %420 by %c2_i32_210 dim 1 : vector<16x16xf32>, i32 -> vector<16x16xf32>
    %cst_211 = arith.constant 0.000000e+00 : f32
    %430 = vector.broadcast %cst_211 : f32 to vector<16x16xf32>
    %431 = arith.select %18, %429, %430 : vector<16x16xi1>, vector<16x16xf32>
    %432 = arith.addf %428, %431 : vector<16x16xf32>
    %c14_i32_212 = arith.constant 14 : i32
    %433 = tpu.dynamic_rotate %420 by %c14_i32_212 dim 1 : vector<16x16xf32>, i32 -> vector<16x16xf32>
    %cst_213 = arith.constant 0.000000e+00 : f32
    %434 = vector.broadcast %cst_213 : f32 to vector<16x16xf32>
    %435 = arith.select %23, %433, %434 : vector<16x16xi1>, vector<16x16xf32>
    %436 = arith.addf %432, %435 : vector<16x16xf32>
    %c1_i32_214 = arith.constant 1 : i32
    %437 = tpu.dynamic_rotate %436 by %c1_i32_214 dim 0 : vector<16x16xf32>, i32 -> vector<16x16xf32>
    %cst_215 = arith.constant 0.000000e+00 : f32
    %438 = vector.broadcast %cst_215 : f32 to vector<16x16xf32>
    %439 = arith.select %29, %437, %438 : vector<16x16xi1>, vector<16x16xf32>
    %440 = arith.addf %436, %439 : vector<16x16xf32>
    %c15_i32_216 = arith.constant 15 : i32
    %441 = tpu.dynamic_rotate %436 by %c15_i32_216 dim 0 : vector<16x16xf32>, i32 -> vector<16x16xf32>
    %cst_217 = arith.constant 0.000000e+00 : f32
    %442 = vector.broadcast %cst_217 : f32 to vector<16x16xf32>
    %443 = arith.select %34, %441, %442 : vector<16x16xi1>, vector<16x16xf32>
    %444 = arith.addf %440, %443 : vector<16x16xf32>
    %c2_i32_218 = arith.constant 2 : i32
    %445 = tpu.dynamic_rotate %436 by %c2_i32_218 dim 0 : vector<16x16xf32>, i32 -> vector<16x16xf32>
    %cst_219 = arith.constant 0.000000e+00 : f32
    %446 = vector.broadcast %cst_219 : f32 to vector<16x16xf32>
    %447 = arith.select %39, %445, %446 : vector<16x16xi1>, vector<16x16xf32>
    %448 = arith.addf %444, %447 : vector<16x16xf32>
    %c14_i32_220 = arith.constant 14 : i32
    %449 = tpu.dynamic_rotate %436 by %c14_i32_220 dim 0 : vector<16x16xf32>, i32 -> vector<16x16xf32>
    %cst_221 = arith.constant 0.000000e+00 : f32
    %450 = vector.broadcast %cst_221 : f32 to vector<16x16xf32>
    %451 = arith.select %44, %449, %450 : vector<16x16xi1>, vector<16x16xf32>
    %452 = arith.addf %448, %451 : vector<16x16xf32>
    %cst_222 = arith.constant 4.000000e-02 : f32
    %453 = vector.broadcast %cst_222 : f32 to vector<16x16xf32>
    %454 = arith.mulf %452, %453 : vector<16x16xf32>
    %455 = arith.addf %417, %454 : vector<16x16xf32>
    %456 = arith.mulf %454, %454 : vector<16x16xf32>
    %457 = arith.addf %418, %456 : vector<16x16xf32>
    %c1_223 = arith.constant 1 : index
    %c1_224 = arith.constant 1 : index
    %c0_225 = arith.constant 0 : index
    %c0_226 = arith.constant 0 : index
    %458 = vector.load %arg2[%c1_223, %c1_224, %c0_225, %c0_226] : memref<2x4x16x16xf32, #tpu.memory_space<vmem>>, vector<1x1x16x16xf32>
    %459 = vector.shape_cast %458 : vector<1x1x16x16xf32> to vector<16x16xf32>
    %c1_i32_227 = arith.constant 1 : i32
    %460 = tpu.dynamic_rotate %459 by %c1_i32_227 dim 1 : vector<16x16xf32>, i32 -> vector<16x16xf32>
    %cst_228 = arith.constant 0.000000e+00 : f32
    %461 = vector.broadcast %cst_228 : f32 to vector<16x16xf32>
    %462 = arith.select %8, %460, %461 : vector<16x16xi1>, vector<16x16xf32>
    %463 = arith.addf %459, %462 : vector<16x16xf32>
    %c15_i32_229 = arith.constant 15 : i32
    %464 = tpu.dynamic_rotate %459 by %c15_i32_229 dim 1 : vector<16x16xf32>, i32 -> vector<16x16xf32>
    %cst_230 = arith.constant 0.000000e+00 : f32
    %465 = vector.broadcast %cst_230 : f32 to vector<16x16xf32>
    %466 = arith.select %13, %464, %465 : vector<16x16xi1>, vector<16x16xf32>
    %467 = arith.addf %463, %466 : vector<16x16xf32>
    %c2_i32_231 = arith.constant 2 : i32
    %468 = tpu.dynamic_rotate %459 by %c2_i32_231 dim 1 : vector<16x16xf32>, i32 -> vector<16x16xf32>
    %cst_232 = arith.constant 0.000000e+00 : f32
    %469 = vector.broadcast %cst_232 : f32 to vector<16x16xf32>
    %470 = arith.select %18, %468, %469 : vector<16x16xi1>, vector<16x16xf32>
    %471 = arith.addf %467, %470 : vector<16x16xf32>
    %c14_i32_233 = arith.constant 14 : i32
    %472 = tpu.dynamic_rotate %459 by %c14_i32_233 dim 1 : vector<16x16xf32>, i32 -> vector<16x16xf32>
    %cst_234 = arith.constant 0.000000e+00 : f32
    %473 = vector.broadcast %cst_234 : f32 to vector<16x16xf32>
    %474 = arith.select %23, %472, %473 : vector<16x16xi1>, vector<16x16xf32>
    %475 = arith.addf %471, %474 : vector<16x16xf32>
    %c1_i32_235 = arith.constant 1 : i32
    %476 = tpu.dynamic_rotate %475 by %c1_i32_235 dim 0 : vector<16x16xf32>, i32 -> vector<16x16xf32>
    %cst_236 = arith.constant 0.000000e+00 : f32
    %477 = vector.broadcast %cst_236 : f32 to vector<16x16xf32>
    %478 = arith.select %29, %476, %477 : vector<16x16xi1>, vector<16x16xf32>
    %479 = arith.addf %475, %478 : vector<16x16xf32>
    %c15_i32_237 = arith.constant 15 : i32
    %480 = tpu.dynamic_rotate %475 by %c15_i32_237 dim 0 : vector<16x16xf32>, i32 -> vector<16x16xf32>
    %cst_238 = arith.constant 0.000000e+00 : f32
    %481 = vector.broadcast %cst_238 : f32 to vector<16x16xf32>
    %482 = arith.select %34, %480, %481 : vector<16x16xi1>, vector<16x16xf32>
    %483 = arith.addf %479, %482 : vector<16x16xf32>
    %c2_i32_239 = arith.constant 2 : i32
    %484 = tpu.dynamic_rotate %475 by %c2_i32_239 dim 0 : vector<16x16xf32>, i32 -> vector<16x16xf32>
    %cst_240 = arith.constant 0.000000e+00 : f32
    %485 = vector.broadcast %cst_240 : f32 to vector<16x16xf32>
    %486 = arith.select %39, %484, %485 : vector<16x16xi1>, vector<16x16xf32>
    %487 = arith.addf %483, %486 : vector<16x16xf32>
    %c14_i32_241 = arith.constant 14 : i32
    %488 = tpu.dynamic_rotate %475 by %c14_i32_241 dim 0 : vector<16x16xf32>, i32 -> vector<16x16xf32>
    %cst_242 = arith.constant 0.000000e+00 : f32
    %489 = vector.broadcast %cst_242 : f32 to vector<16x16xf32>
    %490 = arith.select %44, %488, %489 : vector<16x16xi1>, vector<16x16xf32>
    %491 = arith.addf %487, %490 : vector<16x16xf32>
    %cst_243 = arith.constant 4.000000e-02 : f32
    %492 = vector.broadcast %cst_243 : f32 to vector<16x16xf32>
    %493 = arith.mulf %491, %492 : vector<16x16xf32>
    %494 = arith.addf %455, %493 : vector<16x16xf32>
    %495 = arith.mulf %493, %493 : vector<16x16xf32>
    %496 = arith.addf %457, %495 : vector<16x16xf32>
    %c1_244 = arith.constant 1 : index
    %c2_245 = arith.constant 2 : index
    %c0_246 = arith.constant 0 : index
    %c0_247 = arith.constant 0 : index
    %497 = vector.load %arg2[%c1_244, %c2_245, %c0_246, %c0_247] : memref<2x4x16x16xf32, #tpu.memory_space<vmem>>, vector<1x1x16x16xf32>
    %498 = vector.shape_cast %497 : vector<1x1x16x16xf32> to vector<16x16xf32>
    %c1_i32_248 = arith.constant 1 : i32
    %499 = tpu.dynamic_rotate %498 by %c1_i32_248 dim 1 : vector<16x16xf32>, i32 -> vector<16x16xf32>
    %cst_249 = arith.constant 0.000000e+00 : f32
    %500 = vector.broadcast %cst_249 : f32 to vector<16x16xf32>
    %501 = arith.select %8, %499, %500 : vector<16x16xi1>, vector<16x16xf32>
    %502 = arith.addf %498, %501 : vector<16x16xf32>
    %c15_i32_250 = arith.constant 15 : i32
    %503 = tpu.dynamic_rotate %498 by %c15_i32_250 dim 1 : vector<16x16xf32>, i32 -> vector<16x16xf32>
    %cst_251 = arith.constant 0.000000e+00 : f32
    %504 = vector.broadcast %cst_251 : f32 to vector<16x16xf32>
    %505 = arith.select %13, %503, %504 : vector<16x16xi1>, vector<16x16xf32>
    %506 = arith.addf %502, %505 : vector<16x16xf32>
    %c2_i32_252 = arith.constant 2 : i32
    %507 = tpu.dynamic_rotate %498 by %c2_i32_252 dim 1 : vector<16x16xf32>, i32 -> vector<16x16xf32>
    %cst_253 = arith.constant 0.000000e+00 : f32
    %508 = vector.broadcast %cst_253 : f32 to vector<16x16xf32>
    %509 = arith.select %18, %507, %508 : vector<16x16xi1>, vector<16x16xf32>
    %510 = arith.addf %506, %509 : vector<16x16xf32>
    %c14_i32_254 = arith.constant 14 : i32
    %511 = tpu.dynamic_rotate %498 by %c14_i32_254 dim 1 : vector<16x16xf32>, i32 -> vector<16x16xf32>
    %cst_255 = arith.constant 0.000000e+00 : f32
    %512 = vector.broadcast %cst_255 : f32 to vector<16x16xf32>
    %513 = arith.select %23, %511, %512 : vector<16x16xi1>, vector<16x16xf32>
    %514 = arith.addf %510, %513 : vector<16x16xf32>
    %c1_i32_256 = arith.constant 1 : i32
    %515 = tpu.dynamic_rotate %514 by %c1_i32_256 dim 0 : vector<16x16xf32>, i32 -> vector<16x16xf32>
    %cst_257 = arith.constant 0.000000e+00 : f32
    %516 = vector.broadcast %cst_257 : f32 to vector<16x16xf32>
    %517 = arith.select %29, %515, %516 : vector<16x16xi1>, vector<16x16xf32>
    %518 = arith.addf %514, %517 : vector<16x16xf32>
    %c15_i32_258 = arith.constant 15 : i32
    %519 = tpu.dynamic_rotate %514 by %c15_i32_258 dim 0 : vector<16x16xf32>, i32 -> vector<16x16xf32>
    %cst_259 = arith.constant 0.000000e+00 : f32
    %520 = vector.broadcast %cst_259 : f32 to vector<16x16xf32>
    %521 = arith.select %34, %519, %520 : vector<16x16xi1>, vector<16x16xf32>
    %522 = arith.addf %518, %521 : vector<16x16xf32>
    %c2_i32_260 = arith.constant 2 : i32
    %523 = tpu.dynamic_rotate %514 by %c2_i32_260 dim 0 : vector<16x16xf32>, i32 -> vector<16x16xf32>
    %cst_261 = arith.constant 0.000000e+00 : f32
    %524 = vector.broadcast %cst_261 : f32 to vector<16x16xf32>
    %525 = arith.select %39, %523, %524 : vector<16x16xi1>, vector<16x16xf32>
    %526 = arith.addf %522, %525 : vector<16x16xf32>
    %c14_i32_262 = arith.constant 14 : i32
    %527 = tpu.dynamic_rotate %514 by %c14_i32_262 dim 0 : vector<16x16xf32>, i32 -> vector<16x16xf32>
    %cst_263 = arith.constant 0.000000e+00 : f32
    %528 = vector.broadcast %cst_263 : f32 to vector<16x16xf32>
    %529 = arith.select %44, %527, %528 : vector<16x16xi1>, vector<16x16xf32>
    %530 = arith.addf %526, %529 : vector<16x16xf32>
    %cst_264 = arith.constant 4.000000e-02 : f32
    %531 = vector.broadcast %cst_264 : f32 to vector<16x16xf32>
    %532 = arith.mulf %530, %531 : vector<16x16xf32>
    %533 = arith.addf %494, %532 : vector<16x16xf32>
    %534 = arith.mulf %532, %532 : vector<16x16xf32>
    %535 = arith.addf %496, %534 : vector<16x16xf32>
    %c1_265 = arith.constant 1 : index
    %c3_266 = arith.constant 3 : index
    %c0_267 = arith.constant 0 : index
    %c0_268 = arith.constant 0 : index
    %536 = vector.load %arg2[%c1_265, %c3_266, %c0_267, %c0_268] : memref<2x4x16x16xf32, #tpu.memory_space<vmem>>, vector<1x1x16x16xf32>
    %537 = vector.shape_cast %536 : vector<1x1x16x16xf32> to vector<16x16xf32>
    %c1_i32_269 = arith.constant 1 : i32
    %538 = tpu.dynamic_rotate %537 by %c1_i32_269 dim 1 : vector<16x16xf32>, i32 -> vector<16x16xf32>
    %cst_270 = arith.constant 0.000000e+00 : f32
    %539 = vector.broadcast %cst_270 : f32 to vector<16x16xf32>
    %540 = arith.select %8, %538, %539 : vector<16x16xi1>, vector<16x16xf32>
    %541 = arith.addf %537, %540 : vector<16x16xf32>
    %c15_i32_271 = arith.constant 15 : i32
    %542 = tpu.dynamic_rotate %537 by %c15_i32_271 dim 1 : vector<16x16xf32>, i32 -> vector<16x16xf32>
    %cst_272 = arith.constant 0.000000e+00 : f32
    %543 = vector.broadcast %cst_272 : f32 to vector<16x16xf32>
    %544 = arith.select %13, %542, %543 : vector<16x16xi1>, vector<16x16xf32>
    %545 = arith.addf %541, %544 : vector<16x16xf32>
    %c2_i32_273 = arith.constant 2 : i32
    %546 = tpu.dynamic_rotate %537 by %c2_i32_273 dim 1 : vector<16x16xf32>, i32 -> vector<16x16xf32>
    %cst_274 = arith.constant 0.000000e+00 : f32
    %547 = vector.broadcast %cst_274 : f32 to vector<16x16xf32>
    %548 = arith.select %18, %546, %547 : vector<16x16xi1>, vector<16x16xf32>
    %549 = arith.addf %545, %548 : vector<16x16xf32>
    %c14_i32_275 = arith.constant 14 : i32
    %550 = tpu.dynamic_rotate %537 by %c14_i32_275 dim 1 : vector<16x16xf32>, i32 -> vector<16x16xf32>
    %cst_276 = arith.constant 0.000000e+00 : f32
    %551 = vector.broadcast %cst_276 : f32 to vector<16x16xf32>
    %552 = arith.select %23, %550, %551 : vector<16x16xi1>, vector<16x16xf32>
    %553 = arith.addf %549, %552 : vector<16x16xf32>
    %c1_i32_277 = arith.constant 1 : i32
    %554 = tpu.dynamic_rotate %553 by %c1_i32_277 dim 0 : vector<16x16xf32>, i32 -> vector<16x16xf32>
    %cst_278 = arith.constant 0.000000e+00 : f32
    %555 = vector.broadcast %cst_278 : f32 to vector<16x16xf32>
    %556 = arith.select %29, %554, %555 : vector<16x16xi1>, vector<16x16xf32>
    %557 = arith.addf %553, %556 : vector<16x16xf32>
    %c15_i32_279 = arith.constant 15 : i32
    %558 = tpu.dynamic_rotate %553 by %c15_i32_279 dim 0 : vector<16x16xf32>, i32 -> vector<16x16xf32>
    %cst_280 = arith.constant 0.000000e+00 : f32
    %559 = vector.broadcast %cst_280 : f32 to vector<16x16xf32>
    %560 = arith.select %34, %558, %559 : vector<16x16xi1>, vector<16x16xf32>
    %561 = arith.addf %557, %560 : vector<16x16xf32>
    %c2_i32_281 = arith.constant 2 : i32
    %562 = tpu.dynamic_rotate %553 by %c2_i32_281 dim 0 : vector<16x16xf32>, i32 -> vector<16x16xf32>
    %cst_282 = arith.constant 0.000000e+00 : f32
    %563 = vector.broadcast %cst_282 : f32 to vector<16x16xf32>
    %564 = arith.select %39, %562, %563 : vector<16x16xi1>, vector<16x16xf32>
    %565 = arith.addf %561, %564 : vector<16x16xf32>
    %c14_i32_283 = arith.constant 14 : i32
    %566 = tpu.dynamic_rotate %553 by %c14_i32_283 dim 0 : vector<16x16xf32>, i32 -> vector<16x16xf32>
    %cst_284 = arith.constant 0.000000e+00 : f32
    %567 = vector.broadcast %cst_284 : f32 to vector<16x16xf32>
    %568 = arith.select %44, %566, %567 : vector<16x16xi1>, vector<16x16xf32>
    %569 = arith.addf %565, %568 : vector<16x16xf32>
    %cst_285 = arith.constant 4.000000e-02 : f32
    %570 = vector.broadcast %cst_285 : f32 to vector<16x16xf32>
    %571 = arith.mulf %569, %570 : vector<16x16xf32>
    %572 = arith.addf %533, %571 : vector<16x16xf32>
    %573 = arith.mulf %571, %571 : vector<16x16xf32>
    %574 = arith.addf %535, %573 : vector<16x16xf32>
    %575 = math.sqrt %574 : vector<16x16xf32>
    %cst_286 = arith.constant 9.99999993E-9 : f32
    %576 = vector.broadcast %cst_286 : f32 to vector<16x16xf32>
    %577 = arith.maximumf %575, %576 : vector<16x16xf32>
    %578 = math.absf %416 : vector<16x16xf32>
    %cst_287 = arith.constant 2.000000e+00 : f32
    %579 = vector.broadcast %cst_287 : f32 to vector<16x16xf32>
    %580 = arith.mulf %579, %578 : vector<16x16xf32>
    %cst_288 = arith.constant 9.99999993E-9 : f32
    %581 = vector.broadcast %cst_288 : f32 to vector<16x16xf32>
    %582 = arith.maximumf %580, %581 : vector<16x16xf32>
    %583 = arith.mulf %572, %416 : vector<16x16xf32>
    %584 = arith.mulf %577, %582 : vector<16x16xf32>
    %585 = arith.divf %583, %584 : vector<16x16xf32>
    %cst_289 = arith.constant 1.000000e+00 : f32
    %586 = vector.broadcast %cst_289 : f32 to vector<16x16xf32>
    %587 = arith.subf %586, %585 : vector<16x16xf32>
    %588 = math.absf %571 : vector<16x16xf32>
    %c0_290 = arith.constant 0 : index
    %c0_291 = arith.constant 0 : index
    %589 = vector.load %arg3[%c0_290, %c0_291] : memref<16x16xf32, #tpu.memory_space<vmem>>, vector<16x16xf32>
    %590 = arith.mulf %588, %382 : vector<16x16xf32>
    %591 = arith.addf %589, %590 : vector<16x16xf32>
    %c0_292 = arith.constant 0 : index
    %c0_293 = arith.constant 0 : index
    %592 = vector.load %arg3[%c0_292, %c0_293] : memref<16x16xf32, #tpu.memory_space<vmem>>, vector<16x16xf32>
    tpu.vector_store %arg3[%c0_292, %c0_293], %591 {strides = array<i32>} : memref<16x16xf32, #tpu.memory_space<vmem>>, vector<16x16xf32>,
    %c0_294 = arith.constant 0 : index
    %c0_295 = arith.constant 0 : index
    %593 = vector.load %arg4[%c0_294, %c0_295] : memref<16x16xf32, #tpu.memory_space<vmem>>, vector<16x16xf32>
    %594 = arith.addf %593, %587 : vector<16x16xf32>
    %c0_296 = arith.constant 0 : index
    %c0_297 = arith.constant 0 : index
    %595 = vector.load %arg4[%c0_296, %c0_297] : memref<16x16xf32, #tpu.memory_space<vmem>>, vector<16x16xf32>
    tpu.vector_store %arg4[%c0_296, %c0_297], %594 {strides = array<i32>} : memref<16x16xf32, #tpu.memory_space<vmem>>, vector<16x16xf32>,
    %c0_298 = arith.constant 0 : index
    %c0_299 = arith.constant 0 : index
    %596 = vector.load %arg5[%c0_298, %c0_299] : memref<16x16xf32, #tpu.memory_space<vmem>>, vector<16x16xf32>
    %597 = arith.addf %596, %382 : vector<16x16xf32>
    %c0_300 = arith.constant 0 : index
    %c0_301 = arith.constant 0 : index
    %598 = vector.load %arg5[%c0_300, %c0_301] : memref<16x16xf32, #tpu.memory_space<vmem>>, vector<16x16xf32>
    tpu.vector_store %arg5[%c0_300, %c0_301], %597 {strides = array<i32>} : memref<16x16xf32, #tpu.memory_space<vmem>>, vector<16x16xf32>,
    return
  }
  func.func @transform_0(%arg0: i32) -> (i32, i32, i32, i32) {
    %c0_i32 = arith.constant 0 : i32
    %c0_i32_0 = arith.constant 0 : i32
    %c0_i32_1 = arith.constant 0 : i32
    %c0_i32_2 = arith.constant 0 : i32
    return %arg0, %c0_i32, %c0_i32_0, %c0_i32_1 : i32, i32, i32, i32
  }
  func.func @transform_1(%arg0: i32) -> (i32, i32, i32, i32) {
    %c0_i32 = arith.constant 0 : i32
    %c0_i32_0 = arith.constant 0 : i32
    %c0_i32_1 = arith.constant 0 : i32
    %c0_i32_2 = arith.constant 0 : i32
    return %arg0, %c0_i32, %c0_i32_0, %c0_i32_1 : i32, i32, i32, i32
  }
  func.func @transform_2(%arg0: i32) -> (i32, i32) {
    %c0_i32 = arith.constant 0 : i32
    %c0_i32_0 = arith.constant 0 : i32
    %c0_i32_1 = arith.constant 0 : i32
    return %c0_i32, %c0_i32_0 : i32, i32
  }
  func.func @transform_3(%arg0: i32) -> (i32, i32) {
    %c0_i32 = arith.constant 0 : i32
    %c0_i32_0 = arith.constant 0 : i32
    %c0_i32_1 = arith.constant 0 : i32
    return %c0_i32, %c0_i32_0 : i32, i32
  }
  func.func @transform_4(%arg0: i32) -> (i32, i32) {
    %c0_i32 = arith.constant 0 : i32
    %c0_i32_0 = arith.constant 0 : i32
    %c0_i32_1 = arith.constant 0 : i32
    return %c0_i32, %c0_i32_0 : i32, i32
  }
}

</mosaic_0001>

<bundles_post_ra>
// kernel: tpu_custom_call.1
= control target key start
LH: loop header
LB: loop body
LE: loop exit
PB: predicated region body
PF: predicated region fallthrough
CT: control target
= control target key end

     0   :  { %10 = vsyncpa [#allocation3], 0  ;;  %s3376_s0 = inlined_call_operand.hbm [shape: f32[2,1,16,16], index: 0, kind: input, shape index: {}]   ;;  %s3377_s1 = inlined_call_operand.hbm [shape: f32[2,4,16,16], index: 1, kind: input, shape index: {}]   ;;  %s3378_s2 = inlined_call_operand.hbm [shape: f32[16,16], index: 2, kind: output, shape index: {0}]   ;;  %s3379_s3 = inlined_call_operand.hbm [shape: f32[16,16], index: 3, kind: output, shape index: {1}]   ;;  %s3380_s4 = inlined_call_operand.hbm [shape: f32[16,16], index: 4, kind: output, shape index: {2}]  }
   0x1   :  { %11 = vsyncpa [#allocation6], 0 }
   0x2   :  { %12 = vsyncpa [#allocation4], 0 }
   0x3   :  { %13 = vsyncpa [#allocation9], 0  ;;  %s18_s17 = sshll.u32 %s3376_s0, 4  ;;  %s1920_s18 = smov [#allocation2]   ;;  %s19_s17 = int_to_ptr.hbm [resolvable:$true] %s18_s17 }
   0x4   :  { %s20_s19 = sshll.u32 %s1920_s18, 4  ;;  %s31_s22 = sshll.u32 %s3377_s1, 4  ;;  %s21_s19 = int_to_ptr.vmem [resolvable:$true] %s20_s19  ;;  %s32_s22 = int_to_ptr.hbm [resolvable:$true] %s31_s22 }
   0x5   :  { %s1921_s23 = smov 128   ;;  %s1922_s24 = smov 8  }
   0x6   :  { %26 = dma.hbm_to_vmem [thread:$0]  %s19_s17, 512, %s21_s19, [#allocation3], %s1921_s23, %s1921_s23, %s1922_s24  }
   0x7   :  { %s1923_s25 = smov [#allocation5]  }
   0x8   :  { %s33_s26 = sshll.u32 %s1923_s25, 4  ;;  %s34_s26 = int_to_ptr.vmem [resolvable:$true] %s33_s26 }
   0x9   :  { %39 = dma.hbm_to_vmem [thread:$0]  %s32_s22, 2048, %s34_s26, [#allocation6], %s1921_s23, %s1921_s23, %s1922_s24  }
   0xa   :  { %1912 = dma.done.wait [#allocation3], 512  }
   0xb   :  { %1913 = vsyncadd [#allocation3], 4294966784 }
   0xc   :  { %1914 = dma.done.wait [#allocation6], 2048  }
   0xd   :  { %1915 = vsyncadd [#allocation6], 4294965248  ;;  %v59_v0 = vlaneseq  ;;  %s1924_s0 = smov 15   ;;  %s1925_s1 = smov 16   ;;  %v1981_v2 = vld [vmem:[#allocation2] sm:$0xff]  ;;  %v1983_v3 = vld [vmem:[#allocation2 + $0x8] sm:$0xff] }
   0xe   :  { %s1926_s27 = smov 14   ;;  %vm186_vm0 = vcmp.gt.f32.partialorder %v1981_v2, 0.5  ;;  %vm187_vm1 = vcmp.gt.f32.partialorder %v1983_v3, 0.5  ;;  %v3382_v4 = vmov 0.0   ;;  %s1928_s28 = smov 1   ;;  %v2002_v8 = vld [vmem:[#allocation5 + $0x8] sm:$0xff] }
   0xf   :  { %v1975_v1 = vand.u32 127, %v59_v0  ;;  %v1988_v5 = vsel %vm186_vm0, 1.0, %v3382_v4  ;;  %v1991_v6 = vsel %vm187_vm1, 1.0, %v3382_v4  ;;  %s1929_s29 = smov 2   ;;  %v2004_v9 = vld [vmem:[#allocation5] sm:$0xff]  ;;  %v2010_v10 = vld [vmem:[#allocation5 + $0x18] sm:$0xff] }
  0x10   :  { %v1697_v7 = vpack.i.bf16 %v1991_v6, %v1988_v5  ;;  %v2012_v11 = vld [vmem:[#allocation5 + $0x10] sm:$0xff]  ;;  %v2018_v12 = vld [vmem:[#allocation5 + $0x28] sm:$0xff]  ;;  %v2020_v13 = vld [vmem:[#allocation5 + $0x20] sm:$0xff]  ;;  %vm61_vm4 = vcmask 1047680   ;;  %s1930_s30 = smov 114   ;;  %s1931_s5 = smov 127  }
  0x11   :  { %68 = vrot.lane.b32.xlu1 %v1975_v1, %s1924_s0  ;;  %62 = vrot.lane.b32.xlu0 %v1975_v1, %s1925_s1  ;;  %v2026_v14 = vld [vmem:[#allocation5 + $0x50] sm:$0xff]  ;;  %v2032_v16 = vld [vmem:[#allocation2 + $0x18] sm:$0xff]  ;;  %v2040_v19 = vld [vmem:[#allocation5 + $0x68] sm:$0xff]  ;;  %s1932_s6 = smov 113   ;;  %s1933_s7 = smov 126  }
  0x12   :  { %82 = vrot.lane.b32.xlu2 %v1975_v1, %s1926_s27  ;;  %v2030_v15 = vld [vmem:[#allocation2 + $0x10] sm:$0xff]  ;;  %v2034_v17 = vld [vmem:[#allocation5 + $0x38] sm:$0xff]  ;;  %vm902_vm3 = vcmp.gt.f32.partialorder %v2032_v16, 0.5  ;;  %v2056_v23 = vld [vmem:[#allocation5 + $0x48] sm:$0xff]  ;;  %s1934_s8 = smov [#allocation7]   ;;  %s1617_s12 = sshll.u32 %s3378_s2, 4  ;;  %s1618_s12 = int_to_ptr.hbm [resolvable:$true] %s1617_s12 }
  0x13   :  { %v2036_v18 = vld [vmem:[#allocation5 + $0x30] sm:$0xff]  ;;  %vm901_vm2 = vcmp.gt.f32.partialorder %v2030_v15, 0.5  ;;  %v2050_v21 = vsel %vm902_vm3, 1.0, %v3382_v4  ;;  %v1316_v24 = vld [vmem:[#allocation5 + $0x60] sm:$0xff]  ;;  %v2066_v26 = vld [vmem:[#allocation5 + $0x58] sm:$0xff]  ;;  %s3325_s9 = sshll.u32 %s1934_s8, 4  ;;  %s1616_s9 = int_to_ptr.vmem [resolvable:$true] %s3325_s9 }
  0x14   :  { %v2047_v20 = vsel %vm901_vm2, 1.0, %v3382_v4  ;;  %v2061_v25 = vld [vmem:[#allocation5 + $0x40] sm:$0xff]  ;;  %v2077_v34 = vld [vmem:[#allocation5 + $0x78] sm:$0xff]  ;;  %v2111_v55 = vld [vmem:[#allocation5 + $0x70] sm:$0xff]  ;;  %s1935_s2 = smov [#allocation8]   ;;  %s1630_s16 = sshll.u32 %s3379_s3, 4  ;;  %s1631_s16 = int_to_ptr.hbm [resolvable:$true] %s1630_s16 }
  0x15   :  { %v1702_v22 = vpack.i.bf16 %v2050_v21, %v2047_v20  ;;  %s1628_s13 = sshll.u32 %s1935_s2, 4  ;;  %s1936_s17 = smov [#allocation10]   ;;  %s1629_s13 = int_to_ptr.vmem [resolvable:$true] %s1628_s13 }
  0x16   :  { %s1641_s18 = sshll.u32 %s1936_s17, 4  ;;  %s1643_s21 = sshll.u32 %s3380_s4, 4  ;;  %s1642_s18 = int_to_ptr.vmem [resolvable:$true] %s1641_s18  ;;  %s1644_s21 = int_to_ptr.hbm [resolvable:$true] %s1643_s21 }
  0x19   :  { %75 = vrot.lane.b32.xlu1 %v1975_v1, %s1928_s28  ;;  %1698 = vrot.lane.b32.xlu0 %v1697_v7, %s1925_s1 }
  0x1a   :  { %89 = vrot.lane.b32.xlu2 %v1975_v1, %s1929_s29 }
  0x21   :  { %305 = vrot.lane.b32.xlu1 %v1983_v3, %s1925_s1  ;;  %302 = vrot.lane.b32.xlu0 %v1981_v2, %s1925_s1 }
  0x22   :  { %1215 = vrot.lane.b32.xlu2 %v2026_v14, %s1925_s1 }
  0x29   :  { %401 = vrot.lane.b32.xlu1 %v2002_v8, %s1925_s1  ;;  %398 = vrot.lane.b32.xlu0 %v2004_v9, %s1925_s1 }
  0x2a   :  { %1321 = vrot.lane.b32.xlu2 %v2040_v19, %s1925_s1 }
  0x31   :  { %504 = vrot.lane.b32.xlu1 %v2010_v10, %s1925_s1  ;;  %501 = vrot.lane.b32.xlu0 %v2012_v11, %s1925_s1 }
  0x39   :  { %607 = vrot.lane.b32.xlu1 %v2018_v12, %s1925_s1  ;;  %604 = vrot.lane.b32.xlu0 %v2020_v13, %s1925_s1 }
  0x41   :  { %710 = vrot.lane.b32.xlu1 %v2034_v17, %s1925_s1  ;;  %707 = vrot.lane.b32.xlu0 %v2036_v18, %s1925_s1 }
  0x49   :  { %1115 = vrot.lane.b32.xlu1 %v2056_v23, %s1925_s1  ;;  %1703 = vrot.lane.b32.xlu0 %v1702_v22, %s1925_s1 }
  0x51   :  { %1318 = vrot.lane.b32.xlu1 %v1316_v24, %s1925_s1  ;;  %1112 = vrot.lane.b32.xlu0 %v2061_v25, %s1925_s1 }
  0x59   :  { %1218 = vrot.lane.b32.xlu0 %v2066_v26, %s1925_s1  ;;  %1424 = vrot.lane.b32.xlu1 %v2077_v34, %s1925_s1 }
  0x6c   :  { %v83_v45 = vpop.permute.xlu2 %82 }
  0x74   :  { %v90_v54 = vpop.permute.xlu2 %89 }
  0x7c   :  { %v1216_v59 = vpop.permute.xlu2 %1215 }
  0x7d   :  { %v1217_v63 = vsel %vm61_vm4, %v1216_v59, %v2026_v14 }
  0x83   :  { %v2070_v27 = vpop.permute.xlu1 %68  ;;  %v63_v28 = vpop.permute.xlu0 %62 }
  0x84   :  { %v64_v29 = vsel %vm61_vm4, %v63_v28, %v1975_v1 }
  0x85   :  { %65 = vrot.lane.b32.xlu0 %v64_v29, %s1925_s1  ;;  %v1322_v29 = vpop.permute.xlu2 %1321 }
  0x8b   :  { %v2075_v30 = vpop.permute.xlu1 %75  ;;  %v1699_v31 = vpop.permute.xlu0 %1698 }
  0x8c   :  { %v1701_v60 = vunpack.i.h.bf16 %v1699_v31  ;;  %v1700_v61 = vunpack.i.l.bf16 %v1699_v31 }
  0x8e   :  { %v197_v28 = vsel %vm61_vm4, %v1701_v60, %v1991_v6 }
  0x93   :  { %v306_v32 = vpop.permute.xlu1 %305  ;;  %v303_v33 = vpop.permute.xlu0 %302 }
  0x94   :  { %v307_v35 = vsel %vm61_vm4, %v306_v32, %v1983_v3  ;;  %v304_v36 = vsel %vm61_vm4, %v303_v33, %v1981_v2 }
  0x95   :  { %310 = vrot.lane.b32.xlu0 %v307_v35, %s1925_s1  ;;  %308 = vrot.lane.b32.xlu2 %v304_v36, %s1925_s1  ;;  %v1323_v35 = vsel %vm61_vm4, %v1322_v29, %v2040_v19 }
  0x9b   :  { %v402_v37 = vpop.permute.xlu1 %401  ;;  %v399_v38 = vpop.permute.xlu0 %398 }
  0x9c   :  { %v403_v39 = vsel %vm61_vm4, %v402_v37, %v2002_v8  ;;  %v400_v40 = vsel %vm61_vm4, %v399_v38, %v2004_v9 }
  0x9d   :  { %406 = vrot.lane.b32.xlu0 %v403_v39, %s1925_s1  ;;  %404 = vrot.lane.b32.xlu2 %v400_v40, %s1925_s1 }
  0xa3   :  { %v505_v41 = vpop.permute.xlu1 %504  ;;  %v502_v42 = vpop.permute.xlu0 %501 }
  0xa4   :  { %v506_v43 = vsel %vm61_vm4, %v505_v41, %v2010_v10  ;;  %v503_v44 = vsel %vm61_vm4, %v502_v42, %v2012_v11 }
  0xa5   :  { %509 = vrot.lane.b32.xlu0 %v506_v43, %s1925_s1  ;;  %507 = vrot.lane.b32.xlu2 %v503_v44, %s1925_s1 }
  0xab   :  { %v608_v46 = vpop.permute.xlu1 %607  ;;  %v605_v47 = vpop.permute.xlu0 %604 }
  0xac   :  { %v609_v48 = vsel %vm61_vm4, %v608_v46, %v2018_v12  ;;  %v606_v49 = vsel %vm61_vm4, %v605_v47, %v2020_v13 }
  0xad   :  { %612 = vrot.lane.b32.xlu0 %v609_v48, %s1925_s1  ;;  %610 = vrot.lane.b32.xlu2 %v606_v49, %s1925_s1 }
  0xb3   :  { %v711_v50 = vpop.permute.xlu1 %710  ;;  %v708_v51 = vpop.permute.xlu0 %707 }
  0xb4   :  { %v712_v52 = vsel %vm61_vm4, %v711_v50, %v2034_v17  ;;  %v709_v53 = vsel %vm61_vm4, %v708_v51, %v2036_v18 }
  0xb5   :  { %715 = vrot.lane.b32.xlu0 %v712_v52, %s1925_s1  ;;  %713 = vrot.lane.b32.xlu2 %v709_v53, %s1925_s1 }
  0xbb   :  { %v1116_v56 = vpop.permute.xlu1 %1115  ;;  %v1704_v57 = vpop.permute.xlu0 %1703 }
  0xbc   :  { %v1117_v58 = vsel %vm61_vm4, %v1116_v56, %v2056_v23  ;;  %v1706_v32 = vunpack.i.h.bf16 %v1704_v57  ;;  %v1705_v33 = vunpack.i.l.bf16 %v1704_v57 }
  0xbd   :  { %1120 = vrot.lane.b32.xlu1 %v1117_v58, %s1925_s1  ;;  %1421 = vrot.lane.b32.xlu0 %v2111_v55, %s1925_s1 }
  0xbe   :  { %1015 = vrot.lane.b32.xlu2 %v2030_v15, %s1925_s1  ;;  %v194_v15 = vsel %vm61_vm4, %v1700_v61, %v1988_v5  ;;  %v909_v36 = vsel %vm61_vm4, %v1705_v33, %v2047_v20  ;;  %v912_v37 = vsel %vm61_vm4, %v1706_v32, %v2050_v21 }
  0xbf   :  { %v1707_v31 = vpack.i.bf16 %v197_v28, %v194_v15  ;;  %v1712_v39 = vpack.i.bf16 %v912_v37, %v909_v36 }
  0xc3   :  { %v1319_v62 = vpop.permute.xlu1 %1318  ;;  %v1113_v22 = vpop.permute.xlu0 %1112 }
  0xc4   :  { %v1320_v7 = vsel %vm61_vm4, %v1319_v62, %v1316_v24  ;;  %v1114_v24 = vsel %vm61_vm4, %v1113_v22, %v2061_v25 }
  0xc5   :  { %1324 = vrot.lane.b32.xlu1 %v1320_v7, %s1925_s1  ;;  %1018 = vrot.lane.b32.xlu0 %v2032_v16, %s1925_s1 }
  0xc6   :  { %1221 = vrot.lane.b32.xlu2 %v1217_v63, %s1925_s1 }
  0xcb   :  { %v1219_v38 = vpop.permute.xlu0 %1218  ;;  %v2146_v41 = vpop.permute.xlu1 %1424 }
  0xcc   :  { %v1220_v40 = vsel %vm61_vm4, %v1219_v38, %v2066_v26 }
  0xcd   :  { %1118 = vrot.lane.b32.xlu0 %v1114_v24, %s1925_s1  ;;  %1708 = vrot.lane.b32.xlu1 %v1707_v31, %s1925_s1 }
  0xce   :  { %1326 = vrot.lane.b32.xlu2 %v1323_v35, %s1925_s1 }
  0xd5   :  { %1223 = vrot.lane.b32.xlu0 %v1220_v40, %s1925_s1  ;;  %1713 = vrot.lane.b32.xlu1 %v1712_v39, %s1925_s1 }
  0xef   :  { %v309_v33 = vpop.permute.xlu2 %308 }
  0xf0   :  { %v312_v24 = vsel %vm61_vm4, %v309_v33, %v1981_v2 }
  0xf7   :  { %v66_v43 = vpop.permute.xlu0 %65 }
  0xf8   :  { %v67_v44 = vsel %vm61_vm4, %v66_v43, %v1975_v1 }
  0xf9   :  { %v70_v46 = vsub.s32 %v67_v44, %v2070_v27  ;;  %v77_v47 = vsub.s32 %v67_v44, %v2075_v30  ;;  %v84_v48 = vsub.s32 %v67_v44, %v83_v45  ;;  %v91_v53 = vsub.s32 %v67_v44, %v90_v54 }
  0xfb   :  { %v72_v50 = vsub.s32 0, %v70_v46  ;;  %vm71_vm5 = vcmp.lt.s32.totalorder %v70_v46, 0  ;;  %v79_v51 = vsub.s32 0, %v77_v47  ;;  %v86_v52 = vsub.s32 0, %v84_v48 }
  0xfc   :  { %vm78_vm6 = vcmp.lt.s32.totalorder %v77_v47, 0  ;;  %vm85_vm7 = vcmp.lt.s32.totalorder %v84_v48, 0  ;;  %vm92_vm9 = vcmp.lt.s32.totalorder %v91_v53, 0  ;;  %v93_v30 = vsub.s32 0, %v91_v53 }
  0xfd   :  { %v2156_v56 = vsel %vm71_vm5, %v72_v50, %v70_v46  ;;  %v2158_v57 = vsel %vm78_vm6, %v79_v51, %v77_v47  ;;  %v2160_v58 = vsel %vm85_vm7, %v86_v52, %v84_v48  ;;  %v405_v48 = vpop.permute.xlu2 %404  ;;  %vm173_vm7 = vcmp.lt.s32.totalorder %v1975_v1, 2 }
  0xfe   :  { %vm3385_vm8 = vcmp.le.s32.totalorder %v2156_v56, 2  ;;  %vm3381_vm10 = vcmp.le.s32.totalorder %v2158_v57, 2  ;;  %vm88_vm11 = vcmp.le.s32.totalorder %v2160_v58, 2  ;;  %v2181_v32 = vsel %vm92_vm9, %v93_v30, %v91_v53 }
  0xff   :  { %vm95_vm12 = vcmp.le.s32.totalorder %v2181_v32, 2  ;;  %v314_v37 = vsel %vm3385_vm8, %v312_v24, 0.0  ;;  %v326_v38 = vsel %vm3381_vm10, %v312_v24, 0.0  ;;  %v408_v50 = vsel %vm61_vm4, %v405_v48, %v2004_v9 }
 0x100   :  { %v350_v51 = vsel %vm95_vm12, %v312_v24, 0.0  ;;  %v422_v52 = vsel %vm3381_vm10, %v408_v50, 0.0  ;;  %v338_v53 = vsel %vm88_vm11, %v312_v24, 0.0  ;;  %v410_v9 = vsel %vm3385_vm8, %v408_v50, 0.0 }
 0x107   :  { %v311_v40 = vpop.permute.xlu0 %310 }
 0x108   :  { %v313_v43 = vsel %vm61_vm4, %v311_v40, %v1983_v3 }
 0x109   :  { %v327_v44 = vsel %vm3381_vm10, %v313_v43, 0.0  ;;  %v339_v46 = vsel %vm88_vm11, %v313_v43, 0.0  ;;  %v315_v47 = vsel %vm3385_vm8, %v313_v43, 0.0  ;;  %v351_v30 = vsel %vm95_vm12, %v313_v43, 0.0 }
 0x12f   :  { %v2148_v42 = vpop.permute.xlu1 %1120 }
 0x137   :  { %v2154_v49 = vpop.permute.xlu1 %1324 }
 0x13f   :  { %v1709_v59 = vpop.permute.xlu1 %1708 }
 0x140   :  { %v1711_v27 = vunpack.i.h.bf16 %v1709_v59  ;;  %v1710_v60 = vunpack.i.l.bf16 %v1709_v59  ;;  %v407_v59 = vpop.permute.xlu0 %406 }
 0x142   :  { %v203_v45 = vsel %vm61_vm4, %v1711_v27, %v1991_v6  ;;  %v202_v54 = vsel %vm61_vm4, %v1710_v60, %v1988_v5  ;;  %v409_v27 = vsel %vm61_vm4, %v407_v59, %v2002_v8 }
 0x143   :  { %v228_v61 = vsel %vm88_vm11, %v202_v54, 0.0  ;;  %v229_v62 = vsel %vm88_vm11, %v203_v45, 0.0  ;;  %v216_v63 = vsel %vm3381_vm10, %v202_v54, 0.0  ;;  %v217_v7 = vsel %vm3381_vm10, %v203_v45, 0.0 }
 0x144   :  { %v1727_v22 = vpack.i.bf16 %v229_v62, %v228_v61  ;;  %v1722_v15 = vpack.i.bf16 %v217_v7, %v216_v63  ;;  %v204_v28 = vsel %vm3385_vm8, %v202_v54, 0.0  ;;  %v205_v29 = vsel %vm3385_vm8, %v203_v45, 0.0 }
 0x145   :  { %v1717_v31 = vpack.i.bf16 %v205_v29, %v204_v28  ;;  %v240_v35 = vsel %vm95_vm12, %v202_v54, 0.0  ;;  %v241_v36 = vsel %vm95_vm12, %v203_v45, 0.0  ;;  %v435_v60 = vsel %vm88_vm11, %v409_v27, 0.0  ;;  %v508_v45 = vpop.permute.xlu2 %507 }
 0x146   :  { %1728 = vrot.lane.b32.xlu1 %v1727_v22, %s1930_s30  ;;  %1723 = vrot.lane.b32.xlu0 %v1722_v15, %s1931_s5  ;;  %v1732_v39 = vpack.i.bf16 %v241_v36, %v240_v35  ;;  %v511_v54 = vsel %vm61_vm4, %v508_v45, %v2012_v11  ;;  %v423_v61 = vsel %vm3381_vm10, %v409_v27, 0.0  ;;  %v411_v63 = vsel %vm3385_vm8, %v409_v27, 0.0 }
 0x147   :  { %1718 = vrot.lane.b32.xlu2 %v1717_v31, %s1932_s6  ;;  %v525_v62 = vsel %vm3381_vm10, %v511_v54, 0.0  ;;  %v446_v15 = vsel %vm95_vm12, %v408_v50, 0.0  ;;  %v434_v29 = vsel %vm88_vm11, %v408_v50, 0.0  ;;  %v513_v33 = vsel %vm3385_vm8, %v511_v54, 0.0  ;;  %v1714_v45 = vpop.permute.xlu1 %1713 }
 0x148   :  { %v510_v8 = vpop.permute.xlu0 %509  ;;  %v447_v36 = vsel %vm95_vm12, %v409_v27, 0.0 }
 0x149   :  { %v512_v11 = vsel %vm61_vm4, %v510_v8, %v2010_v10 }
 0x14a   :  { %v538_v28 = vsel %vm88_vm11, %v512_v11, 0.0  ;;  %v514_v40 = vsel %vm3385_vm8, %v512_v11, 0.0 }
 0x14d   :  { %v611_v7 = vpop.permute.xlu2 %610 }
 0x14e   :  { %318 = vrot.lane.b32.xlu1 %v314_v37, %s1932_s6  ;;  %330 = vrot.lane.b32.xlu0 %v326_v38, %s1931_s5  ;;  %v614_v31 = vsel %vm61_vm4, %v611_v7, %v2020_v13  ;;  %v526_v38 = vsel %vm3381_vm10, %v512_v11, 0.0 }
 0x14f   :  { %1733 = vrot.lane.b32.xlu2 %v1732_v39, %s1933_s7  ;;  %v628_v24 = vsel %vm3381_vm10, %v614_v31, 0.0  ;;  %v640_v8 = vsel %vm88_vm11, %v614_v31, 0.0  ;;  %v652_v7 = vsel %vm95_vm12, %v614_v31, 0.0 }
 0x150   :  { %v613_v22 = vpop.permute.xlu0 %612 }
 0x151   :  { %v615_v13 = vsel %vm61_vm4, %v613_v22, %v2018_v12  ;;  %v1716_v22 = vunpack.i.h.bf16 %v1714_v45 }
 0x152   :  { %v641_v39 = vsel %vm88_vm11, %v615_v13, 0.0 }
 0x155   :  { %v714_v10 = vpop.permute.xlu2 %713 }
 0x156   :  { %332 = vrot.lane.b32.xlu1 %v327_v44, %s1931_s5  ;;  %344 = vrot.lane.b32.xlu0 %v339_v46, %s1930_s30  ;;  %v717_v12 = vsel %vm61_vm4, %v714_v10, %v2036_v18  ;;  %v549_v44 = vsel %vm95_vm12, %v511_v54, 0.0  ;;  %v653_v10 = vsel %vm95_vm12, %v615_v13, 0.0 }
 0x157   :  { %320 = vrot.lane.b32.xlu2 %v315_v47, %s1932_s6  ;;  %v731_v46 = vsel %vm3381_vm10, %v717_v12, 0.0  ;;  %v537_v47 = vsel %vm88_vm11, %v511_v54, 0.0 }
 0x158   :  { %v716_v35 = vpop.permute.xlu0 %715 }
 0x159   :  { %v2292_v50 = vsel %vm61_vm4, %v716_v35, %v2034_v17 }
 0x15d   :  { %v2268_v37 = vpop.permute.xlu2 %1015 }
 0x15e   :  { %354 = vrot.lane.b32.xlu1 %v350_v51, %s1933_s7  ;;  %426 = vrot.lane.b32.xlu0 %v422_v52, %s1931_s5  ;;  %v616_v51 = vsel %vm3385_vm8, %v614_v31, 0.0  ;;  %v744_v52 = vsel %vm88_vm11, %v2292_v50, 0.0 }
 0x15f   :  { %342 = vrot.lane.b32.xlu2 %v338_v53, %s1930_s30  ;;  %v550_v53 = vsel %vm95_vm12, %v512_v11, 0.0  ;;  %v2335_v11 = vsel %vm88_vm11, %v717_v12, 0.0 }
 0x160   :  { %v1422_v43 = vpop.permute.xlu0 %1421 }
 0x161   :  { %v1423_v17 = vsel %vm61_vm4, %v1422_v43, %v2111_v55 }
 0x165   :  { %v1222_v48 = vpop.permute.xlu2 %1221 }
 0x166   :  { %414 = vrot.lane.b32.xlu1 %v410_v9, %s1932_s6  ;;  %440 = vrot.lane.b32.xlu0 %v435_v60, %s1930_s30  ;;  %v2307_v9 = vshrl.u32 %v59_v0, 7  ;;  %v629_v60 = vsel %vm3381_vm10, %v615_v13, 0.0 }
 0x167   :  { %356 = vrot.lane.b32.xlu2 %v351_v30, %s1933_s7  ;;  %v617_v30 = vsel %vm3385_vm8, %v615_v13, 0.0  ;;  %v2377_v13 = vsel %vm3385_vm8, %v2292_v50, 0.0 }
 0x168   :  { %v1019_v18 = vpop.permute.xlu0 %1018  ;;  %v2319_v55 = vadd.s32 8, %v2307_v9  ;;  %vm101_vm13 = vcmp.lt.s32.totalorder %v2307_v9, 1  ;;  %vm116_vm14 = vcmp.lt.s32.totalorder %v2307_v9, 7  ;;  %vm131_vm15 = vcmp.lt.s32.totalorder %v2307_v9, 2 }
 0x169   :  { %v1020_v0 = vsel %vm61_vm4, %v1019_v18, %v2032_v16  ;;  %vm3390_vm0 = vcmp.lt.s32.totalorder %v2307_v9, 6 }
 0x16a   :  { %v115_v31 = vrot.slane %v2319_v55, 1  ;;  %v145_v18 = vrot.slane %v2319_v55, 2 }
 0x16d   :  { %v1327_v59 = vpop.permute.xlu2 %1326 }
 0x16e   :  { %428 = vrot.lane.b32.xlu1 %v423_v61, %s1931_s5  ;;  %529 = vrot.lane.b32.xlu0 %v525_v62, %s1931_s5  ;;  %v719_v61 = vsel %vm3385_vm8, %v717_v12, 0.0  ;;  %v2329_v62 = vsel %vm61_vm4, %v1222_v48, %v2026_v14  ;;  %v2339_v16 = vsel %vm61_vm4, %v1327_v59, %v2040_v19  ;;  %v114_v14 = vrot.slane %v2307_v9, 1 }
 0x16f   :  { %416 = vrot.lane.b32.xlu2 %v411_v63, %s1932_s6  ;;  %v1715_v63 = vunpack.i.l.bf16 %v1714_v45  ;;  %v2350_v19 = vsel %vm95_vm12, %v717_v12, 0.0  ;;  %v144_v48 = vrot.slane %v2307_v9, 2 }
 0x170   :  { %v1119_v27 = vpop.permute.xlu0 %1118 }
 0x171   :  { %v2368_v35 = vsel %vm61_vm4, %v1119_v27, %v2061_v25  ;;  %v2390_v25 = vsel %vm61_vm4, %v1716_v22, %v2050_v21 }
 0x172   :  { %v2418_v59 = vsel %vm3381_vm10, %v2390_v25, 0.0 }
 0x176   :  { %450 = vrot.lane.b32.xlu1 %v446_v15, %s1933_s7  ;;  %543 = vrot.lane.b32.xlu0 %v538_v28, %s1930_s30  ;;  %v99_v15 = vrot.slane %v2307_v9, 7  ;;  %v100_v28 = vrot.slane %v2319_v55, 7 }
 0x177   :  { %438 = vrot.lane.b32.xlu2 %v434_v29, %s1930_s30 }
 0x178   :  { %v1224_v29 = vpop.permute.xlu0 %1223  ;;  %v102_v43 = vsel %vm101_vm13, %v99_v15, %v100_v28  ;;  %v103_v12 = vsel %vm101_vm13, %v100_v28, %v99_v15 }
 0x17e   :  { %517 = vrot.lane.b32.xlu1 %v513_v33, %s1932_s6  ;;  %632 = vrot.lane.b32.xlu0 %v628_v24, %s1931_s5  ;;  %v2358_v33 = vsel %vm3381_vm10, %v2292_v50, 0.0  ;;  %v2364_v24 = vsel %vm3381_vm10, %v2329_v62, 0.0 }
 0x17f   :  { %452 = vrot.lane.b32.xlu2 %v447_v36, %s1933_s7  ;;  %v2372_v36 = vsel %vm61_vm4, %v1715_v63, %v2047_v20  ;;  %v175_v63 = vsub.s32 15, %v1975_v1 }
 0x180   :  { %v2449_v22 = vsel %vm3385_vm8, %v2372_v36, 0.0 }
 0x181   :  { %vm176_vm9 = vcmp.lt.s32.totalorder %v175_v63, 2 }
 0x186   :  { %531 = vrot.lane.b32.xlu1 %v526_v38, %s1931_s5  ;;  %646 = vrot.lane.b32.xlu0 %v641_v39, %s1930_s30  ;;  %v2382_v38 = vsel %vm3385_vm8, %v2339_v16, 0.0  ;;  %v2386_v39 = vsel %vm61_vm4, %v1224_v29, %v2066_v26  ;;  %v129_v26 = vrot.slane %v2307_v9, 6 }
 0x187   :  { %519 = vrot.lane.b32.xlu2 %v514_v40, %s1932_s6  ;;  %v1228_v45 = vsel %vm3385_vm8, %v2386_v39, 0.0 }
 0x18e   :  { %553 = vrot.lane.b32.xlu1 %v549_v44, %s1933_s7  ;;  %735 = vrot.lane.b32.xlu0 %v731_v46, %s1931_s5  ;;  %v117_v44 = vsel %vm116_vm14, %v114_v14, %v115_v31  ;;  %v118_v46 = vsel %vm116_vm14, %v115_v31, %v114_v14 }
 0x18f   :  { %541 = vrot.lane.b32.xlu2 %v537_v47, %s1930_s30  ;;  %v130_v47 = vrot.slane %v2319_v55, 6  ;;  %v119_v27 = vsub.s32 %v117_v44, %v2307_v9  ;;  %v148_v44 = vsel %vm3390_vm0, %v145_v18, %v144_v48 }
 0x191   :  { %vm121_vm3 = vcmp.lt.s32.totalorder %v119_v27, 0  ;;  %v122_v14 = vsub.s32 0, %v119_v27 }
 0x196   :  { %620 = vrot.lane.b32.xlu1 %v616_v51, %s1932_s6  ;;  %749 = vrot.lane.b32.xlu0 %v744_v52, %s1930_s30  ;;  %v2410_v51 = vsel %vm3381_vm10, %v2372_v36, 0.0  ;;  %v104_v52 = vsub.s32 %v103_v12, %v2307_v9  ;;  %vm3384_vm10 = vcmask 130048  }
 0x197   :  { %555 = vrot.lane.b32.xlu2 %v550_v53, %s1933_s7  ;;  %v105_v53 = vsub.s32 %v102_v43, %v2319_v55  ;;  %55 = vst.msk [vmem:[#allocation8] sm:$0xff] %vm3384_vm10, %v3382_v4 }
 0x198   :  { %vm106_vm1 = vcmp.lt.s32.totalorder %v104_v52, 0  ;;  %v107_v15 = vsub.s32 0, %v104_v52  ;;  %56 = vst.msk [vmem:[#allocation8 + $0x8] sm:$0xff] %vm3384_vm10, %v3382_v4 }
 0x199   :  { %vm109_vm2 = vcmp.lt.s32.totalorder %v105_v53, 0  ;;  %v110_v28 = vsub.s32 0, %v105_v53  ;;  %53 = vst.msk [vmem:[#allocation7] sm:$0xff] %vm3384_vm10, %v3382_v4 }
 0x19a   :  { %54 = vst.msk [vmem:[#allocation7 + $0x8] sm:$0xff] %vm3384_vm10, %v3382_v4 }
 0x19b   :  { %57 = vst.msk [vmem:[#allocation10] sm:$0xff] %vm3384_vm10, %v3382_v4 }
 0x19c   :  { %58 = vst.msk [vmem:[#allocation10 + $0x8] sm:$0xff] %vm3384_vm10, %v3382_v4 }
 0x19e   :  { %634 = vrot.lane.b32.xlu1 %v629_v60, %s1931_s5  ;;  %1427 = vrot.lane.b32.xlu0 %v1423_v17, %s1925_s1  ;;  %v1124_v17 = vsel %vm3385_vm8, %v2368_v35, 0.0  ;;  %v120_v60 = vsub.s32 %v118_v46, %v2319_v55 }
 0x19f   :  { %622 = vrot.lane.b32.xlu2 %v617_v30, %s1932_s6  ;;  %v2428_v30 = vsel %vm95_vm12, %v2292_v50, 0.0  ;;  %v132_v50 = vsel %vm131_vm15, %v129_v26, %v130_v47 }
 0x1a0   :  { %vm124_vm5 = vcmp.lt.s32.totalorder %v120_v60, 0  ;;  %v125_v12 = vsub.s32 0, %v120_v60 }
 0x1a1   :  { %v2316_v54 = vpop.permute.xlu2 %1718 }
 0x1a2   :  { %v1721_v43 = vunpack.i.h.bf16 %v2316_v54  ;;  %v1720_v46 = vunpack.i.l.bf16 %v2316_v54  ;;  %v174_v54 = vsel %vm173_vm7, %v1975_v1, 2  ;;  %v2488_v1 = vsel %vm124_vm5, %v125_v12, %v120_v60 }
 0x1a6   :  { %656 = vrot.lane.b32.xlu1 %v652_v7, %s1933_s7  ;;  %1023 = vrot.lane.b32.xlu0 %v1020_v0, %s1925_s1  ;;  %v133_v0 = vsel %vm131_vm15, %v130_v47, %v129_v26  ;;  %v2461_v26 = vsel %vm106_vm1, %v107_v15, %v104_v52  ;;  %v2464_v47 = vsel %vm109_vm2, %v110_v28, %v105_v53  ;;  %v177_v52 = vsel %vm176_vm9, %v175_v63, 2 }
 0x1a7   :  { %644 = vrot.lane.b32.xlu2 %v640_v8, %s1930_s30  ;;  %v164_v8 = vsub.s32 15, %v2319_v55  ;;  %v134_v31 = vsub.s32 %v133_v0, %v2307_v9  ;;  %v2479_v53 = vsel %vm121_vm3, %v122_v14, %v119_v27  ;;  %v178_v63 = vadd.s32 %v177_v52, %v174_v54 }
 0x1a8   :  { %vm113_vm7 = vcmp.le.s32.totalorder %v2464_v47, 2  ;;  %vm127_vm9 = vcmp.le.s32.totalorder %v2479_v53, 2 }
 0x1a9   :  { %v2392_v40 = vpop.permute.xlu2 %1733  ;;  %vm167_vm6 = vcmp.lt.s32.totalorder %v164_v8, 2  ;;  %v137_v0 = vsub.s32 0, %v134_v31  ;;  %vm136_vm1 = vcmp.lt.s32.totalorder %v134_v31, 0 }
 0x1aa   :  { %v1735_v7 = vunpack.i.l.bf16 %v2392_v40 }
 0x1ab   :  { %v2500_v14 = vsel %vm136_vm1, %v137_v0, %v134_v31  ;;  %vm3391_vm1 = vcmp.le.s32.totalorder %v2488_v1, 2 }
 0x1ae   :  { %723 = vrot.lane.b32.xlu1 %v719_v61, %s1932_s6  ;;  %1128 = vrot.lane.b32.xlu0 %v1124_v17, %s1932_s6  ;;  %v147_v61 = vsel %vm3390_vm0, %v144_v48, %v145_v18  ;;  %v160_v48 = vsel %vm131_vm15, %v2307_v9, 2  ;;  %v168_v18 = vsel %vm167_vm6, %v164_v8, 2  ;;  %v215_v8 = vadd.f32 %v1721_v43, %v1991_v6 }
 0x1af   :  { %658 = vrot.lane.b32.xlu2 %v653_v10, %s1933_s7  ;;  %v135_v10 = vsub.s32 %v132_v50, %v2319_v55  ;;  %v149_v17 = vsub.s32 %v147_v61, %v2307_v9  ;;  %v150_v61 = vsub.s32 %v148_v44, %v2319_v55  ;;  %v170_v6 = vadd.s32 2, %v168_v18 }
 0x1b0   :  { %v1736_v18 = vunpack.i.h.bf16 %v2392_v40  ;;  %vm112_vm6 = vcmp.le.s32.totalorder %v2461_v26, 2 }
 0x1b1   :  { %v2451_v29 = vpop.permute.xlu2 %320  ;;  %v140_v50 = vsub.s32 0, %v135_v10  ;;  %vm139_vm2 = vcmp.lt.s32.totalorder %v135_v10, 0  ;;  %vm151_vm3 = vcmp.lt.s32.totalorder %v149_v17, 0  ;;  %vm154_vm5 = vcmp.lt.s32.totalorder %v150_v61, 0 }
 0x1b2   :  { %v155_v43 = vsub.s32 0, %v150_v61  ;;  %v172_v52 = vadd.s32 1, %v170_v6 }
 0x1b6   :  { %737 = vrot.lane.b32.xlu1 %v2358_v33, %s1931_s5  ;;  %1233 = vrot.lane.b32.xlu0 %v1228_v45, %s1932_s6  ;;  %v214_v33 = vadd.f32 %v1720_v46, %v1988_v5  ;;  %v169_v45 = vadd.s32 2, %v160_v48  ;;  %v2503_v5 = vsel %vm139_vm2, %v140_v50, %v135_v10  ;;  %vm3389_vm2 = vcmp.le.s32.totalorder %v2500_v14, 2 }
 0x1b7   :  { %725 = vrot.lane.b32.xlu2 %v2377_v13, %s1932_s6  ;;  %v152_v13 = vsub.s32 0, %v149_v17 }
 0x1b8   :  { %v1729_v27 = vpop.permute.xlu1 %1728  ;;  %v1724_v55 = vpop.permute.xlu0 %1723  ;;  %v171_v54 = vadd.s32 1, %v169_v45 }
 0x1b9   :  { %v1726_v15 = vunpack.i.h.bf16 %v1724_v55  ;;  %v1725_v60 = vunpack.i.l.bf16 %v1724_v55  ;;  %v2495_v28 = vpop.permute.xlu2 %342  ;;  %v1731_v12 = vunpack.i.h.bf16 %v1729_v27  ;;  %v1730_v44 = vunpack.i.l.bf16 %v1729_v27 }
 0x1ba   :  { %v179_v55 = vadd.s32 1, %v178_v63  ;;  %v2508_v4 = vsel %vm151_vm3, %v152_v13, %v149_v17  ;;  %vm3388_vm3 = vcmp.le.s32.totalorder %v2503_v5, 2  ;;  %v2523_v17 = vsel %vm154_vm5, %v155_v43, %v150_v61 }
 0x1bb   :  { %v226_v46 = vadd.f32 %v1725_v60, %v214_v33  ;;  %v227_v48 = vadd.f32 %v1726_v15, %v215_v8  ;;  %vm3387_vm10 = vcmp.le.s32.totalorder %v2508_v4, 2  ;;  %vm3386_vm5 = vcmp.le.s32.totalorder %v2523_v17, 2 }
 0x1bc   :  { %v181_v33 = vmul.u32 %v179_v55, %v172_v52 }
 0x1bd   :  { %v238_v31 = vadd.f32 %v1730_v44, %v226_v46  ;;  %v239_v0 = vadd.f32 %v1731_v12, %v227_v48 }
 0x1be   :  { %759 = vrot.lane.b32.xlu1 %v2350_v19, %s1933_s7  ;;  %1243 = vrot.lane.b32.xlu0 %v2364_v24, %s1931_s5  ;;  %v180_v19 = vmul.u32 %v179_v55, %v171_v54 }
 0x1bf   :  { %v250_v40 = vadd.f32 %v1735_v7, %v238_v31  ;;  %v251_v10 = vadd.f32 %v1736_v18, %v239_v0  ;;  %747 = vrot.lane.b32.xlu2 %v2335_v11, %s1930_s30  ;;  %v325_v31 = vadd.f32 %v2451_v29, %v1983_v3 }
 0x1c0   :  { %v319_v50 = vpop.permute.xlu1 %318  ;;  %v331_v8 = vpop.permute.xlu0 %330  ;;  %v182_v48 = vcvt.s32.f32 %v180_v19 }
 0x1c1   :  { %v252_v27 = vrot.slane %v250_v40, 7  ;;  %v253_v24 = vrot.slane %v251_v10, 7  ;;  %v260_v45 = vrot.slane %v250_v40, 1  ;;  %v261_v6 = vrot.slane %v251_v10, 1  ;;  %v357_v63 = vpop.permute.xlu2 %356 }
 0x1c2   :  { %v268_v13 = vrot.slane %v250_v40, 6  ;;  %v269_v7 = vrot.slane %v251_v10, 6  ;;  %v276_v15 = vrot.slane %v250_v40, 2  ;;  %v277_v60 = vrot.slane %v251_v10, 2 }
 0x1c3   :  { %v254_v11 = vsel %vm101_vm13, %v252_v27, %v253_v24  ;;  %v255_v61 = vsel %vm101_vm13, %v253_v24, %v252_v27  ;;  %v262_v43 = vsel %vm116_vm14, %v260_v45, %v261_v6  ;;  %v263_v12 = vsel %vm116_vm14, %v261_v6, %v260_v45 }
 0x1c4   :  { %v256_v44 = vsel %vm112_vm6, %v255_v61, 0.0  ;;  %v257_v46 = vsel %vm113_vm7, %v254_v11, 0.0  ;;  %v270_v52 = vsel %vm131_vm15, %v268_v13, %v269_v7  ;;  %v271_v55 = vsel %vm131_vm15, %v269_v7, %v268_v13 }
 0x1c5   :  { %v258_v18 = vadd.f32 %v256_v44, %v250_v40  ;;  %v259_v54 = vadd.f32 %v257_v46, %v251_v10  ;;  %v264_v0 = vsel %vm127_vm9, %v262_v43, 0.0  ;;  %v265_v27 = vsel %vm3391_vm1, %v263_v12, 0.0 }
 0x1c6   :  { %v3392_v40 = vpack.i.bf16 %v2418_v59, %v2410_v51  ;;  %1336 = vrot.lane.b32.xlu0 %v2382_v38, %s1932_s6  ;;  %v183_v10 = vcvt.s32.f32 %v181_v33  ;;  %v278_v3 = vsel %vm3390_vm0, %v276_v15, %v277_v60  ;;  %v279_v29 = vsel %vm3390_vm0, %v277_v60, %v276_v15 }
 0x1c7   :  { %v266_v19 = vadd.f32 %v264_v0, %v258_v18  ;;  %v267_v24 = vadd.f32 %v265_v27, %v259_v54  ;;  %761 = vrot.lane.b32.xlu2 %v2428_v30, %s1933_s7  ;;  %v272_v45 = vsel %vm3389_vm2, %v271_v55, 0.0  ;;  %v273_v51 = vsel %vm3388_vm3, %v270_v52, 0.0 }
 0x1c8   :  { %1743 = vrot.lane.b32.xlu1 %v3392_v40, %s1931_s5  ;;  %v324_v38 = vadd.f32 %v319_v50, %v1981_v2  ;;  %v333_v59 = vpop.permute.xlu1 %332  ;;  %v345_v33 = vpop.permute.xlu0 %344  ;;  %v920_v6 = vsel %vm3385_vm8, %v2390_v25, 0.0  ;;  %v2571_v30 = vadd.f32 -0.5, %v182_v48  ;;  %v280_v11 = vsel %vm3387_vm10, %v278_v3, 0.0 }
 0x1c9   :  { %v274_v13 = vadd.f32 %v272_v45, %v266_v19  ;;  %v275_v7 = vadd.f32 %v273_v51, %v267_v24  ;;  %v337_v15 = vadd.f32 %v333_v59, %v325_v31  ;;  %v2569_v60 = vpop.permute.xlu2 %416  ;;  %v281_v61 = vsel %vm3386_vm5, %v279_v29, 0.0  ;;  %v892_v29 = vld [vmem:[#allocation10] sm:$0xff] }
 0x1ca   :  { %v336_v2 = vadd.f32 %v331_v8, %v324_v38  ;;  %v2577_v50 = vadd.f32 -0.5, %v183_v10  ;;  %v1426_v46 = vsel %vm61_vm4, %v2146_v41, %v2077_v34  ;;  %v1251_v48 = vsel %vm88_vm11, %v2329_v62, 0.0 }
 0x1cb   :  { %v349_v43 = vadd.f32 %v345_v33, %v337_v15  ;;  %v282_v12 = vadd.f32 %v280_v11, %v274_v13  ;;  %v283_v44 = vadd.f32 %v281_v61, %v275_v7  ;;  %v1737_v18 = vpack.i.bf16 %v920_v6, %v2449_v22 }
 0x1cc   :  { %v348_v54 = vadd.f32 %v2495_v28, %v336_v2  ;;  %v3393_v8 = vmov 0.0   ;;  %v955_v41 = vsel %vm95_vm12, %v2372_v36, 0.0  ;;  %v956_v22 = vsel %vm95_vm12, %v2390_v25, 0.0 }
 0x1cd   :  { %v361_v52 = vadd.f32 %v357_v63, %v349_v43  ;;  %vm284_vm8 = vcmp.gt.f32.partialorder %v282_v12, 0.0  ;;  %vm285_vm5 = vcmp.gt.f32.partialorder %v283_v44, 0.0  ;;  %vm292_vm10 = vcmp.ge.f32.partialorder %v282_v12, %v2571_v30 }
 0x1ce   :  { %1255 = vrot.lane.b32.xlu0 %v1251_v48, %s1930_s30  ;;  %v1668_v55 = vsel %vm284_vm8, 1.0, %v3393_v8  ;;  %vm293_vm3 = vcmp.ge.f32.partialorder %v283_v44, %v2577_v50  ;;  %v1672_v34 = vsel %vm292_vm10, 1.0, %v3393_v8  ;;  %v1669_v28 = vsel %vm285_vm5, 1.0, %v3393_v8 }
 0x1cf   :  { %1738 = vrot.lane.b32.xlu2 %v1737_v18, %s1932_s6  ;;  %v1673_v0 = vsel %vm293_vm3, 1.0, %v3393_v8  ;;  %v298_v27 = vsub.f32 %v1668_v55, %v1672_v34  ;;  %vm3394_vm8 = vcmp.le.s32.totalorder %v2158_v57, 2  ;;  %v943_v24 = vsel %vm88_vm11, %v2372_v36, 0.0 }
 0x1d0   :  { %1429 = vrot.lane.b32.xlu1 %v1426_v46, %s1925_s1  ;;  %v355_v63 = vpop.permute.xlu1 %354  ;;  %v427_v31 = vpop.permute.xlu0 %426  ;;  %v1343_v19 = vsel %vm3394_vm8, %v2339_v16, 0.0  ;;  %v944_v3 = vsel %vm88_vm11, %v2390_v25, 0.0  ;;  %v363_v45 = vrot.slane %v361_v52, 7  ;;  %v1752_v51 = vpack.i.bf16 %v956_v22, %v955_v41  ;;  %v893_v22 = vld [vmem:[#allocation10 + $0x8] sm:$0xff] }
 0x1d1   :  { %v360_v40 = vadd.f32 %v355_v63, %v348_v54  ;;  %v2602_v10 = vpop.permute.xlu2 %438  ;;  %v299_v38 = vsub.f32 %v1669_v28, %v1673_v0  ;;  %v2613_v59 = vadd.f32 1e-10, %v298_v27  ;;  %v371_v33 = vrot.slane %v361_v52, 1 }
 0x1d2   :  { %v379_v15 = vrot.slane %v361_v52, 6  ;;  %v1747_v61 = vpack.i.bf16 %v944_v3, %v943_v24  ;;  %v387_v44 = vrot.slane %v361_v52, 2  ;;  %vm3395_vm10 = vcmask 130048  }
 0x1d3   :  { %v362_v6 = vrot.slane %v360_v40, 7  ;;  %v370_v13 = vrot.slane %v360_v40, 1  ;;  %v378_v7 = vrot.slane %v360_v40, 6  ;;  %v386_v11 = vrot.slane %v360_v40, 2 }
 0x1d4   :  { %v894_v2 = vadd.f32 %v892_v29, %v2613_v59  ;;  %v2630_v18 = vadd.f32 1e-10, %v299_v38  ;;  %vm3396_vm3 = vcmp.le.s32.totalorder %v2503_v5, 2  ;;  %v1773_v38 = vld [vmem:[#allocation5] sm:$0xff]  ;;  %vm3397_vm5 = vcmp.le.s32.totalorder %v2508_v4, 2 }
 0x1d5   :  { %v364_v36 = vsel %vm101_vm13, %v362_v6, %v363_v45  ;;  %v365_v25 = vsel %vm101_vm13, %v363_v45, %v362_v6  ;;  %v372_v43 = vsel %vm116_vm14, %v370_v13, %v371_v33  ;;  %v373_v12 = vsel %vm116_vm14, %v371_v33, %v370_v13 }
 0x1d6   :  { %v366_v46 = vsel %vm112_vm6, %v365_v25, 0.0  ;;  %v367_v48 = vsel %vm113_vm7, %v364_v36, 0.0  ;;  %1348 = vrot.lane.b32.xlu0 %v1343_v19, %s1931_s5  ;;  %896 = vst.msk [vmem:[#allocation10] sm:$0xff] %vm3395_vm10, %v894_v2  ;;  %v380_v34 = vsel %vm131_vm15, %v378_v7, %v379_v15  ;;  %v381_v41 = vsel %vm131_vm15, %v379_v15, %v378_v7  ;;  %v2673_v25 = vld [vmem:[#allocation2 + $0x10] sm:$0xff] }
 0x1d7   :  { %v368_v54 = vadd.f32 %v366_v46, %v360_v40  ;;  %v369_v55 = vadd.f32 %v367_v48, %v361_v52  ;;  %1748 = vrot.lane.b32.xlu2 %v1747_v61, %s1930_s30  ;;  %v374_v28 = vsel %vm127_vm9, %v372_v43, 0.0  ;;  %v375_v63 = vsel %vm3391_vm1, %v373_v12, 0.0  ;;  %v1775_v12 = vld [vmem:[#allocation5 + $0x8] sm:$0xff] }
 0x1d8   :  { %1753 = vrot.lane.b32.xlu1 %v1752_v51, %s1933_s7  ;;  %v388_v0 = vsel %vm3390_vm0, %v386_v11, %v387_v44  ;;  %v389_v52 = vsel %vm3390_vm0, %v387_v44, %v386_v11  ;;  %v415_v27 = vpop.permute.xlu1 %414  ;;  %v441_v40 = vpop.permute.xlu0 %440  ;;  %v2649_v19 = vsel %vm61_vm4, %v2148_v42, %v2056_v23  ;;  %v382_v45 = vsel %vm3389_vm2, %v381_v41, 0.0 }
 0x1d9   :  { %v376_v24 = vadd.f32 %v374_v28, %v368_v54  ;;  %v377_v3 = vadd.f32 %v375_v63, %v369_v55  ;;  %v453_v29 = vpop.permute.xlu2 %452  ;;  %v383_v51 = vsel %vm3396_vm3, %v380_v34, 0.0  ;;  %v420_v33 = vadd.f32 %v1773_v38, %v415_v27 }
 0x1da   :  { %v895_v6 = vadd.f32 %v893_v22, %v2630_v18  ;;  %v390_v15 = vsel %vm3397_vm5, %v388_v0, 0.0  ;;  %vm3398_vm8 = vcmp.le.s32.totalorder %v2523_v17, 2  ;;  %vm3399_vm3 = vcmp.le.s32.totalorder %v2156_v56, 2 }
 0x1db   :  { %v384_v13 = vadd.f32 %v382_v45, %v376_v24  ;;  %v385_v7 = vadd.f32 %v383_v51, %v377_v3  ;;  %v391_v23 = vsel %vm3398_vm8, %v389_v52, 0.0  ;;  %v432_v42 = vadd.f32 %v427_v31, %v420_v33 }
 0x1dc   :  { %897 = vst.msk [vmem:[#allocation10 + $0x8] sm:$0xff] %vm3395_vm10, %v895_v6  ;;  %v1125_v2 = vsel %vm3399_vm3, %v2649_v19, 0.0  ;;  %v1160_v36 = vsel %vm95_vm12, %v2368_v35, 0.0  ;;  %v1017_v31 = vsel %vm61_vm4, %v2268_v37, %v2673_v25  ;;  %v421_v44 = vadd.f32 %v1775_v12, %v2569_v60 }
 0x1dd   :  { %v2661_v11 = vadd.f32 %v390_v15, %v384_v13  ;;  %v2663_v61 = vadd.f32 %v391_v23, %v385_v7  ;;  %v444_v43 = vadd.f32 %v2602_v10, %v432_v42  ;;  %vm3400_vm5 = vcmp.le.s32.totalorder %v2158_v57, 2 }
 0x1de   :  { %1164 = vrot.lane.b32.xlu0 %v1160_v36, %s1933_s7  ;;  %v1136_v22 = vsel %vm3400_vm5, %v2368_v35, 0.0  ;;  %v1264_v37 = vsel %vm95_vm12, %v2386_v39, 0.0  ;;  %vm3401_vm8 = vmmov %vm3400_vm5  ;;  %vm3402_vm10 = vcmp.le.s32.totalorder %v2503_v5, 2  ;;  %vm3403_vm3 = vcmp.le.s32.totalorder %v2508_v4, 2 }
 0x1df   :  { %1021 = vrot.lane.b32.xlu2 %v1017_v31, %s1925_s1  ;;  %v1240_v45 = vsel %vm3401_vm8, %v2386_v39, 0.0  ;;  %vm3404_vm5 = vcmp.le.s32.totalorder %v2523_v17, 2  ;;  %vm3405_vm8 = vmmov %vm3402_vm10 }
 0x1e0   :  { %1130 = vrot.lane.b32.xlu1 %v1125_v2, %s1932_s6  ;;  %v429_v46 = vpop.permute.xlu1 %428  ;;  %v530_v48 = vpop.permute.xlu0 %529 }
 0x1e1   :  { %v433_v54 = vadd.f32 %v429_v46, %v421_v44  ;;  %v520_v55 = vpop.permute.xlu2 %519 }
 0x1e3   :  { %v445_v34 = vadd.f32 %v441_v40, %v433_v54 }
 0x1e5   :  { %v457_v41 = vadd.f32 %v453_v29, %v445_v34 }
 0x1e6   :  { %1269 = vrot.lane.b32.xlu0 %v1264_v37, %s1933_s7 }
 0x1e7   :  { %v459_v0 = vrot.slane %v457_v41, 7  ;;  %v467_v52 = vrot.slane %v457_v41, 1  ;;  %v475_v3 = vrot.slane %v457_v41, 6  ;;  %v483_v13 = vrot.slane %v457_v41, 2 }
 0x1e8   :  { %1140 = vrot.lane.b32.xlu1 %v1136_v22, %s1931_s5  ;;  %v451_v60 = vpop.permute.xlu1 %450  ;;  %v544_v10 = vpop.permute.xlu0 %543 }
 0x1e9   :  { %v456_v28 = vadd.f32 %v451_v60, %v444_v43  ;;  %v542_v63 = vpop.permute.xlu2 %541 }
 0x1eb   :  { %v458_v27 = vrot.slane %v456_v28, 7  ;;  %v466_v40 = vrot.slane %v456_v28, 1  ;;  %v474_v24 = vrot.slane %v456_v28, 6  ;;  %v482_v29 = vrot.slane %v456_v28, 2 }
 0x1ed   :  { %v460_v51 = vsel %vm101_vm13, %v458_v27, %v459_v0  ;;  %v461_v38 = vsel %vm101_vm13, %v459_v0, %v458_v27  ;;  %v468_v33 = vsel %vm116_vm14, %v466_v40, %v467_v52  ;;  %v469_v6 = vsel %vm116_vm14, %v467_v52, %v466_v40 }
 0x1ee   :  { %v462_v7 = vsel %vm112_vm6, %v461_v38, 0.0  ;;  %v463_v15 = vsel %vm113_vm7, %v460_v51, 0.0  ;;  %v476_v2 = vsel %vm131_vm15, %v474_v24, %v475_v3  ;;  %v477_v36 = vsel %vm131_vm15, %v475_v3, %v474_v24 }
 0x1ef   :  { %v464_v23 = vadd.f32 %v462_v7, %v456_v28  ;;  %v465_v42 = vadd.f32 %v463_v15, %v457_v41  ;;  %v470_v31 = vsel %vm127_vm9, %v468_v33, 0.0  ;;  %v471_v43 = vsel %vm3391_vm1, %v469_v6, 0.0  ;;  %v1776_v28 = vld [vmem:[#allocation5 + $0x10] sm:$0xff]  ;;  %v1777_v33 = vld [vmem:[#allocation5 + $0x18] sm:$0xff] }
 0x1f0   :  { %1245 = vrot.lane.b32.xlu1 %v1240_v45, %s1931_s5  ;;  %v484_v12 = vsel %vm3390_vm0, %v482_v29, %v483_v13  ;;  %v485_v44 = vsel %vm3390_vm0, %v483_v13, %v482_v29  ;;  %v518_v46 = vpop.permute.xlu1 %517  ;;  %v2717_v54 = vpop.permute.xlu0 %632  ;;  %v478_v37 = vsel %vm3389_vm2, %v477_v36, 0.0  ;;  %v479_v60 = vsel %vm3402_vm10, %v476_v2, 0.0  ;;  %vm3406_vm10 = vmmov %vm3403_vm3 }
 0x1f1   :  { %v472_v34 = vadd.f32 %v470_v31, %v464_v23  ;;  %v473_v41 = vadd.f32 %v471_v43, %v465_v42  ;;  %v556_v22 = vpop.permute.xlu2 %555  ;;  %v523_v0 = vadd.f32 %v1776_v28, %v518_v46  ;;  %v486_v40 = vsel %vm3403_vm3, %v484_v12, 0.0  ;;  %vm3407_vm3 = vmmov %vm3404_vm5 }
 0x1f2   :  { %v487_v24 = vsel %vm3404_vm5, %v485_v44, 0.0  ;;  %v1148_v51 = vsel %vm88_vm11, %v2368_v35, 0.0  ;;  %v524_v6 = vadd.f32 %v1777_v33, %v520_v55  ;;  %vm3408_vm5 = vcmp.le.s32.totalorder %v2158_v57, 2 }
 0x1f3   :  { %v480_v52 = vadd.f32 %v478_v37, %v472_v34  ;;  %v481_v27 = vadd.f32 %v479_v60, %v473_v41  ;;  %v535_v3 = vadd.f32 %v530_v48, %v523_v0  ;;  %v1252_v48 = vsel %vm88_vm11, %v2386_v39, 0.0 }
 0x1f5   :  { %v488_v29 = vadd.f32 %v486_v40, %v480_v52  ;;  %v489_v45 = vadd.f32 %v487_v24, %v481_v27  ;;  %v547_v38 = vadd.f32 %v542_v63, %v535_v3 }
 0x1f8   :  { %1152 = vrot.lane.b32.xlu1 %v1148_v51, %s1930_s30  ;;  %v532_v13 = vpop.permute.xlu1 %531  ;;  %v2731_v7 = vpop.permute.xlu0 %646 }
 0x1f9   :  { %v536_v15 = vadd.f32 %v532_v13, %v524_v6  ;;  %v623_v23 = vpop.permute.xlu2 %622 }
 0x1fb   :  { %v548_v42 = vadd.f32 %v544_v10, %v536_v15 }
 0x1fd   :  { %v560_v2 = vadd.f32 %v556_v22, %v548_v42 }
 0x1ff   :  { %v562_v55 = vrot.slane %v560_v2, 7  ;;  %v570_v43 = vrot.slane %v560_v2, 1  ;;  %v578_v34 = vrot.slane %v560_v2, 6  ;;  %v586_v60 = vrot.slane %v560_v2, 2 }
 0x200   :  { %1257 = vrot.lane.b32.xlu1 %v1252_v48, %s1930_s30  ;;  %v554_v36 = vpop.permute.xlu1 %553  ;;  %v2737_v35 = vpop.permute.xlu0 %735 }
 0x201   :  { %v559_v31 = vadd.f32 %v554_v36, %v547_v38  ;;  %v2739_v63 = vpop.permute.xlu2 %644 }
 0x203   :  { %v561_v12 = vrot.slane %v559_v31, 7  ;;  %v569_v44 = vrot.slane %v559_v31, 1  ;;  %v577_v46 = vrot.slane %v559_v31, 6  ;;  %v585_v10 = vrot.slane %v559_v31, 2 }
 0x205   :  { %v563_v41 = vsel %vm101_vm13, %v561_v12, %v562_v55  ;;  %v564_v39 = vsel %vm101_vm13, %v562_v55, %v561_v12  ;;  %v571_v22 = vsel %vm116_vm14, %v569_v44, %v570_v43  ;;  %v572_v37 = vsel %vm116_vm14, %v570_v43, %v569_v44 }
 0x206   :  { %v565_v28 = vsel %vm112_vm6, %v564_v39, 0.0  ;;  %v566_v0 = vsel %vm113_vm7, %v563_v41, 0.0  ;;  %v579_v40 = vsel %vm131_vm15, %v577_v46, %v578_v34  ;;  %v580_v24 = vsel %vm131_vm15, %v578_v34, %v577_v46 }
 0x207   :  { %v567_v52 = vadd.f32 %v565_v28, %v559_v31  ;;  %v568_v27 = vadd.f32 %v566_v0, %v560_v2  ;;  %v573_v3 = vsel %vm127_vm9, %v571_v22, 0.0  ;;  %v574_v51 = vsel %vm3391_vm1, %v572_v37, 0.0 }
 0x208   :  { %v587_v38 = vsel %vm3390_vm0, %v585_v10, %v586_v60  ;;  %v588_v33 = vsel %vm3390_vm0, %v586_v60, %v585_v10  ;;  %v621_v6 = vpop.permute.xlu1 %620  ;;  %v2765_v13 = vpop.permute.xlu0 %749  ;;  %v581_v48 = vsel %vm3389_vm2, %v580_v24, 0.0  ;;  %v582_v36 = vsel %vm3405_vm8, %v579_v40, 0.0  ;;  %v1778_v60 = vld [vmem:[#allocation5 + $0x20] sm:$0xff] }
 0x209   :  { %v575_v15 = vadd.f32 %v573_v3, %v567_v52  ;;  %v576_v42 = vadd.f32 %v574_v51, %v568_v27  ;;  %v659_v2 = vpop.permute.xlu2 %658  ;;  %v490_v43 = vmul.f32 0.04, %v488_v29  ;;  %v491_v12 = vmul.f32 0.04, %v489_v45  ;;  %v1779_v3 = vld [vmem:[#allocation5 + $0x28] sm:$0xff] }
 0x20a   :  { %v589_v44 = vsel %vm3406_vm10, %v587_v38, 0.0  ;;  %v590_v46 = vsel %vm3407_vm3, %v588_v33, 0.0  ;;  %v626_v28 = vadd.f32 %v1778_v60, %v621_v6  ;;  %v627_v51 = vadd.f32 %v1779_v3, %v623_v23  ;;  %v2779_v38 = vld [vmem:[#allocation5 + $0x70] sm:$0xff] }
 0x20b   :  { %v583_v31 = vadd.f32 %v581_v48, %v575_v15  ;;  %v584_v55 = vadd.f32 %v582_v36, %v576_v42  ;;  %v494_v22 = vmul.f32 %v490_v43, %v490_v43  ;;  %v495_v37 = vmul.f32 %v491_v12, %v491_v12 }
 0x20c   :  { %vm3409_vm8 = vcmp.le.s32.totalorder %v2156_v56, 2  ;;  %v638_v23 = vadd.f32 %v2717_v54, %v626_v28  ;;  %v1161_v54 = vsel %vm95_vm12, %v2649_v19, 0.0  ;;  %vm3410_vm10 = vcmp.le.s32.totalorder %v2503_v5, 2 }
 0x20d   :  { %v591_v34 = vadd.f32 %v589_v44, %v583_v31  ;;  %v592_v10 = vadd.f32 %v590_v46, %v584_v55  ;;  %v1367_v46 = vsel %vm95_vm12, %v2339_v16, 0.0  ;;  %vm3411_vm3 = vcmp.le.s32.totalorder %v2508_v4, 2 }
 0x20f   :  { %v593_v41 = vmul.f32 0.04, %v591_v34  ;;  %v594_v39 = vmul.f32 0.04, %v592_v10 }
 0x210   :  { %v635_v0 = vpop.permute.xlu1 %634  ;;  %v1428_v52 = vpop.permute.xlu0 %1427 }
 0x211   :  { %v2775_v27 = vadd.f32 %v593_v41, %v490_v43  ;;  %v2777_v29 = vadd.f32 %v594_v39, %v491_v12  ;;  %v597_v45 = vmul.f32 %v593_v41, %v593_v41  ;;  %v598_v40 = vmul.f32 %v594_v39, %v594_v39  ;;  %v726_v24 = vpop.permute.xlu2 %725 }
 0x212   :  { %v2783_v33 = vsel %vm61_vm4, %v1428_v52, %v2779_v38  ;;  %v639_v36 = vadd.f32 %v635_v0, %v627_v51  ;;  %v650_v43 = vadd.f32 %v2739_v63, %v638_v23  ;;  %v1783_v51 = vld [vmem:[#allocation5 + $0x38] sm:$0xff] }
 0x213   :  { %v2785_v15 = vadd.f32 %v597_v45, %v494_v22  ;;  %v2787_v6 = vadd.f32 %v598_v40, %v495_v37  ;;  %v1445_v42 = vsel %vm3408_vm5, %v2783_v33, 0.0  ;;  %v1433_v48 = vsel %vm3409_vm8, %v2783_v33, 0.0  ;;  %v1782_v40 = vld [vmem:[#allocation5 + $0x30] sm:$0xff]  ;;  %vm3413_vm8 = vmmov %vm3410_vm10 }
 0x214   :  { %1449 = vrot.lane.b32.xlu0 %v1445_v42, %s1931_s5  ;;  %1437 = vrot.lane.b32.xlu1 %v1433_v48, %s1932_s6  ;;  %v651_v31 = vadd.f32 %v2731_v7, %v639_v36  ;;  %v2808_v7 = vld [vmem:[#allocation5 + $0x60] sm:$0xff]  ;;  %v730_v42 = vadd.f32 %v1783_v51, %v726_v24  ;;  %vm3412_vm5 = vcmp.le.s32.totalorder %v2523_v17, 2 }
 0x215   :  { %v2813_v63 = vsel %vm61_vm4, %v2154_v49, %v2808_v7 }
 0x216   :  { %v663_v34 = vadd.f32 %v659_v2, %v651_v31  ;;  %v1469_v2 = vsel %vm95_vm12, %v2783_v33, 0.0  ;;  %v1354_v60 = vsel %vm88_vm11, %v2813_v63, 0.0 }
 0x218   :  { %v657_v55 = vpop.permute.xlu1 %656  ;;  %v665_v41 = vrot.slane %v663_v34, 7  ;;  %v673_v52 = vrot.slane %v663_v34, 1 }
 0x219   :  { %v748_v12 = vpop.permute.xlu2 %747  ;;  %v662_v44 = vadd.f32 %v657_v55, %v650_v43  ;;  %v681_v43 = vrot.slane %v663_v34, 6 }
 0x21b   :  { %v664_v10 = vrot.slane %v662_v44, 7  ;;  %v672_v0 = vrot.slane %v662_v44, 1  ;;  %v680_v36 = vrot.slane %v662_v44, 6 }
 0x21c   :  { %1372 = vrot.lane.b32.xlu0 %v1367_v46, %s1933_s7  ;;  %1166 = vrot.lane.b32.xlu1 %v1161_v54, %s1933_s7 }
 0x21d   :  { %v667_v37 = vsel %vm101_vm13, %v665_v41, %v664_v10  ;;  %v666_v28 = vsel %vm101_vm13, %v664_v10, %v665_v41  ;;  %v674_v23 = vsel %vm116_vm14, %v672_v0, %v673_v52  ;;  %v675_v54 = vsel %vm116_vm14, %v673_v52, %v672_v0 }
 0x21e   :  { %v668_v49 = vsel %vm112_vm6, %v667_v37, 0.0  ;;  %v669_v45 = vsel %vm113_vm7, %v666_v28, 0.0  ;;  %v676_v41 = vsel %vm127_vm9, %v674_v23, 0.0  ;;  %v689_v28 = vrot.slane %v663_v34, 2 }
 0x21f   :  { %v670_v48 = vadd.f32 %v668_v49, %v662_v44  ;;  %v671_v46 = vadd.f32 %v669_v45, %v663_v34  ;;  %v677_v49 = vsel %vm3391_vm1, %v675_v54, 0.0  ;;  %v682_v0 = vsel %vm131_vm15, %v680_v36, %v681_v43 }
 0x220   :  { %v724_v39 = vpop.permute.xlu1 %723 }
 0x221   :  { %v762_v22 = vpop.permute.xlu2 %761  ;;  %v729_v3 = vadd.f32 %v1782_v40, %v724_v39  ;;  %v688_v39 = vrot.slane %v662_v44, 2  ;;  %v678_v37 = vadd.f32 %v676_v41, %v670_v48  ;;  %v679_v45 = vadd.f32 %v677_v49, %v671_v46 }
 0x223   :  { %v741_v24 = vadd.f32 %v2737_v35, %v729_v3  ;;  %v690_v35 = vsel %vm3390_vm0, %v688_v39, %v689_v28  ;;  %v691_v34 = vsel %vm3390_vm0, %v689_v28, %v688_v39 }
 0x224   :  { %1473 = vrot.lane.b32.xlu0 %v1469_v2, %s1933_s7  ;;  %1358 = vrot.lane.b32.xlu1 %v1354_v60, %s1930_s30  ;;  %v683_v2 = vsel %vm131_vm15, %v681_v43, %v680_v36  ;;  %v693_v54 = vsel %vm3412_vm5, %v691_v34, 0.0  ;;  %vm3416_vm5 = vcmp.le.s32.totalorder %v2508_v4, 2 }
 0x225   :  { %v684_v44 = vsel %vm3389_vm2, %v683_v2, 0.0  ;;  %v753_v40 = vadd.f32 %v748_v12, %v741_v24 }
 0x226   :  { %v686_v3 = vadd.f32 %v684_v44, %v678_v37 }
 0x228   :  { %v738_v31 = vpop.permute.xlu1 %737 }
 0x229   :  { %v2833_v55 = vpop.permute.xlu2 %1738  ;;  %v742_v10 = vadd.f32 %v738_v31, %v730_v42 }
 0x22b   :  { %v754_v60 = vadd.f32 %v2765_v13, %v742_v10  ;;  %v685_v13 = vsel %vm3410_vm10, %v682_v0, 0.0  ;;  %vm3414_vm10 = vcmp.le.s32.totalorder %v2158_v57, 2 }
 0x22c   :  { %v687_v23 = vadd.f32 %v685_v13, %v679_v45 }
 0x22d   :  { %v766_v52 = vadd.f32 %v762_v22, %v754_v60  ;;  %v692_v22 = vsel %vm3411_vm3, %v690_v35, 0.0  ;;  %vm3415_vm3 = vcmp.le.s32.totalorder %v2156_v56, 2 }
 0x22e   :  { %v694_v10 = vadd.f32 %v692_v22, %v686_v3  ;;  %v695_v28 = vadd.f32 %v693_v54, %v687_v23 }
 0x22f   :  { %v768_v36 = vrot.slane %v766_v52, 7  ;;  %v776_v31 = vrot.slane %v766_v52, 1  ;;  %v784_v41 = vrot.slane %v766_v52, 6  ;;  %v792_v49 = vrot.slane %v766_v52, 2 }
 0x230   :  { %v760_v51 = vpop.permute.xlu1 %759 }
 0x231   :  { %v765_v42 = vadd.f32 %v760_v51, %v753_v40  ;;  %v2855_v48 = vpop.permute.xlu2 %1748  ;;  %v696_v51 = vmul.f32 0.04, %v694_v10 }
 0x233   :  { %v767_v43 = vrot.slane %v765_v42, 7  ;;  %v775_v46 = vrot.slane %v765_v42, 1  ;;  %v783_v12 = vrot.slane %v765_v42, 6  ;;  %v791_v24 = vrot.slane %v765_v42, 2 }
 0x235   :  { %v769_v39 = vsel %vm101_vm13, %v767_v43, %v768_v36  ;;  %v770_v37 = vsel %vm101_vm13, %v768_v36, %v767_v43  ;;  %v777_v2 = vsel %vm116_vm14, %v775_v46, %v776_v31  ;;  %v778_v60 = vsel %vm116_vm14, %v776_v31, %v775_v46  ;;  %v1024_v46 = vpop.permute.xlu0 %1023 }
 0x236   :  { %v771_v45 = vsel %vm112_vm6, %v770_v37, 0.0  ;;  %v772_v0 = vsel %vm113_vm7, %v769_v39, 0.0  ;;  %v785_v40 = vsel %vm131_vm15, %v783_v12, %v784_v41  ;;  %v786_v3 = vsel %vm131_vm15, %v784_v41, %v783_v12 }
 0x237   :  { %v773_v44 = vadd.f32 %v771_v45, %v765_v42  ;;  %v774_v35 = vadd.f32 %v772_v0, %v766_v52  ;;  %v779_v13 = vsel %vm127_vm9, %v777_v2, 0.0  ;;  %v780_v34 = vsel %vm3391_vm1, %v778_v60, 0.0  ;;  %v2909_v45 = vld [vmem:[#allocation2 + $0x18] sm:$0xff] }
 0x238   :  { %v793_v42 = vsel %vm3390_vm0, %v791_v24, %v792_v49  ;;  %v794_v52 = vsel %vm3390_vm0, %v792_v49, %v791_v24  ;;  %v697_v43 = vmul.f32 0.04, %v695_v28  ;;  %v787_v12 = vsel %vm3389_vm2, %v786_v3, 0.0 }
 0x239   :  { %v781_v22 = vadd.f32 %v779_v13, %v773_v44  ;;  %v782_v36 = vadd.f32 %v780_v34, %v774_v35  ;;  %v1022_v31 = vpop.permute.xlu2 %1021  ;;  %v788_v54 = vsel %vm3413_vm8, %v785_v40, 0.0  ;;  %v700_v2 = vmul.f32 %v696_v51, %v696_v51 }
 0x23a   :  { %v1744_v23 = vpop.permute.xlu1 %1743  ;;  %v2891_v10 = vsel %vm61_vm4, %v1022_v31, %v2673_v25  ;;  %v1740_v60 = vunpack.i.l.bf16 %v2833_v55  ;;  %v795_v28 = vsel %vm3416_vm5, %v793_v42, 0.0  ;;  %vm3417_vm8 = vcmp.le.s32.totalorder %v2523_v17, 2  ;;  %vm3419_vm5 = vmmov %vm3414_vm10 }
 0x23b   :  { %v789_v41 = vadd.f32 %v787_v12, %v781_v22  ;;  %v790_v39 = vadd.f32 %v788_v54, %v782_v36  ;;  %v1039_v37 = vsel %vm3414_vm10, %v2891_v10, 0.0  ;;  %v1027_v24 = vsel %vm3415_vm3, %v2891_v10, 0.0 }
 0x23c   :  { %v796_v25 = vsel %vm3417_vm8, %v794_v52, 0.0  ;;  %1043 = vrot.lane.b32.xlu0 %v1039_v37, %s1931_s5  ;;  %1031 = vrot.lane.b32.xlu2 %v1027_v24, %s1932_s6  ;;  %v2907_v49 = vmul.f32 0.04, %v2661_v11  ;;  %v2913_v0 = vsel %vm61_vm4, %v1024_v46, %v2909_v45  ;;  %v2916_v40 = vmul.f32 0.04, %v2663_v61  ;;  %vm3420_vm8 = vmmov %vm3415_vm3 }
 0x23d   :  { %v797_v44 = vadd.f32 %v795_v28, %v789_v41  ;;  %v798_v35 = vadd.f32 %v796_v25, %v790_v39  ;;  %v701_v3 = vmul.f32 %v697_v43, %v697_v43  ;;  %v1741_v13 = vunpack.i.h.bf16 %v2833_v55 }
 0x23e   :  { %v1745_v34 = vunpack.i.l.bf16 %v1744_v23  ;;  %v698_v22 = vadd.f32 %v696_v51, %v2775_v27  ;;  %v699_v11 = vadd.f32 %v697_v43, %v2777_v29  ;;  %v702_v52 = vadd.f32 %v700_v2, %v2785_v15  ;;  %v2928_v43 = vld [vmem:[#allocation5 + $0x78] sm:$0xff] }
 0x23f   :  { %v799_v36 = vmul.f32 0.04, %v797_v44  ;;  %v800_v42 = vmul.f32 0.04, %v798_v35  ;;  %v929_v31 = vadd.f32 %v1740_v60, %v2047_v20  ;;  %v1746_v46 = vunpack.i.h.bf16 %v1744_v23  ;;  %v877_v44 = vld [vmem:[#allocation7] sm:$0xff] }
 0x240   :  { %v1052_v61 = vsel %vm88_vm11, %v2913_v0, 0.0  ;;  %v703_v27 = vadd.f32 %v701_v3, %v2787_v6  ;;  %v930_v29 = vadd.f32 %v1741_v13, %v2050_v21  ;;  %v1227_v21 = vsel %vm3415_vm3, %v2329_v62, 0.0  ;;  %v878_v3 = vld [vmem:[#allocation7 + $0x8] sm:$0xff] }
 0x241   :  { %v801_v54 = vadd.f32 %v799_v36, %v698_v22  ;;  %v802_v41 = vadd.f32 %v800_v42, %v699_v11  ;;  %v803_v55 = vmul.f32 %v799_v36, %v799_v36  ;;  %v804_v39 = vmul.f32 %v800_v42, %v800_v42 }
 0x242   :  { %v1430_v12 = vpop.permute.xlu1 %1429  ;;  %v941_v51 = vadd.f32 %v1745_v34, %v929_v31  ;;  %v875_v37 = vand.u32 2147483647, %v799_v36  ;;  %v876_v24 = vand.u32 2147483647, %v800_v42  ;;  %v942_v28 = vadd.f32 %v1746_v46, %v930_v29 }
 0x243   :  { %v2932_v20 = vsel %vm61_vm4, %v1430_v12, %v2928_v43  ;;  %v2934_v15 = vadd.f32 %v803_v55, %v702_v52  ;;  %v2939_v2 = vadd.f32 %v804_v39, %v703_v27  ;;  %v2947_v6 = vmul.f32 %v801_v54, %v2907_v49 }
 0x244   :  { %v1446_v23 = vsel %vm3414_vm10, %v2932_v20, 0.0  ;;  %1057 = vrot.lane.b32.xlu0 %v1052_v61, %s1930_s30  ;;  %v2950_v60 = vmul.f32 %v802_v41, %v2916_v40  ;;  %1231 = vrot.lane.b32.xlu2 %v1227_v21, %s1932_s6  ;;  %v1750_v25 = vunpack.i.l.bf16 %v2855_v48  ;;  %v1751_v35 = vunpack.i.h.bf16 %v2855_v48 }
 0x245   :  { %1451 = vrot.lane.b32.xlu1 %v1446_v23, %s1931_s5  ;;  %1757 = vrsqrt.f32 %v2934_v15  ;;  %v879_v13 = vmul.f32 %v875_v37, %v2613_v59  ;;  %v880_v34 = vmul.f32 %v876_v24, %v2630_v18  ;;  %v1457_v48 = vsel %vm88_vm11, %v2783_v33, 0.0 }
 0x246   :  { %1759 = vrsqrt.f32 %v2939_v2  ;;  %v953_v11 = vadd.f32 %v1750_v25, %v941_v51  ;;  %v954_v52 = vadd.f32 %v1751_v35, %v942_v28  ;;  %vm3418_vm4 = vcmask 130048  }
 0x247   :  { %v881_v31 = vadd.f32 %v879_v13, %v877_v44  ;;  %v882_v46 = vadd.f32 %v880_v34, %v878_v3  ;;  %v1137_v18 = vsel %vm3419_vm5, %v2649_v19, 0.0  ;;  %v1330_v41 = vsel %vm3420_vm8, %v2813_v63, 0.0  ;;  %vm3421_vm10 = vmmov %vm3418_vm4 }
 0x248   :  { %v833_v55 = vand.u32 2147483647, %v2907_v49  ;;  %vm3422_vm3 = vcmp.le.s32.totalorder %v2503_v5, 2  ;;  %vm3424_vm5 = vcmp.le.s32.totalorder %v2523_v17, 2  ;;  %vm3425_vm8 = vcmp.le.s32.totalorder %v2158_v57, 2 }
 0x249   :  { %884 = vst.msk [vmem:[#allocation7] sm:$0xff] %vm3418_vm4, %v881_v31  ;;  %vm3423_vm4 = vcmp.le.s32.totalorder %v2508_v4, 2 }
 0x24a   :  { %v1754_v22 = vpop.permute.xlu1 %1753  ;;  %885 = vst.msk [vmem:[#allocation7 + $0x8] sm:$0xff] %vm3421_vm10, %v882_v46  ;;  %vm814_vm10 = vcmp.eq.f32.partialorder %v2934_v15, inf }
 0x24b   :  { %v1756_v36 = vunpack.i.h.bf16 %v1754_v22  ;;  %v1755_v42 = vunpack.i.l.bf16 %v1754_v22  ;;  %v2959_v12 = vpop.eup %1757 }
 0x24c   :  { %v808_v59 = vmul.f32 %v2959_v12, %v2934_v15  ;;  %1142 = vrot.lane.b32.xlu2 %v1137_v18, %s1931_s5  ;;  %v1760_v29 = vpop.eup %1759 }
 0x24d   :  { %v965_v61 = vadd.f32 %v1755_v42, %v953_v11  ;;  %v966_v54 = vadd.f32 %v1756_v36, %v954_v52  ;;  %1461 = vrot.lane.b32.xlu1 %v1457_v48, %s1930_s30  ;;  %v820_v22 = vmul.f32 %v1760_v29, %v2939_v2  ;;  %v1470_v42 = vsel %vm95_vm12, %v2932_v20, 0.0 }
 0x24e   :  { %v809_v44 = vmul.f32 %v2959_v12, %v808_v59 }
 0x24f   :  { %v967_v33 = vrot.slane %v965_v61, 7  ;;  %v968_v39 = vrot.slane %v966_v54, 7  ;;  %v975_v27 = vrot.slane %v965_v61, 1  ;;  %v976_v51 = vrot.slane %v966_v54, 1 }
 0x250   :  { %v983_v23 = vrot.slane %v965_v61, 6  ;;  %v984_v37 = vrot.slane %v966_v54, 6  ;;  %v991_v24 = vrot.slane %v965_v61, 2  ;;  %v992_v25 = vrot.slane %v966_v54, 2 }
 0x251   :  { %v969_v21 = vsel %vm101_vm13, %v967_v33, %v968_v39  ;;  %v970_v28 = vsel %vm101_vm13, %v968_v39, %v967_v33  ;;  %v977_v3 = vsel %vm116_vm14, %v975_v27, %v976_v51  ;;  %v978_v13 = vsel %vm116_vm14, %v976_v51, %v975_v27  ;;  %v1129_v39 = vpop.permute.xlu0 %1128 }
 0x252   :  { %v971_v49 = vsel %vm112_vm6, %v970_v28, 0.0  ;;  %v972_v35 = vsel %vm113_vm7, %v969_v21, 0.0  ;;  %v2990_v34 = vpop.permute.xlu1 %1130  ;;  %v979_v52 = vsel %vm127_vm9, %v977_v3, 0.0  ;;  %v980_v31 = vsel %vm3391_vm1, %v978_v13, 0.0  ;;  %v1786_v3 = vld [vmem:[#allocation5 + $0x40] sm:$0xff] }
 0x253   :  { %v973_v11 = vadd.f32 %v971_v49, %v965_v61  ;;  %v974_v36 = vadd.f32 %v972_v35, %v966_v54  ;;  %v985_v46 = vsel %vm131_vm15, %v983_v23, %v984_v37  ;;  %v986_v48 = vsel %vm131_vm15, %v984_v37, %v983_v23 }
 0x254   :  { %v993_v61 = vsel %vm3390_vm0, %v991_v24, %v992_v25  ;;  %v994_v54 = vsel %vm3390_vm0, %v992_v25, %v991_v24  ;;  %v834_v33 = vand.u32 2147483647, %v2916_v40  ;;  %v987_v27 = vsel %vm3389_vm2, %v986_v48, 0.0  ;;  %1334 = vrot.lane.b32.xlu2 %v1330_v41, %s1932_s6 }
 0x255   :  { %v981_v59 = vadd.f32 %v979_v52, %v973_v11  ;;  %v982_v18 = vadd.f32 %v980_v31, %v974_v36  ;;  %v988_v51 = vsel %vm3422_vm3, %v985_v46, 0.0  ;;  %1475 = vrot.lane.b32.xlu1 %v1470_v42, %s1933_s7  ;;  %v810_v23 = vmul.f32 0.5, %v809_v44 }
 0x256   :  { %v1149_v24 = vsel %vm88_vm11, %v2649_v19, 0.0  ;;  %v821_v28 = vmul.f32 %v1760_v29, %v820_v22  ;;  %v835_v40 = vmul.f32 2.0, %v833_v55  ;;  %v995_v25 = vsel %vm3423_vm4, %v993_v61, 0.0 }
 0x257   :  { %v989_v37 = vadd.f32 %v987_v27, %v981_v59  ;;  %v990_v21 = vadd.f32 %v988_v51, %v982_v18  ;;  %v996_v49 = vsel %vm3424_vm5, %v994_v54, 0.0  ;;  %v811_v35 = vsub.f32 1.5, %v810_v23 }
 0x258   :  { %v1134_v13 = vadd.f32 %v1786_v3, %v1129_v39  ;;  %v822_v44 = vmul.f32 0.5, %v821_v28  ;;  %v836_v42 = vmul.f32 2.0, %v834_v33  ;;  %v1040_v19 = vsel %vm3425_vm8, %v2913_v0, 0.0  ;;  %v1606_v28 = vld [vmem:[#allocation10 + $0x8] sm:$0xff] }
 0x259   :  { %v997_v11 = vadd.f32 %v995_v25, %v989_v37  ;;  %v998_v36 = vadd.f32 %v996_v49, %v990_v21  ;;  %v812_v55 = vmul.f32 %v2959_v12, %v811_v35  ;;  %v817_v59 = vand.u32 2147483648, %v2934_v15 }
 0x25a   :  { %v1141_v41 = vpop.permute.xlu1 %1140  ;;  %v823_v52 = vsub.f32 1.5, %v822_v44  ;;  %vm816_vm2 = vcmp.eq.f32.partialorder %v2934_v15, 0.0  ;;  %v837_v39 = vmax.f32 %v835_v40, 1e-08  ;;  %v838_v25 = vmax.f32 %v836_v42, 1e-08 }
 0x25b   :  { %v3027_v22 = vadd.f32 %v1141_v41, %v1134_v13  ;;  %vm999_vm3 = vcmp.gt.f32.partialorder %v997_v11, 0.0  ;;  %vm1000_vm4 = vcmp.gt.f32.partialorder %v998_v36, 0.0  ;;  %v813_v31 = vmul.f32 %v812_v55, %v2934_v15 }
 0x25c   :  { %v1676_v46 = vsel %vm999_vm3, 1.0, %v3393_v8  ;;  %v1677_v48 = vsel %vm1000_vm4, 1.0, %v3393_v8  ;;  %vm1005_vm5 = vcmp.ge.f32.partialorder %v997_v11, %v2571_v30  ;;  %v824_v18 = vmul.f32 %v1760_v29, %v823_v52  ;;  %1154 = vrot.lane.b32.xlu2 %v1149_v24, %s1930_s30 }
 0x25d   :  { %vm1006_vm8 = vcmp.ge.f32.partialorder %v998_v36, %v2577_v50  ;;  %v1678_v12 = vsel %vm1005_vm5, 1.0, %v3393_v8  ;;  %1045 = vrot.lane.b32.xlu1 %v1040_v19, %s1931_s5  ;;  %v815_v61 = vsel %vm814_vm10, %v2934_v15, %v813_v31  ;;  %vm826_vm3 = vcmp.eq.f32.partialorder %v2939_v2, inf  ;;  %v1605_v15 = vld [vmem:[#allocation10] sm:$0xff] }
 0x25e   :  { %v1679_v54 = vsel %vm1006_vm8, 1.0, %v3393_v8  ;;  %v1011_v33 = vsub.f32 %v1676_v46, %v1678_v12  ;;  %v818_v30 = vsel %vm816_vm2, %v817_v59, %v815_v61  ;;  %v825_v27 = vmul.f32 %v824_v18, %v2939_v2 }
 0x25f   :  { %v1012_v29 = vsub.f32 %v1677_v48, %v1679_v54  ;;  %v829_v50 = vand.u32 2147483648, %v2939_v2  ;;  %v831_v51 = vmax.f32 %v818_v30, 1e-08  ;;  %vm828_vm10 = vcmp.eq.f32.partialorder %v2939_v2, 0.0 }
 0x260   :  { %v3044_v23 = vadd.f32 1e-10, %v1011_v33  ;;  %v827_v37 = vsel %vm826_vm3, %v2939_v2, %v825_v27  ;;  %vm3426_vm2 = vcmask 130048   ;;  %v1063_v3 = vsel %vm95_vm12, %v2891_v10, 0.0 }
 0x261   :  { %v3048_v8 = vadd.f32 1e-10, %v1012_v29  ;;  %v830_v21 = vsel %vm828_vm10, %v829_v50, %v827_v37  ;;  %v841_v24 = vmul.f32 %v837_v39, %v831_v51  ;;  %vm3427_vm4 = vmmov %vm3426_vm2  ;;  %vm3428_vm5 = vcmp.le.s32.totalorder %v2158_v57, 2  ;;  %v886_v50 = vld [vmem:[#allocation8] sm:$0xff] }
 0x262   :  { %v1607_v40 = vadd.f32 %v1605_v15, %v3044_v23  ;;  %v832_v49 = vmax.f32 %v830_v21, 1e-08  ;;  %v1342_v13 = vsel %vm3428_vm5, %v2813_v63, 0.0  ;;  %vm3429_vm8 = vcmp.le.s32.totalorder %v2156_v56, 2  ;;  %v887_v21 = vld [vmem:[#allocation8 + $0x8] sm:$0xff] }
 0x263   :  { %v1608_v35 = vadd.f32 %v1606_v28, %v3048_v8  ;;  %1761 = vrcp.f32 %v841_v24  ;;  %v1434_v41 = vsel %vm3429_vm8, %v2932_v20, 0.0  ;;  %v854_v55 = vand.u32 2147483648, %v841_v24 }
 0x264   :  { %1609 = vst.msk [vmem:[#allocation10] sm:$0xff] %vm3426_vm2, %v1607_v40  ;;  %v842_v2 = vmul.f32 %v838_v25, %v832_v49  ;;  %1346 = vrot.lane.b32.xlu2 %v1342_v13, %s1931_s5  ;;  %v852_v31 = vand.u32 2147483647, %v841_v24  ;;  %vm848_vm10 = vweird.f32 %v841_v24  ;;  %v1263_v39 = vsel %vm95_vm12, %v2329_v62, 0.0 }
 0x265   :  { %1610 = vst.msk [vmem:[#allocation10 + $0x8] sm:$0xff] %vm3427_vm4, %v1608_v35  ;;  %1067 = vrot.lane.b32.xlu1 %v1063_v3, %s1933_s7  ;;  %v855_v18 = vor.u32 1.1754944e-38, %v854_v55  ;;  %v1355_v62 = vsel %vm88_vm11, %v2339_v16, 0.0  ;;  %v1458_v25 = vsel %vm88_vm11, %v2932_v20, 0.0  ;;  %v3090_v16 = vpop.permute.xlu1 %1245  ;;  %v1051_v20 = vsel %vm88_vm11, %v2891_v10, 0.0  ;;  %v1787_v10 = vld [vmem:[#allocation5 + $0x48] sm:$0xff] }
 0x266   :  { %1763 = vrcp.f32 %v842_v2  ;;  %v869_v59 = vand.u32 2147483648, %v842_v2  ;;  %v867_v12 = vand.u32 2147483647, %v842_v2  ;;  %vm853_vm5 = vcmp.eq.f32.partialorder %v852_v31, 8.507059e+37 }
 0x267   :  { %vm863_vm8 = vweird.f32 %v842_v2  ;;  %v1135_v55 = vadd.f32 %v1787_v10, %v2990_v34  ;;  %vm3433_vm11 = vcmp.le.s32.totalorder %v2488_v1, 2  ;;  %v1788_v10 = vld [vmem:[#allocation5 + $0x58] sm:$0xff] }
 0x268   :  { %v870_v29 = vor.u32 1.1754944e-38, %v869_v59  ;;  %vm868_vm1 = vcmp.eq.f32.partialorder %v867_v12, 8.507059e+37 }
 0x269   :  { %v1762_v44 = vpop.eup %1761 }
 0x26a   :  { %v844_v11 = vmul.f32 %v1762_v44, %v841_v24  ;;  %vm849_vm3 = vweird.f32 %v1762_v44 }
 0x26b   :  { %vm850_vm4 = vmor %vm848_vm10, %vm849_vm3  ;;  %vm3430_vm3 = vcmask 130048  }
 0x26c   :  { %v1764_v36 = vpop.eup %1763  ;;  %v845_v42 = vsub.f32 1.0, %v844_v11  ;;  %1439 = vrot.lane.b32.xlu2 %v1434_v41, %s1932_s6 }
 0x26d   :  { %v859_v19 = vmul.f32 %v1764_v36, %v842_v2  ;;  %vm864_vm2 = vweird.f32 %v1764_v36  ;;  %v1153_v2 = vpop.permute.xlu1 %1152 }
 0x26e   :  { %v846_v52 = vmul.f32 %v1762_v44, %v845_v42  ;;  %vm865_vm0 = vmor %vm863_vm8, %vm864_vm2  ;;  %v1158_v58 = vadd.f32 %v1153_v2, %v3027_v22  ;;  %vm3436_vm2 = vcmp.le.s32.totalorder %v2500_v14, 2  ;;  %vm3439_vm8 = vcmp.le.s32.totalorder %v2523_v17, 2 }
 0x26f   :  { %v860_v57 = vsub.f32 1.0, %v859_v19 }
 0x270   :  { %v847_v46 = vadd.f32 %v1762_v44, %v846_v52 }
 0x271   :  { %v861_v48 = vmul.f32 %v1764_v36, %v860_v57 }
 0x272   :  { %v851_v61 = vsel %vm850_vm4, %v1762_v44, %v847_v46  ;;  %vm3437_vm4 = vcmp.le.s32.totalorder %v2503_v5, 2 }
 0x273   :  { %v862_v54 = vadd.f32 %v1764_v36, %v861_v48  ;;  %v856_v33 = vsel %vm853_vm5, %v855_v18, %v851_v61  ;;  %vm3438_vm5 = vcmp.le.s32.totalorder %v2508_v4, 2 }
 0x274   :  { %v857_v30 = vmul.f32 %v856_v33, %v2947_v6  ;;  %1267 = vrot.lane.b32.xlu2 %v1263_v39, %s1933_s7  ;;  %v3078_v6 = vpop.permute.xlu0 %1233 }
 0x275   :  { %v866_v27 = vsel %vm865_vm0, %v1764_v36, %v862_v54  ;;  %vm3431_vm0 = vmmov %vm3430_vm3  ;;  %v1258_v11 = vpop.permute.xlu1 %1257 }
 0x276   :  { %v871_v51 = vsel %vm868_vm1, %v870_v29, %v866_v27  ;;  %v873_v37 = vsub.f32 1.0, %v857_v30  ;;  %vm3432_vm1 = vcmp.le.s32.totalorder %v2156_v56, 2  ;;  %v1064_v56 = vsel %vm95_vm12, %v2913_v0, 0.0 }
 0x277   :  { %v872_v15 = vmul.f32 %v871_v51, %v2950_v60  ;;  %v1366_v60 = vsel %vm95_vm12, %v2813_v63, 0.0  ;;  %v1028_v35 = vsel %vm3432_vm1, %v2913_v0, 0.0  ;;  %vm3434_vm12 = vcmp.lt.s32.totalorder %v2307_v9, 6 }
 0x278   :  { %v888_v24 = vadd.f32 %v886_v50, %v873_v37  ;;  %vm3435_vm10 = vmmov %vm3434_vm12 }
 0x279   :  { %v874_v28 = vsub.f32 1.0, %v872_v15 }
 0x27a   :  { %890 = vst.msk [vmem:[#allocation8] sm:$0xff] %vm3430_vm3, %v888_v24  ;;  %vm3440_vm3 = vmmov %vm3433_vm11 }
 0x27b   :  { %v889_v40 = vadd.f32 %v887_v21, %v874_v28 }
 0x27c   :  { %1360 = vrot.lane.b32.xlu2 %v1355_v62, %s1930_s30  ;;  %v3088_v49 = vpop.permute.xlu0 %1243 }
 0x27d   :  { %891 = vst.msk [vmem:[#allocation8 + $0x8] sm:$0xff] %vm3431_vm0, %v889_v40  ;;  %vm3441_vm0 = vmmov %vm3435_vm10 }
 0x27e   :  { %vm3442_vm1 = vmmov %vm3441_vm0 }
 0x284   :  { %1370 = vrot.lane.b32.xlu2 %v1366_v60, %s1933_s7  ;;  %v3098_v63 = vpop.permute.xlu0 %1336 }
 0x286   :  { %v3110_v41 = vpop.permute.xlu1 %1437 }
 0x28c   :  { %1463 = vrot.lane.b32.xlu2 %v1458_v25, %s1930_s30  ;;  %v1256_v44 = vpop.permute.xlu0 %1255 }
 0x28e   :  { %v1167_v46 = vpop.permute.xlu1 %1166 }
 0x294   :  { %1033 = vrot.lane.b32.xlu2 %v1028_v35, %s1932_s6  ;;  %v3108_v42 = vpop.permute.xlu0 %1348 }
 0x296   :  { %v3096_v3 = vpop.permute.xlu2 %1031 }
 0x29c   :  { %1055 = vrot.lane.b32.xlu2 %v1051_v20, %s1930_s30  ;;  %v1165_v52 = vpop.permute.xlu0 %1164 }
 0x29d   :  { %v1170_v57 = vadd.f32 %v1165_v52, %v1158_v58 }
 0x29e   :  { %v1232_v13 = vpop.permute.xlu2 %1231 }
 0x29f   :  { %v1172_v59 = vrot.slane %v1170_v57, 7  ;;  %v1180_v18 = vrot.slane %v1170_v57, 1  ;;  %v1188_v33 = vrot.slane %v1170_v57, 6  ;;  %v1196_v29 = vrot.slane %v1170_v57, 2 }
 0x2a4   :  { %1069 = vrot.lane.b32.xlu2 %v1064_v56, %s1933_s7 }
 0x2a6   :  { %v1143_v36 = vpop.permute.xlu2 %1142 }
 0x2a7   :  { %v1147_v31 = vadd.f32 %v1143_v36, %v1135_v55  ;;  %v1238_v55 = vadd.f32 %v1788_v10, %v3078_v6 }
 0x2ae   :  { %v3112_v19 = vpop.permute.xlu2 %1334 }
 0x2b6   :  { %v1155_v32 = vpop.permute.xlu2 %1154 }
 0x2b7   :  { %v1159_v0 = vadd.f32 %v1155_v32, %v1147_v31 }
 0x2b9   :  { %v1171_v48 = vadd.f32 %v1167_v46, %v1159_v0 }
 0x2bb   :  { %v1173_v12 = vrot.slane %v1171_v48, 7  ;;  %v1181_v61 = vrot.slane %v1171_v48, 1  ;;  %v1189_v54 = vrot.slane %v1171_v48, 6  ;;  %v1197_v39 = vrot.slane %v1171_v48, 2 }
 0x2bd   :  { %v1174_v22 = vsel %vm101_vm13, %v1172_v59, %v1173_v12  ;;  %v1175_v34 = vsel %vm101_vm13, %v1173_v12, %v1172_v59  ;;  %v1182_v30 = vsel %vm116_vm14, %v1180_v18, %v1181_v61  ;;  %v1183_v27 = vsel %vm116_vm14, %v1181_v61, %v1180_v18  ;;  %v1270_v61 = vpop.permute.xlu0 %1269 }
 0x2be   :  { %v1176_v50 = vsel %vm112_vm6, %v1175_v34, 0.0  ;;  %v1177_v51 = vsel %vm113_vm7, %v1174_v22, 0.0  ;;  %v3128_v37 = vpop.permute.xlu2 %1346  ;;  %v1190_v24 = vsel %vm131_vm15, %v1188_v33, %v1189_v54  ;;  %v1191_v28 = vsel %vm131_vm15, %v1189_v54, %v1188_v33  ;;  %v1359_v54 = vpop.permute.xlu1 %1358 }
 0x2bf   :  { %v1178_v15 = vadd.f32 %v1176_v50, %v1170_v57  ;;  %v1179_v21 = vadd.f32 %v1177_v51, %v1171_v48  ;;  %v1184_v40 = vsel %vm127_vm9, %v1182_v30, 0.0  ;;  %v1185_v62 = vsel %vm3433_vm11, %v1183_v27, 0.0  ;;  %v1789_v57 = vld [vmem:[#allocation5 + $0x50] sm:$0xff]  ;;  %vm3443_vm11 = vmmov %vm3436_vm2 }
 0x2c0   :  { %v1198_v60 = vsel %vm3434_vm12, %v1196_v29, %v1197_v39  ;;  %v1199_v25 = vsel %vm3435_vm10, %v1197_v39, %v1196_v29  ;;  %v1192_v2 = vsel %vm3436_vm2, %v1191_v28, 0.0  ;;  %v1193_v56 = vsel %vm3437_vm4, %v1190_v24, 0.0  ;;  %v1790_v24 = vld [vmem:[#allocation5 + $0x68] sm:$0xff]  ;;  %vm3444_vm12 = vmmov %vm3437_vm4 }
 0x2c1   :  { %v1186_v35 = vadd.f32 %v1184_v40, %v1178_v15  ;;  %v1187_v20 = vadd.f32 %v1185_v62, %v1179_v21  ;;  %v1200_v52 = vsel %vm3438_vm5, %v1198_v60, 0.0  ;;  %v1201_v31 = vsel %vm3439_vm8, %v1199_v25, 0.0  ;;  %vm3445_vm10 = vmmov %vm3438_vm5 }
 0x2c2   :  { %v1237_v32 = vadd.f32 %v1789_v57, %v1232_v13  ;;  %v1250_v48 = vadd.f32 %v3090_v16, %v1238_v55  ;;  %v1341_v28 = vadd.f32 %v1790_v24, %v3098_v63  ;;  %v1340_v63 = vadd.f32 %v2808_v7, %v3112_v19  ;;  %vm3446_vm2 = vmmov %vm3439_vm8 }
 0x2c3   :  { %v1194_v36 = vadd.f32 %v1192_v2, %v1186_v35  ;;  %v1195_v58 = vadd.f32 %v1193_v56, %v1187_v20  ;;  %vm3447_vm4 = vmmov %vm3440_vm3 }
 0x2c4   :  { %v1262_v18 = vadd.f32 %v1258_v11, %v1250_v48  ;;  %v1249_v12 = vadd.f32 %v3088_v49, %v1237_v32  ;;  %v1353_v56 = vadd.f32 %v3108_v42, %v1341_v28  ;;  %v1352_v19 = vadd.f32 %v3128_v37, %v1340_v63  ;;  %vm3448_vm5 = vmmov %vm3443_vm11 }
 0x2c5   :  { %v1202_v0 = vadd.f32 %v1200_v52, %v1194_v36  ;;  %v1203_v46 = vadd.f32 %v1201_v31, %v1195_v58  ;;  %v1450_v51 = vpop.permute.xlu0 %1449  ;;  %vm3449_vm8 = vmmov %vm3444_vm12 }
 0x2c6   :  { %v3152_v59 = vpop.permute.xlu2 %1439  ;;  %v1274_v6 = vadd.f32 %v1270_v61, %v1262_v18  ;;  %v1261_v33 = vadd.f32 %v1256_v44, %v1249_v12  ;;  %v3155_v16 = vpop.permute.xlu1 %1451 }
 0x2c7   :  { %v1204_v12 = vmul.f32 0.04, %v1202_v0  ;;  %v1205_v61 = vmul.f32 0.04, %v1203_v46  ;;  %v1364_v0 = vadd.f32 %v1359_v54, %v1352_v19  ;;  %v1444_v54 = vadd.f32 %v2928_v43, %v3152_v59 }
 0x2c8   :  { %v1276_v34 = vrot.slane %v1274_v6, 7  ;;  %v1284_v30 = vrot.slane %v1274_v6, 1  ;;  %v1292_v50 = vrot.slane %v1274_v6, 6  ;;  %v1300_v40 = vrot.slane %v1274_v6, 2 }
 0x2ce   :  { %v1268_v39 = vpop.permute.xlu2 %1267 }
 0x2cf   :  { %v1273_v22 = vadd.f32 %v1268_v39, %v1261_v33 }
 0x2d1   :  { %v1275_v27 = vrot.slane %v1273_v22, 7  ;;  %v1283_v29 = vrot.slane %v1273_v22, 1  ;;  %v1291_v13 = vrot.slane %v1273_v22, 6  ;;  %v1299_v15 = vrot.slane %v1273_v22, 2 }
 0x2d3   :  { %v1277_v11 = vsel %vm101_vm13, %v1275_v27, %v1276_v34  ;;  %v1278_v49 = vsel %vm101_vm13, %v1276_v34, %v1275_v27  ;;  %v1285_v44 = vsel %vm116_vm14, %v1283_v29, %v1284_v30  ;;  %v1286_v21 = vsel %vm116_vm14, %v1284_v30, %v1283_v29  ;;  %v1373_v34 = vpop.permute.xlu0 %1372  ;;  %v1462_v27 = vpop.permute.xlu1 %1461 }
 0x2d4   :  { %v1279_v62 = vsel %vm112_vm6, %v1278_v49, 0.0  ;;  %v1280_v60 = vsel %vm113_vm7, %v1277_v11, 0.0  ;;  %v1293_v20 = vsel %vm131_vm15, %v1291_v13, %v1292_v50  ;;  %v1294_v2 = vsel %vm131_vm15, %v1292_v50, %v1291_v13 }
 0x2d5   :  { %v1281_v25 = vadd.f32 %v1279_v62, %v1273_v22  ;;  %v1282_v35 = vadd.f32 %v1280_v60, %v1274_v6  ;;  %v1287_v36 = vsel %vm127_vm9, %v1285_v44, 0.0  ;;  %v1288_v58 = vsel %vm3440_vm3, %v1286_v21, 0.0  ;;  %vm3450_vm3 = vmmov %vm3441_vm0 }
 0x2d6   :  { %v1361_v10 = vpop.permute.xlu2 %1360  ;;  %v1301_v31 = vsel %vm3441_vm0, %v1299_v15, %v1300_v40  ;;  %v1302_v57 = vsel %vm3442_vm1, %v1300_v40, %v1299_v15  ;;  %v1295_v42 = vsel %vm3443_vm11, %v1294_v2, 0.0  ;;  %v1296_v7 = vsel %vm3444_vm12, %v1293_v20, 0.0  ;;  %vm3451_vm1 = vmmov %vm3445_vm10 }
 0x2d7   :  { %v1289_v55 = vadd.f32 %v1287_v36, %v1281_v25  ;;  %v1290_v52 = vadd.f32 %v1288_v58, %v1282_v35  ;;  %v1365_v18 = vadd.f32 %v1361_v10, %v1353_v56  ;;  %v1303_v6 = vsel %vm3445_vm10, %v1301_v31, 0.0  ;;  %vm3452_vm11 = vmmov %vm3446_vm2 }
 0x2d8   :  { %v1304_v33 = vsel %vm3446_vm2, %v1302_v57, 0.0  ;;  %v1443_v30 = vadd.f32 %v2779_v38, %v3110_v41  ;;  %v1208_v50 = vmul.f32 %v1204_v12, %v1204_v12  ;;  %v1209_v15 = vmul.f32 %v1205_v61, %v1205_v61  ;;  %vm3453_vm12 = vmmov %vm3447_vm4 }
 0x2d9   :  { %v1297_v32 = vadd.f32 %v1295_v42, %v1289_v55  ;;  %v1298_v48 = vadd.f32 %v1296_v7, %v1290_v52  ;;  %v1377_v13 = vadd.f32 %v1373_v34, %v1365_v18  ;;  %vm3454_vm10 = vmmov %vm3448_vm5 }
 0x2da   :  { %v1455_v28 = vadd.f32 %v1450_v51, %v1443_v30  ;;  %vm3455_vm2 = vmmov %vm3449_vm8 }
 0x2db   :  { %v1305_v39 = vadd.f32 %v1303_v6, %v1297_v32  ;;  %v1306_v22 = vadd.f32 %v1304_v33, %v1298_v48  ;;  %v1379_v38 = vrot.slane %v1377_v13, 7  ;;  %v1387_v41 = vrot.slane %v1377_v13, 1  ;;  %v1474_v42 = vpop.permute.xlu0 %1473  ;;  %v1476_v7 = vpop.permute.xlu1 %1475 }
 0x2dc   :  { %v1467_v20 = vadd.f32 %v1462_v27, %v1455_v28  ;;  %v1395_v2 = vrot.slane %v1377_v13, 6  ;;  %v1456_v48 = vadd.f32 %v3155_v16, %v1444_v54 }
 0x2dd   :  { %v1307_v29 = vmul.f32 0.04, %v1305_v39  ;;  %v1308_v37 = vmul.f32 0.04, %v1306_v22 }
 0x2de   :  { %v1371_v46 = vpop.permute.xlu2 %1370  ;;  %v1479_v18 = vadd.f32 %v1474_v42, %v1467_v20 }
 0x2df   :  { %v3196_v11 = vadd.f32 %v1307_v29, %v1204_v12  ;;  %v3198_v49 = vadd.f32 %v1308_v37, %v1205_v61  ;;  %v1311_v44 = vmul.f32 %v1307_v29, %v1307_v29  ;;  %v1312_v21 = vmul.f32 %v1308_v37, %v1308_v37 }
 0x2e0   :  { %v1376_v24 = vadd.f32 %v1371_v46, %v1364_v0  ;;  %v1403_v12 = vrot.slane %v1377_v13, 2  ;;  %v1481_v37 = vrot.slane %v1479_v18, 7 }
 0x2e1   :  { %v3200_v40 = vadd.f32 %v1311_v44, %v1208_v50  ;;  %v3202_v62 = vadd.f32 %v1312_v21, %v1209_v15 }
 0x2e2   :  { %v1378_v60 = vrot.slane %v1376_v24, 7  ;;  %v1386_v25 = vrot.slane %v1376_v24, 1  ;;  %v1394_v35 = vrot.slane %v1376_v24, 6  ;;  %v1402_v43 = vrot.slane %v1376_v24, 2 }
 0x2e4   :  { %v1380_v56 = vsel %vm101_vm13, %v1378_v60, %v1379_v38  ;;  %v1381_v51 = vsel %vm101_vm13, %v1379_v38, %v1378_v60  ;;  %v1388_v63 = vsel %vm116_vm14, %v1386_v25, %v1387_v41  ;;  %v1389_v36 = vsel %vm116_vm14, %v1387_v41, %v1386_v25 }
 0x2e5   :  { %v1382_v58 = vsel %vm112_vm6, %v1381_v51, 0.0  ;;  %v1383_v10 = vsel %vm113_vm7, %v1380_v56, 0.0  ;;  %v1396_v52 = vsel %vm131_vm15, %v1394_v35, %v1395_v2  ;;  %v1397_v31 = vsel %vm131_vm15, %v1395_v2, %v1394_v35  ;;  %v1791_v56 = vld [vmem:[#allocation2 + $0x10] sm:$0xff] }
 0x2e6   :  { %v1384_v59 = vadd.f32 %v1382_v58, %v1376_v24  ;;  %v1385_v55 = vadd.f32 %v1383_v10, %v1377_v13  ;;  %v1464_v57 = vpop.permute.xlu2 %1463  ;;  %v1390_v19 = vsel %vm127_vm9, %v1388_v63, 0.0  ;;  %v1391_v32 = vsel %vm3447_vm4, %v1389_v36, 0.0  ;;  %v1046_v36 = vpop.permute.xlu1 %1045  ;;  %vm3456_vm4 = vmmov %vm3441_vm0 }
 0x2e7   :  { %v1398_v33 = vsel %vm3448_vm5, %v1397_v31, 0.0  ;;  %v1399_v39 = vsel %vm3449_vm8, %v1396_v52, 0.0  ;;  %v1468_v22 = vadd.f32 %v1464_v57, %v1456_v48  ;;  %v1404_v27 = vsel %vm3450_vm3, %v1402_v43, %v1403_v12  ;;  %vm3457_vm5 = vmmov %vm3441_vm0 }
 0x2e8   :  { %v1392_v61 = vadd.f32 %v1390_v19, %v1384_v59  ;;  %v1393_v6 = vadd.f32 %v1391_v32, %v1385_v55  ;;  %v1405_v29 = vsel %vm3441_vm0, %v1403_v12, %v1402_v43  ;;  %v1489_v13 = vrot.slane %v1479_v18, 1  ;;  %v1044_v43 = vpop.permute.xlu0 %1043  ;;  %vm3458_vm8 = vmmov %vm3451_vm1 }
 0x2e9   :  { %v1480_v16 = vadd.f32 %v1476_v7, %v1468_v22  ;;  %v1406_v50 = vsel %vm3451_vm1, %v1404_v27, 0.0  ;;  %v1407_v15 = vsel %vm3452_vm11, %v1405_v29, 0.0  ;;  %v1497_v35 = vrot.slane %v1479_v18, 6  ;;  %vm3459_vm3 = vmmov %vm3452_vm11 }
 0x2ea   :  { %v1400_v34 = vadd.f32 %v1398_v33, %v1392_v61  ;;  %v1401_v30 = vadd.f32 %v1399_v39, %v1393_v6  ;;  %v1037_v51 = vadd.f32 %v1791_v56, %v3096_v3  ;;  %v1505_v63 = vrot.slane %v1479_v18, 2 }
 0x2eb   :  { %v1482_v0 = vrot.slane %v1480_v16, 7  ;;  %v1490_v46 = vrot.slane %v1480_v16, 1  ;;  %v1498_v24 = vrot.slane %v1480_v16, 6  ;;  %v1506_v2 = vrot.slane %v1480_v16, 2 }
 0x2ec   :  { %v1408_v44 = vadd.f32 %v1406_v50, %v1400_v34  ;;  %v1409_v21 = vadd.f32 %v1407_v15, %v1401_v30  ;;  %v1049_v33 = vadd.f32 %v1044_v43, %v1037_v51 }
 0x2ed   :  { %v1483_v38 = vsel %vm101_vm13, %v1481_v37, %v1482_v0  ;;  %v1484_v41 = vsel %vm101_vm13, %v1482_v0, %v1481_v37  ;;  %v1491_v60 = vsel %vm116_vm14, %v1489_v13, %v1490_v46  ;;  %v1492_v25 = vsel %vm116_vm14, %v1490_v46, %v1489_v13 }
 0x2ee   :  { %v1034_v28 = vpop.permute.xlu2 %1033  ;;  %v1485_v20 = vsel %vm112_vm6, %v1484_v41, 0.0  ;;  %v1486_v54 = vsel %vm113_vm7, %v1483_v38, 0.0  ;;  %v1493_v59 = vsel %vm127_vm9, %v1491_v60, 0.0  ;;  %v1494_v55 = vsel %vm3453_vm12, %v1492_v25, 0.0  ;;  %v1068_v15 = vpop.permute.xlu1 %1067 }
 0x2ef   :  { %v1487_v58 = vadd.f32 %v1485_v20, %v1479_v18  ;;  %v1488_v10 = vadd.f32 %v1486_v54, %v1480_v16  ;;  %v1499_v52 = vsel %vm131_vm15, %v1497_v35, %v1498_v24  ;;  %v1500_v31 = vsel %vm131_vm15, %v1498_v24, %v1497_v35 }
 0x2f0   :  { %v3260_v57 = vmul.f32 0.04, %v1408_v44  ;;  %v3262_v3 = vmul.f32 0.04, %v1409_v21  ;;  %v1501_v19 = vsel %vm3454_vm10, %v1500_v31, 0.0  ;;  %v1502_v32 = vsel %vm3455_vm2, %v1499_v52, 0.0  ;;  %v1058_v24 = vpop.permute.xlu0 %1057 }
 0x2f1   :  { %v1495_v42 = vadd.f32 %v1493_v59, %v1487_v58  ;;  %v1496_v7 = vadd.f32 %v1494_v55, %v1488_v10  ;;  %v1507_v48 = vsel %vm3456_vm4, %v1505_v63, %v1506_v2  ;;  %v1508_v18 = vsel %vm3457_vm5, %v1506_v2, %v1505_v63 }
 0x2f2   :  { %v1038_v6 = vadd.f32 %v2909_v45, %v1034_v28  ;;  %v1509_v39 = vsel %vm3458_vm8, %v1507_v48, 0.0  ;;  %v1510_v22 = vsel %vm3459_vm3, %v1508_v18, 0.0  ;;  %v1414_v30 = vmul.f32 %v3260_v57, %v3260_v57 }
 0x2f3   :  { %v1503_v12 = vadd.f32 %v1501_v19, %v1495_v42  ;;  %v1504_v61 = vadd.f32 %v1502_v32, %v1496_v7  ;;  %v1415_v27 = vmul.f32 %v3262_v3, %v3262_v3 }
 0x2f4   :  { %v1050_v50 = vadd.f32 %v1046_v36, %v1038_v6  ;;  %v1416_v0 = vadd.f32 %v1414_v30, %v3200_v40 }
 0x2f5   :  { %v1511_v29 = vadd.f32 %v1509_v39, %v1503_v12  ;;  %v1512_v16 = vadd.f32 %v1510_v22, %v1504_v61  ;;  %v1417_v46 = vadd.f32 %v1415_v27, %v3202_v62  ;;  %v1592_v39 = vld [vmem:[#allocation7 + $0x8] sm:$0xff] }
 0x2f6   :  { %v1056_v34 = vpop.permute.xlu2 %1055  ;;  %v1062_v60 = vadd.f32 %v1058_v24, %v1050_v50 }
 0x2f7   :  { %v1061_v37 = vadd.f32 %v1056_v34, %v1049_v33  ;;  %v3281_v13 = vmul.f32 0.04, %v1511_v29  ;;  %v3283_v45 = vmul.f32 0.04, %v1512_v16  ;;  %v1591_v33 = vld [vmem:[#allocation7] sm:$0xff] }
 0x2f9   :  { %v1517_v44 = vmul.f32 %v3281_v13, %v3281_v13  ;;  %v1518_v21 = vmul.f32 %v3283_v45, %v3283_v45  ;;  %v1073_v28 = vadd.f32 %v1068_v15, %v1061_v37  ;;  %v1589_v62 = vand.u32 2147483647, %v3281_v13 }
 0x2fa   :  { %v1590_v20 = vand.u32 2147483647, %v3283_v45 }
 0x2fb   :  { %v3291_v38 = vadd.f32 %v1517_v44, %v1416_v0  ;;  %v3293_v41 = vadd.f32 %v1518_v21, %v1417_v46  ;;  %v1075_v40 = vrot.slane %v1073_v28, 7  ;;  %v1083_v54 = vrot.slane %v1073_v28, 1 }
 0x2fc   :  { %v1091_v63 = vrot.slane %v1073_v28, 6  ;;  %v1099_v36 = vrot.slane %v1073_v28, 2  ;;  %v1593_v42 = vmul.f32 %v1589_v62, %v3044_v23  ;;  %v1594_v7 = vmul.f32 %v1590_v20, %v3048_v8 }
 0x2fd   :  { %1765 = vrsqrt.f32 %v3291_v38  ;;  %v1412_v46 = vadd.f32 %v3260_v57, %v3196_v11  ;;  %v1413_v44 = vadd.f32 %v3262_v3, %v3198_v49  ;;  %vm1542_vm4 = vcmp.eq.f32.partialorder %v3293_v41, 0.0 }
 0x2fe   :  { %v1070_v25 = vpop.permute.xlu2 %1069  ;;  %1767 = vrsqrt.f32 %v3293_v41  ;;  %v1595_v34 = vadd.f32 %v1593_v42, %v1591_v33  ;;  %v1596_v30 = vadd.f32 %v1594_v7, %v1592_v39 }
 0x2ff   :  { %v1074_v35 = vadd.f32 %v1070_v25, %v1062_v60  ;;  %v1516_v60 = vadd.f32 %v3283_v45, %v1413_v44  ;;  %v1531_v45 = vand.u32 2147483648, %v3291_v38 }
 0x301   :  { %v1076_v2 = vrot.slane %v1074_v35, 7  ;;  %v1084_v56 = vrot.slane %v1074_v35, 1  ;;  %v1092_v51 = vrot.slane %v1074_v35, 6  ;;  %v1100_v58 = vrot.slane %v1074_v35, 2 }
 0x303   :  { %v1077_v10 = vsel %vm101_vm13, %v1075_v40, %v1076_v2  ;;  %v1078_v43 = vsel %vm101_vm13, %v1076_v2, %v1075_v40  ;;  %v1085_v59 = vsel %vm116_vm14, %v1083_v54, %v1084_v56  ;;  %v1086_v55 = vsel %vm116_vm14, %v1084_v56, %v1083_v54  ;;  %v1766_v19 = vpop.eup %1765  ;;  %vm3460_vm13 = vmmov %vm3453_vm12 }
 0x304   :  { %v1079_v52 = vsel %vm112_vm6, %v1078_v43, 0.0  ;;  %v1080_v31 = vsel %vm113_vm7, %v1077_v10, 0.0  ;;  %v1093_v18 = vsel %vm131_vm15, %v1091_v63, %v1092_v51  ;;  %v1094_v12 = vsel %vm131_vm15, %v1092_v51, %v1091_v63  ;;  %v1768_v61 = vpop.eup %1767  ;;  %vm3461_vm14 = vmmov %vm3454_vm10 }
 0x305   :  { %v1081_v32 = vadd.f32 %v1079_v52, %v1073_v28  ;;  %v1082_v48 = vadd.f32 %v1080_v31, %v1074_v35  ;;  %v1087_v26 = vsel %vm127_vm9, %v1085_v59, 0.0  ;;  %v1088_v47 = vsel %vm3460_vm13, %v1086_v55, 0.0  ;;  %vm3462_vm6 = vmmov %vm3455_vm2 }
 0x306   :  { %v1095_v23 = vsel %vm3461_vm14, %v1094_v12, 0.0  ;;  %v1096_v8 = vsel %vm3462_vm6, %v1093_v18, 0.0  ;;  %vm3463_vm15 = vmmov %vm3441_vm0  ;;  %v1522_v5 = vmul.f32 %v1766_v19, %v3291_v38  ;;  %v1534_v22 = vmul.f32 %v1768_v61, %v3293_v41 }
 0x307   :  { %v1089_v6 = vadd.f32 %v1087_v26, %v1081_v32  ;;  %v1090_v53 = vadd.f32 %v1088_v47, %v1082_v48  ;;  %v1101_v1 = vsel %vm3463_vm15, %v1099_v36, %v1100_v58  ;;  %vm3464_vm7 = vmmov %vm3441_vm0  ;;  %v1515_v28 = vadd.f32 %v3281_v13, %v1412_v46 }
 0x308   :  { %v1102_v14 = vsel %vm3464_vm7, %v1100_v58, %v1099_v36  ;;  %vm3465_vm9 = vmmov %vm3451_vm1  ;;  %v1523_v9 = vmul.f32 %v1766_v19, %v1522_v5  ;;  %v1535_v50 = vmul.f32 %v1768_v61, %v1534_v22  ;;  %vm3467_vm1 = vcmask 130048  }
 0x309   :  { %v1097_v27 = vadd.f32 %v1095_v23, %v1089_v6  ;;  %v1098_v29 = vadd.f32 %v1096_v8, %v1090_v53  ;;  %v1103_v16 = vsel %vm3465_vm9, %v1101_v1, 0.0  ;;  %vm3466_vm0 = vmmov %vm3459_vm3  ;;  %1597 = vst.msk [vmem:[#allocation7] sm:$0xff] %vm3467_vm1, %v1595_v34  ;;  %vm1528_vm12 = vcmp.eq.f32.partialorder %v3291_v38, inf }
 0x30a   :  { %v1104_v37 = vsel %vm3466_vm0, %v1102_v14, 0.0  ;;  %vm3468_vm11 = vmmov %vm3467_vm1  ;;  %v1524_v21 = vmul.f32 0.5, %v1523_v9  ;;  %v1536_v4 = vmul.f32 0.5, %v1535_v50  ;;  %vm1530_vm10 = vcmp.eq.f32.partialorder %v3291_v38, 0.0 }
 0x30b   :  { %v1105_v15 = vadd.f32 %v1103_v16, %v1097_v27  ;;  %v1106_v0 = vadd.f32 %v1104_v37, %v1098_v29  ;;  %1598 = vst.msk [vmem:[#allocation7 + $0x8] sm:$0xff] %vm3468_vm11, %v1596_v30  ;;  %vm1540_vm2 = vcmp.eq.f32.partialorder %v3293_v41, inf  ;;  %v1543_v56 = vand.u32 2147483648, %v3293_v41  ;;  %v1599_v27 = vld [vmem:[#allocation8] sm:$0xff]  ;;  %v1600_v29 = vld [vmem:[#allocation8 + $0x8] sm:$0xff]  ;;  %vm3469_vm9 = vmmov %vm3467_vm1 }
 0x30c   :  { %1623 = dma.vmem_to_hbm [thread:$0]  %s1616_s9, 256, %s1618_s12, [#allocation4], %s1921_s23, %s1921_s23, %s1922_s24   ;;  %v1525_v25 = vsub.f32 1.5, %v1524_v21  ;;  %v1537_v35 = vsub.f32 1.5, %v1536_v4  ;;  %vm3470_vm0 = vmmov %vm3467_vm1 }
 0x30d   :  { %v1107_v17 = vmul.f32 0.04, %v1105_v15  ;;  %v1108_v24 = vmul.f32 0.04, %v1106_v0 }
 0x30e   :  { %v1526_v3 = vmul.f32 %v1766_v19, %v1525_v25  ;;  %v1538_v62 = vmul.f32 %v1768_v61, %v1537_v35 }
 0x30f   :  { %v1547_v11 = vand.u32 2147483647, %v1107_v17  ;;  %v1548_v57 = vand.u32 2147483647, %v1108_v24  ;;  %v1553_v40 = vmul.f32 %v1515_v28, %v1107_v17  ;;  %v1554_v49 = vmul.f32 %v1516_v60, %v1108_v24 }
 0x310   :  { %v1527_v2 = vmul.f32 %v1526_v3, %v3291_v38  ;;  %v1539_v13 = vmul.f32 %v1538_v62, %v3293_v41 }
 0x311   :  { %v1549_v20 = vmul.f32 2.0, %v1547_v11  ;;  %v1550_v54 = vmul.f32 2.0, %v1548_v57 }
 0x312   :  { %v1529_v51 = vsel %vm1528_vm12, %v3291_v38, %v1527_v2  ;;  %v1541_v63 = vsel %vm1540_vm2, %v3293_v41, %v1539_v13 }
 0x313   :  { %v1551_v36 = vmax.f32 %v1549_v20, 1e-08  ;;  %v1552_v58 = vmax.f32 %v1550_v54, 1e-08  ;;  %v1532_v10 = vsel %vm1530_vm10, %v1531_v45, %v1529_v51  ;;  %v1544_v43 = vsel %vm1542_vm4, %v1543_v56, %v1541_v63 }
 0x314   :  { %v1545_v59 = vmax.f32 %v1532_v10, 1e-08  ;;  %v1546_v55 = vmax.f32 %v1544_v43, 1e-08 }
 0x316   :  { %v1555_v52 = vmul.f32 %v1551_v36, %v1545_v59  ;;  %v1556_v31 = vmul.f32 %v1552_v58, %v1546_v55 }
 0x318   :  { %1769 = vrcp.f32 %v1555_v52  ;;  %v1568_v18 = vand.u32 2147483648, %v1555_v52  ;;  %v1566_v41 = vand.u32 2147483647, %v1555_v52  ;;  %v1583_v61 = vand.u32 2147483648, %v1556_v31 }
 0x319   :  { %1771 = vrcp.f32 %v1556_v31  ;;  %v1581_v47 = vand.u32 2147483647, %v1556_v31  ;;  %vm1562_vm3 = vweird.f32 %v1555_v52  ;;  %vm1577_vm14 = vweird.f32 %v1556_v31 }
 0x31a   :  { %v1569_v8 = vor.u32 1.1754944e-38, %v1568_v18  ;;  %vm1567_vm6 = vcmp.eq.f32.partialorder %v1566_v41, 8.507059e+37  ;;  %v1584_v1 = vor.u32 1.1754944e-38, %v1583_v61 }
 0x31b   :  { %vm1582_vm7 = vcmp.eq.f32.partialorder %v1581_v47, 8.507059e+37 }
 0x31e   :  { %v1770_v42 = vpop.eup %1769 }
 0x31f   :  { %v1772_v7 = vpop.eup %1771  ;;  %v1558_v19 = vmul.f32 %v1770_v42, %v1555_v52  ;;  %vm1563_vm5 = vweird.f32 %v1770_v42 }
 0x320   :  { %v1573_v32 = vmul.f32 %v1772_v7, %v1556_v31  ;;  %vm1578_vm8 = vweird.f32 %v1772_v7  ;;  %vm1564_vm13 = vmor %vm1562_vm3, %vm1563_vm5 }
 0x321   :  { %v1559_v48 = vsub.f32 1.0, %v1558_v19  ;;  %vm1579_vm15 = vmor %vm1577_vm14, %vm1578_vm8 }
 0x322   :  { %v1574_v12 = vsub.f32 1.0, %v1573_v32 }
 0x323   :  { %v1560_v38 = vmul.f32 %v1770_v42, %v1559_v48 }
 0x324   :  { %v1575_v26 = vmul.f32 %v1772_v7, %v1574_v12 }
 0x325   :  { %v1561_v23 = vadd.f32 %v1770_v42, %v1560_v38 }
 0x326   :  { %v1576_v6 = vadd.f32 %v1772_v7, %v1575_v26 }
 0x327   :  { %v1565_v53 = vsel %vm1564_vm13, %v1770_v42, %v1561_v23 }
 0x328   :  { %v1570_v14 = vsel %vm1567_vm6, %v1569_v8, %v1565_v53  ;;  %v1580_v33 = vsel %vm1579_vm15, %v1772_v7, %v1576_v6 }
 0x329   :  { %v1571_v39 = vmul.f32 %v1570_v14, %v1553_v40  ;;  %v1585_v5 = vsel %vm1582_vm7, %v1584_v1, %v1580_v33 }
 0x32a   :  { %v1586_v22 = vmul.f32 %v1585_v5, %v1554_v49 }
 0x32b   :  { %v1587_v34 = vsub.f32 1.0, %v1571_v39 }
 0x32c   :  { %v1588_v30 = vsub.f32 1.0, %v1586_v22 }
 0x32d   :  { %v1601_v16 = vadd.f32 %v1599_v27, %v1587_v34 }
 0x32e   :  { %v1602_v37 = vadd.f32 %v1600_v29, %v1588_v30 }
 0x32f   :  { %1603 = vst.msk [vmem:[#allocation8] sm:$0xff] %vm3469_vm9, %v1601_v16 }
 0x330   :  { %1604 = vst.msk [vmem:[#allocation8 + $0x8] sm:$0xff] %vm3470_vm0, %v1602_v37 }
 0x331   :  { %1636 = dma.vmem_to_hbm [thread:$0]  %s1629_s13, 256, %s1631_s16, [#allocation9], %s1921_s23, %s1921_s23, %s1922_s24  }
 0x332   :  { %1649 = dma.vmem_to_hbm [thread:$0]  %s1642_s18, 256, %s1644_s21, [#allocation9], %s1921_s23, %s1921_s23, %s1922_s24  }
 0x333   :  { %1916 = dma.done.wait [#allocation4], 256  }
 0x334   :  { %1917 = vsyncadd [#allocation4], 4294967040 }
 0x335   :  { %1918 = dma.done.wait [#allocation9], 512  }
 0x336   :  { %1919 = vsyncadd [#allocation9], 4294966784 }
 0x337   :  { %1662 = vsyncpa [#allocation3], 1 }
 0x338   :  { %1663 = vsyncpa [#allocation6], 1 }
 0x339   :  { %1664 = vsyncpa [#allocation4], 1 }
 0x33a   :  { %1665 = vsyncpa [#allocation9], 1 }

</bundles_post_ra>
